<compile_context>
chip_gen: v7x
topology: tpu7x:2x2x1
jax: 0.10.0
libtpu: 0.0.40
codegen_flags: <defaults>
</compile_context>

<pallas_src>
import numpy as np
import jax
import jax.numpy as jnp
from jax.experimental import pallas as pl
from jax.experimental.pallas import tpu as pltpu


_COMPILER_PARAMS = pltpu.CompilerParams(
    dimension_semantics=("parallel",),
    # 40 MiB is safe on every generation (v7x has only 64 MiB physical VMEM)
    # while leaving ample room for the double-buffered batch blocks below.
    vmem_limit_bytes=40 * 1024 * 1024,
)

_K = 5      # conv kernel size
_PAD = 2    # conv padding


def _round_up(x, m):
    return (x + m - 1) // m * m


def _pick_batch_tile(n, b_max=16):
    """Images per grid step: large enough to amortize the ~0.35us/step overhead
    and fatten the MXU M dim, small enough for v7x VMEM, and capped at ceil(n/2)
    so the 'parallel' grid keeps >= 2 steps for v7x's two TensorCores."""
    return max(1, min(b_max, -(-n // 2)))


# ---------------------------------------------------------------------------
# Conv1: full 25-tap im2col (Cin=3) -> 4 fat dots + pooling max + bias
# ---------------------------------------------------------------------------
def _make_im2col_kernel(B, P, KC, Cout):
    def kernel(xs_ref, w_ref, b_ref, o_ref):
        # xs_ref: (B, 4, P, KC) bf16   -- 4 = 2x2 pooling-window parities
        # w_ref : (KC, Cout)    bf16
        # b_ref : (1, Cout)     f32
        # o_ref : (B, P, Cout)  bf16   -- P = H2*W2 pooled pixels
        m = None
        for p4 in range(4):
            sl = xs_ref[:, p4, :, :].reshape(B * P, KC)         # fold batch into M
            d = jnp.dot(sl, w_ref[...], preferred_element_type=jnp.float32)
            m = d if m is None else jnp.maximum(m, d)           # 2x2 max-pool
        m = m + b_ref[...]                                      # bias (max-invariant)
        o_ref[...] = m.reshape(B, P, Cout).astype(o_ref.dtype)
    return kernel


def conv5x5_pool2_im2col(x, w_k, b2d, batch_block):
    """Conv2d(5,1,2)+bias+MaxPool2 via full 25-tap im2col (small Cin only)."""
    N, H, W, Cin = x.shape
    Cout = w_k.shape[-1]
    H2, W2 = H // 2, W // 2
    P = H2 * W2
    KC = _K * _K * Cin
    Wpad = W + 2 * _PAD
    assert N % batch_block == 0

    # One flat gather builds (pool-parity, pooled-pixel, tap*chan) patches directly.
    xp = jnp.pad(x, ((0, 0), (_PAD, _PAD), (_PAD, _PAD), (0, 0)))
    rp = np.array([0, 0, 1, 1]).reshape(4, 1, 1, 1, 1)
    cp = np.array([0, 1, 0, 1]).reshape(4, 1, 1, 1, 1)
    h2 = (2 * np.arange(H2)).reshape(1, H2, 1, 1, 1)
    w2 = (2 * np.arange(W2)).reshape(1, 1, W2, 1, 1)
    kh = np.arange(_K).reshape(1, 1, 1, _K, 1)
    kw = np.arange(_K).reshape(1, 1, 1, 1, _K)
    flat = (h2 + rp + kh) * Wpad + (w2 + cp + kw)                 # (4,H2,W2,5,5)
    flat = flat.reshape(4, P, _K * _K)
    xs = xp.reshape(N, (H + 2 * _PAD) * Wpad, Cin)[:, flat, :]    # (N,4,P,25,Cin)
    xs = xs.reshape(N, 4, P, KC)                                  # bf16 already

    B = batch_block
    cost = pl.CostEstimate(
        flops=2 * 4 * N * P * KC * Cout,
        transcendentals=0,
        bytes_accessed=xs.size * 2 + w_k.size * 2 + N * P * Cout * 2,
    )
    out = pl.pallas_call(
        _make_im2col_kernel(B, P, KC, Cout),
        out_shape=jax.ShapeDtypeStruct((N, P, Cout), jnp.bfloat16),
        grid=(N // B,),
        in_specs=[
            pl.BlockSpec((B, 4, P, KC), lambda n: (n, 0, 0, 0)),
            pl.BlockSpec((KC, Cout), lambda n: (0, 0)),
            pl.BlockSpec((1, Cout), lambda n: (0, 0)),
        ],
        out_specs=pl.BlockSpec((B, P, Cout), lambda n: (n, 0, 0)),
        compiler_params=_COMPILER_PARAMS,
        cost_estimate=cost,
    )(xs, w_k, b2d)
    return out.reshape(N, H2, W2, Cout)


# ---------------------------------------------------------------------------
# Conv2/Conv3: row-tap formulation (5 width-taps in HBM, 5 row-taps as dots)
# fused with bias + 2x2 max-pool; batch folded into the dot M dimension.
# ---------------------------------------------------------------------------
def _make_rowtap_kernel(B, H2, Wp, W2p, W2, KC, Cout):
    def kernel(xs_ref, w_ref, b_ref, o_ref):
        # xs_ref: (B, 2, HP2*Wp, KC) bf16  -- row-parity split, width-im2col'd
        # w_ref : (5, KC, Cout)      bf16
        # b_ref : (1, Cout)          f32
        # o_ref : (B, H2, W2, Cout)  bf16
        accs = []
        for r in range(2):                       # output-row parity
            acc = None
            for i in range(_K):                  # kernel row tap
                q = (r + i) % 2                  # source half-row parity
                s = (r + i) // 2                 # source half-row offset
                sl = xs_ref[:, q, s * Wp:(s + H2) * Wp, :]
                sl = sl.reshape(B * H2 * Wp, KC)               # fold batch into M
                d = jnp.dot(sl, w_ref[i], preferred_element_type=jnp.float32)
                acc = d if acc is None else acc + d            # vreg/VMEM temps only
            accs.append(acc)
        m = jnp.maximum(accs[0], accs[1]) + b_ref[...]          # pool rows + bias
        m = m.reshape(B * H2, Wp, Cout)
        pooled = jnp.maximum(m[:, :W2p, :], m[:, W2p:, :])      # pool cols (evens/odds)
        o_ref[...] = pooled[:, :W2, :].reshape(B, H2, W2, Cout).astype(o_ref.dtype)
    return kernel


def conv5x5_pool2_rowtap(x, w_k, b2d, batch_block):
    N, H, W, Cin = x.shape
    Cout = w_k.shape[-1]
    H2, W2 = H // 2, W // 2
    Wp = max(W, 16)                 # keep every in-kernel slice 16-sublane aligned
    W2p = Wp // 2
    HP2 = (H + 2 * _PAD) // 2
    KC = _K * Cin
    Wpad = W + 2 * _PAD
    assert N % batch_block == 0

    # Single flat gather: row-parity reorder + width-direction 5-tap im2col
    # (evens-then-odds column order so pooling is a split max in-kernel).
    xp = jnp.pad(x, ((0, 0), (_PAD, _PAD), (_PAD, _PAD), (0, 0)))
    cols = np.concatenate([np.arange(0, Wp, 2), np.arange(1, Wp, 2)])
    cols = np.where(cols < W, cols, 0)                           # clamp fake columns
    q_ = np.arange(2).reshape(2, 1, 1, 1)
    s_ = np.arange(HP2).reshape(1, HP2, 1, 1)
    wt = (cols[:, None] + np.arange(_K)[None, :]).reshape(1, 1, Wp, _K)
    flat = (2 * s_ + q_) * Wpad + wt                             # (2, HP2, Wp, 5)
    flat = flat.reshape(2, HP2 * Wp, _K)
    xs = xp.reshape(N, (H + 2 * _PAD) * Wpad, Cin)[:, flat, :]   # (N,2,HP2*Wp,5,Cin)
    xs = xs.reshape(N, 2, HP2 * Wp, KC)

    B = batch_block
    cost = pl.CostEstimate(
        flops=2 * 2 * _K * N * H2 * Wp * KC * Cout,
        transcendentals=0,
        bytes_accessed=xs.size * 2 + w_k.size * 2 + N * H2 * W2 * Cout * 2,
    )
    return pl.pallas_call(
        _make_rowtap_kernel(B, H2, Wp, W2p, W2, KC, Cout),
        out_shape=jax.ShapeDtypeStruct((N, H2, W2, Cout), jnp.bfloat16),
        grid=(N // B,),
        in_specs=[
            pl.BlockSpec((B, 2, HP2 * Wp, KC), lambda n: (n, 0, 0, 0)),
            pl.BlockSpec((_K, KC, Cout), lambda n: (0, 0, 0)),
            pl.BlockSpec((1, Cout), lambda n: (0, 0)),
        ],
        out_specs=pl.BlockSpec((B, H2, W2, Cout), lambda n: (n, 0, 0, 0)),
        compiler_params=_COMPILER_PARAMS,
        cost_estimate=cost,
    )(xs, w_k, b2d)


# ---------------------------------------------------------------------------
# Fused fc1 + fc2 head (single M-tiled pallas_call, all-bf16 MXU, f32 accum)
# ---------------------------------------------------------------------------
def _fc_kernel(x_ref, w1_ref, b1_ref, w2_ref, b2_ref, o_ref):
    h = jnp.dot(x_ref[...], w1_ref[...], preferred_element_type=jnp.float32) + b1_ref[...]
    o_ref[...] = (jnp.dot(h.astype(jnp.bfloat16), w2_ref[...],
                          preferred_element_type=jnp.float32) + b2_ref[...])


def fc_head(x_flat, w1, b1, w2, b2, tile_m=128):
    """x_flat: (N, 1024) bf16; w1: (1024,64) bf16; w2: (64,10) bf16 -> (N, 10) f32."""
    N, D = x_flat.shape
    tm = min(tile_m, _round_up(N, 8))
    Np = _round_up(N, tm)
    if Np != N:
        x_flat = jnp.pad(x_flat, ((0, Np - N), (0, 0)))
    out = pl.pallas_call(
        _fc_kernel,
        out_shape=jax.ShapeDtypeStruct((Np, w2.shape[-1]), jnp.float32),
        grid=(Np // tm,),
        in_specs=[
            pl.BlockSpec((tm, D), lambda i: (i, 0)),
            pl.BlockSpec(w1.shape, lambda i: (0, 0)),
            pl.BlockSpec(b1.shape, lambda i: (0, 0)),
            pl.BlockSpec(w2.shape, lambda i: (0, 0)),
            pl.BlockSpec(b2.shape, lambda i: (0, 0)),
        ],
        out_specs=pl.BlockSpec((tm, w2.shape[-1]), lambda i: (i, 0)),
        compiler_params=_COMPILER_PARAMS,
    )(x_flat, w1, b1, w2, b2)
    return out[:N]


# ---------------------------------------------------------------------------
# Parameters (torch-default-like uniform init) + one-time kernel-layout prep
# ---------------------------------------------------------------------------
def init_params(key):
    keys = jax.random.split(key, 5)

    def conv_init(k, cout, cin, ksz):
        fan_in = cin * ksz * ksz
        bound = 1.0 / (fan_in ** 0.5)
        kw_, kb_ = jax.random.split(k)
        w = jax.random.uniform(kw_, (cout, cin, ksz, ksz), jnp.float32, -bound, bound)
        b = jax.random.uniform(kb_, (cout,), jnp.float32, -bound, bound)
        return w, b

    def lin_init(k, out_f, in_f):
        bound = 1.0 / (in_f ** 0.5)
        kw_, kb_ = jax.random.split(k)
        w = jax.random.uniform(kw_, (out_f, in_f), jnp.float32, -bound, bound)
        b = jax.random.uniform(kb_, (out_f,), jnp.float32, -bound, bound)
        return w, b

    return {
        "conv1": conv_init(keys[0], 32, 3, 5),
        "conv2": conv_init(keys[1], 32, 32, 5),
        "conv3": conv_init(keys[2], 64, 32, 5),
        "fc1": lin_init(keys[3], 64, 64 * 4 * 4),
        "fc2": lin_init(keys[4], 10, 64),
    }


def prepare_params(params):
    """Fold all weight transposes / flatten-order permutations into one-time prep."""
    prep = {}
    # conv1 -> full-im2col layout: rows ordered (kh, kw, cin)
    w, b = params["conv1"]
    cout, cin, kh, kw = w.shape
    prep["conv1"] = (
        jnp.transpose(w, (2, 3, 1, 0)).reshape(kh * kw * cin, cout).astype(jnp.bfloat16),
        b.reshape(1, cout).astype(jnp.float32),
    )
    # conv2/3 -> per-row-tap layout: (kh, kw*cin, cout)
    for name in ("conv2", "conv3"):
        w, b = params[name]
        cout, cin, kh, kw = w.shape
        wk = jnp.transpose(w, (2, 3, 1, 0)).reshape(kh, kw * cin, cout).astype(jnp.bfloat16)
        prep[name] = (wk, b.reshape(1, cout).astype(jnp.float32))
    # fc1: absorb torch's NCHW-flatten order; our activations are flattened (h, w, c).
    w1, b1 = params["fc1"]                        # (64, 1024), torch flat idx = c*16 + h*4 + w
    w1r = w1.reshape(64, 64, 4, 4)                # (out, c, h, w)
    w1p = jnp.transpose(w1r, (2, 3, 1, 0)).reshape(4 * 4 * 64, 64)   # rows ordered (h, w, c)
    prep["fc1"] = (w1p.astype(jnp.bfloat16), b1.reshape(1, 64).astype(jnp.float32))
    w2, b2 = params["fc2"]                        # (10, 64)
    prep["fc2"] = (jnp.transpose(w2, (1, 0)).astype(jnp.bfloat16),
                   b2.reshape(1, 10).astype(jnp.float32))
    return prep


# ---------------------------------------------------------------------------
# Forward pass (matches TianNet.forward; input is NCHW like torch)
# ---------------------------------------------------------------------------
def tiannet_forward(prep, x_nchw, batch_tile=16):
    N = x_nchw.shape[0]
    # bf16 before any layout work so pad/gather/transpose move half the bytes.
    x = jnp.transpose(x_nchw.astype(jnp.bfloat16), (0, 2, 3, 1))   # NCHW -> NHWC
    B = _pick_batch_tile(N, batch_tile)
    Np = _round_up(N, B)
    if Np != N:
        x = jnp.pad(x, ((0, Np - N), (0, 0), (0, 0), (0, 0)))
    x = conv5x5_pool2_im2col(x, *prep["conv1"], batch_block=B)     # (Np,16,16,32) bf16
    x = conv5x5_pool2_rowtap(x, *prep["conv2"], batch_block=B)     # (Np, 8, 8,32) bf16
    x = conv5x5_pool2_rowtap(x, *prep["conv3"], batch_block=B)     # (Np, 4, 4,64) bf16
    # Flatten in (h, w, c) order; fc1 weights were permuted to absorb the torch
    # NCHW-flatten order, so no runtime transpose is needed (free XLA reshape).
    x_flat = x.reshape(Np, -1)                                     # (Np, 1024) bf16
    # TODO(synk): fold the fc head into the conv3 kernel epilogue once a safe
    # in-kernel sublane->lane flatten is available; would save one pallas_call
    # and the tiny (Np,1024) HBM round trip.
    return fc_head(x_flat, *prep["fc1"], *prep["fc2"])[:N]         # (N, 10) f32


if __name__ == "__main__":
    key = jax.random.PRNGKey(0)
    k_x, k_p = jax.random.split(key)
    # Shapes implied by the module: 3x32x32 images (32 -> 16 -> 8 -> 4 = 64*4*4).
    x = jax.random.normal(k_x, (2, 3, 32, 32), jnp.float32)
    params = init_params(k_p)
    prep = prepare_params(params)

    fwd = jax.jit(tiannet_forward)
    out = jax.block_until_ready(fwd(prep, x))
    assert out.shape == (2, 10) and out.dtype == jnp.float32
    print("KERNEL_OK")
</pallas_src>

<mosaic_0001>
module attributes {stable_mosaic.version = 11 : i64} {
  func.func @kernel(%arg0: i32, %arg1: memref<1x4x256x75xbf16, #tpu.memory_space<vmem>>, %arg2: memref<75x32xbf16, #tpu.memory_space<vmem>>, %arg3: memref<1x32xf32, #tpu.memory_space<vmem>>, %arg4: memref<1x256x32xbf16, #tpu.memory_space<vmem>>) attributes {dimension_semantics = [#tpu.dimension_semantics<parallel>], iteration_bounds = array<i64: 2>, scalar_prefetch = 0 : i64, scratch_operands = 0 : i64, tpu.core_type = #tpu.core_type<tc>, window_params = [{transform_indices = @transform_0, window_bounds = array<i64: 1, 4, 256, 75>}, {pipeline_mode = #tpu.pipeline_mode<synchronous>, transform_indices = @transform_1, window_bounds = array<i64: 75, 32>}, {pipeline_mode = #tpu.pipeline_mode<synchronous>, transform_indices = @transform_2, window_bounds = array<i64: 1, 32>}, {transform_indices = @transform_3, window_bounds = array<i64: 1, 256, 32>}]} {
    %c0 = arith.constant 0 : index
    %c0_0 = arith.constant 0 : index
    %c0_1 = arith.constant 0 : index
    %c0_2 = arith.constant 0 : index
    %0 = vector.load %arg1[%c0, %c0_0, %c0_1, %c0_2] : memref<1x4x256x75xbf16, #tpu.memory_space<vmem>>, vector<1x1x256x75xbf16>
    %1 = vector.shape_cast %0 : vector<1x1x256x75xbf16> to vector<1x256x75xbf16>
    %2 = vector.shape_cast %1 : vector<1x256x75xbf16> to vector<256x75xbf16>
    %c0_3 = arith.constant 0 : index
    %c0_4 = arith.constant 0 : index
    %3 = vector.load %arg2[%c0_3, %c0_4] : memref<75x32xbf16, #tpu.memory_space<vmem>>, vector<75x32xbf16>
    %cst = arith.constant dense<0.000000e+00> : vector<256x32xf32>
    %4 = tpu.matmul %2, %3, %cst {dimension_numbers = #tpu.dot_dimension_numbers<[1], [0], [0], [1], [0, 0, 1, 1], [], []>} : vector<256x75xbf16>, vector<75x32xbf16>, vector<256x32xf32> -> vector<256x32xf32>
    %c0_5 = arith.constant 0 : index
    %c1 = arith.constant 1 : index
    %c0_6 = arith.constant 0 : index
    %c0_7 = arith.constant 0 : index
    %5 = vector.load %arg1[%c0_5, %c1, %c0_6, %c0_7] : memref<1x4x256x75xbf16, #tpu.memory_space<vmem>>, vector<1x1x256x75xbf16>
    %6 = vector.shape_cast %5 : vector<1x1x256x75xbf16> to vector<1x256x75xbf16>
    %7 = vector.shape_cast %6 : vector<1x256x75xbf16> to vector<256x75xbf16>
    %c0_8 = arith.constant 0 : index
    %c0_9 = arith.constant 0 : index
    %8 = vector.load %arg2[%c0_8, %c0_9] : memref<75x32xbf16, #tpu.memory_space<vmem>>, vector<75x32xbf16>
    %cst_10 = arith.constant dense<0.000000e+00> : vector<256x32xf32>
    %9 = tpu.matmul %7, %8, %cst_10 {dimension_numbers = #tpu.dot_dimension_numbers<[1], [0], [0], [1], [0, 0, 1, 1], [], []>} : vector<256x75xbf16>, vector<75x32xbf16>, vector<256x32xf32> -> vector<256x32xf32>
    %10 = arith.maximumf %4, %9 : vector<256x32xf32>
    %c0_11 = arith.constant 0 : index
    %c2 = arith.constant 2 : index
    %c0_12 = arith.constant 0 : index
    %c0_13 = arith.constant 0 : index
    %11 = vector.load %arg1[%c0_11, %c2, %c0_12, %c0_13] : memref<1x4x256x75xbf16, #tpu.memory_space<vmem>>, vector<1x1x256x75xbf16>
    %12 = vector.shape_cast %11 : vector<1x1x256x75xbf16> to vector<1x256x75xbf16>
    %13 = vector.shape_cast %12 : vector<1x256x75xbf16> to vector<256x75xbf16>
    %c0_14 = arith.constant 0 : index
    %c0_15 = arith.constant 0 : index
    %14 = vector.load %arg2[%c0_14, %c0_15] : memref<75x32xbf16, #tpu.memory_space<vmem>>, vector<75x32xbf16>
    %cst_16 = arith.constant dense<0.000000e+00> : vector<256x32xf32>
    %15 = tpu.matmul %13, %14, %cst_16 {dimension_numbers = #tpu.dot_dimension_numbers<[1], [0], [0], [1], [0, 0, 1, 1], [], []>} : vector<256x75xbf16>, vector<75x32xbf16>, vector<256x32xf32> -> vector<256x32xf32>
    %16 = arith.maximumf %10, %15 : vector<256x32xf32>
    %c0_17 = arith.constant 0 : index
    %c3 = arith.constant 3 : index
    %c0_18 = arith.constant 0 : index
    %c0_19 = arith.constant 0 : index
    %17 = vector.load %arg1[%c0_17, %c3, %c0_18, %c0_19] : memref<1x4x256x75xbf16, #tpu.memory_space<vmem>>, vector<1x1x256x75xbf16>
    %18 = vector.shape_cast %17 : vector<1x1x256x75xbf16> to vector<1x256x75xbf16>
    %19 = vector.shape_cast %18 : vector<1x256x75xbf16> to vector<256x75xbf16>
    %c0_20 = arith.constant 0 : index
    %c0_21 = arith.constant 0 : index
    %20 = vector.load %arg2[%c0_20, %c0_21] : memref<75x32xbf16, #tpu.memory_space<vmem>>, vector<75x32xbf16>
    %cst_22 = arith.constant dense<0.000000e+00> : vector<256x32xf32>
    %21 = tpu.matmul %19, %20, %cst_22 {dimension_numbers = #tpu.dot_dimension_numbers<[1], [0], [0], [1], [0, 0, 1, 1], [], []>} : vector<256x75xbf16>, vector<75x32xbf16>, vector<256x32xf32> -> vector<256x32xf32>
    %22 = arith.maximumf %16, %21 : vector<256x32xf32>
    %c0_23 = arith.constant 0 : index
    %c0_24 = arith.constant 0 : index
    %23 = vector.load %arg3[%c0_23, %c0_24] : memref<1x32xf32, #tpu.memory_space<vmem>>, vector<1x32xf32>
    %24 = vector.broadcast %23 : vector<1x32xf32> to vector<256x32xf32>
    %25 = arith.addf %22, %24 : vector<256x32xf32>
    %26 = vector.shape_cast %25 : vector<256x32xf32> to vector<1x256x32xf32>
    %27 = arith.truncf %26 : vector<1x256x32xf32> to vector<1x256x32xbf16>
    %c0_25 = arith.constant 0 : index
    %c0_26 = arith.constant 0 : index
    %c0_27 = arith.constant 0 : index
    %28 = vector.load %arg4[%c0_25, %c0_26, %c0_27] : memref<1x256x32xbf16, #tpu.memory_space<vmem>>, vector<1x256x32xbf16>
    tpu.vector_store %arg4[%c0_25, %c0_26, %c0_27], %27 {strides = array<i32>} : memref<1x256x32xbf16, #tpu.memory_space<vmem>>, vector<1x256x32xbf16>,
    return
  }
  func.func @transform_0(%arg0: i32) -> (i32, i32, i32, i32) {
    %c0_i32 = arith.constant 0 : i32
    %c0_i32_0 = arith.constant 0 : i32
    %c0_i32_1 = arith.constant 0 : i32
    %c0_i32_2 = arith.constant 0 : i32
    return %arg0, %c0_i32, %c0_i32_0, %c0_i32_1 : i32, i32, i32, i32
  }
  func.func @transform_1(%arg0: i32) -> (i32, i32) {
    %c0_i32 = arith.constant 0 : i32
    %c0_i32_0 = arith.constant 0 : i32
    %c0_i32_1 = arith.constant 0 : i32
    return %c0_i32, %c0_i32_0 : i32, i32
  }
  func.func @transform_2(%arg0: i32) -> (i32, i32) {
    %c0_i32 = arith.constant 0 : i32
    %c0_i32_0 = arith.constant 0 : i32
    %c0_i32_1 = arith.constant 0 : i32
    return %c0_i32, %c0_i32_0 : i32, i32
  }
  func.func @transform_3(%arg0: i32) -> (i32, i32, i32) {
    %c0_i32 = arith.constant 0 : i32
    %c0_i32_0 = arith.constant 0 : i32
    %c0_i32_1 = arith.constant 0 : i32
    return %arg0, %c0_i32, %c0_i32_0 : i32, i32, i32
  }
}

module attributes {stable_mosaic.version = 11 : i64} {
  func.func @kernel(%arg0: i32, %arg1: memref<1x2x160x160xbf16, #tpu.memory_space<vmem>>, %arg2: memref<5x160x32xbf16, #tpu.memory_space<vmem>>, %arg3: memref<1x32xf32, #tpu.memory_space<vmem>>, %arg4: memref<1x8x8x32xbf16, #tpu.memory_space<vmem>>) attributes {dimension_semantics = [#tpu.dimension_semantics<parallel>], iteration_bounds = array<i64: 2>, scalar_prefetch = 0 : i64, scratch_operands = 0 : i64, tpu.core_type = #tpu.core_type<tc>, window_params = [{transform_indices = @transform_0, window_bounds = array<i64: 1, 2, 160, 160>}, {pipeline_mode = #tpu.pipeline_mode<synchronous>, transform_indices = @transform_1, window_bounds = array<i64: 5, 160, 32>}, {pipeline_mode = #tpu.pipeline_mode<synchronous>, transform_indices = @transform_2, window_bounds = array<i64: 1, 32>}, {transform_indices = @transform_3, window_bounds = array<i64: 1, 8, 8, 32>}]} {
    %c0 = arith.constant 0 : index
    %c0_0 = arith.constant 0 : index
    %c0_1 = arith.constant 0 : index
    %c0_2 = arith.constant 0 : index
    %0 = vector.load %arg1[%c0, %c0_0, %c0_1, %c0_2] : memref<1x2x160x160xbf16, #tpu.memory_space<vmem>>, vector<1x1x128x160xbf16>
    %1 = vector.shape_cast %0 : vector<1x1x128x160xbf16> to vector<1x128x160xbf16>
    %2 = vector.shape_cast %1 : vector<1x128x160xbf16> to vector<128x160xbf16>
    %c0_3 = arith.constant 0 : index
    %c0_4 = arith.constant 0 : index
    %c0_5 = arith.constant 0 : index
    %3 = vector.load %arg2[%c0_3, %c0_4, %c0_5] : memref<5x160x32xbf16, #tpu.memory_space<vmem>>, vector<1x160x32xbf16>
    %4 = vector.shape_cast %3 : vector<1x160x32xbf16> to vector<160x32xbf16>
    %cst = arith.constant dense<0.000000e+00> : vector<128x32xf32>
    %5 = tpu.matmul %2, %4, %cst {dimension_numbers = #tpu.dot_dimension_numbers<[1], [0], [0], [1], [0, 0, 1, 1], [], []>} : vector<128x160xbf16>, vector<160x32xbf16>, vector<128x32xf32> -> vector<128x32xf32>
    %c0_6 = arith.constant 0 : index
    %c1 = arith.constant 1 : index
    %c0_7 = arith.constant 0 : index
    %c0_8 = arith.constant 0 : index
    %6 = vector.load %arg1[%c0_6, %c1, %c0_7, %c0_8] : memref<1x2x160x160xbf16, #tpu.memory_space<vmem>>, vector<1x1x128x160xbf16>
    %7 = vector.shape_cast %6 : vector<1x1x128x160xbf16> to vector<1x128x160xbf16>
    %8 = vector.shape_cast %7 : vector<1x128x160xbf16> to vector<128x160xbf16>
    %c1_9 = arith.constant 1 : index
    %c0_10 = arith.constant 0 : index
    %c0_11 = arith.constant 0 : index
    %9 = vector.load %arg2[%c1_9, %c0_10, %c0_11] : memref<5x160x32xbf16, #tpu.memory_space<vmem>>, vector<1x160x32xbf16>
    %10 = vector.shape_cast %9 : vector<1x160x32xbf16> to vector<160x32xbf16>
    %cst_12 = arith.constant dense<0.000000e+00> : vector<128x32xf32>
    %11 = tpu.matmul %8, %10, %cst_12 {dimension_numbers = #tpu.dot_dimension_numbers<[1], [0], [0], [1], [0, 0, 1, 1], [], []>} : vector<128x160xbf16>, vector<160x32xbf16>, vector<128x32xf32> -> vector<128x32xf32>
    %12 = arith.addf %5, %11 : vector<128x32xf32>
    %c0_13 = arith.constant 0 : index
    %c0_14 = arith.constant 0 : index
    %c16 = arith.constant 16 : index
    %c0_15 = arith.constant 0 : index
    %13 = vector.load %arg1[%c0_13, %c0_14, %c16, %c0_15] : memref<1x2x160x160xbf16, #tpu.memory_space<vmem>>, vector<1x1x128x160xbf16>
    %14 = vector.shape_cast %13 : vector<1x1x128x160xbf16> to vector<1x128x160xbf16>
    %15 = vector.shape_cast %14 : vector<1x128x160xbf16> to vector<128x160xbf16>
    %c2 = arith.constant 2 : index
    %c0_16 = arith.constant 0 : index
    %c0_17 = arith.constant 0 : index
    %16 = vector.load %arg2[%c2, %c0_16, %c0_17] : memref<5x160x32xbf16, #tpu.memory_space<vmem>>, vector<1x160x32xbf16>
    %17 = vector.shape_cast %16 : vector<1x160x32xbf16> to vector<160x32xbf16>
    %cst_18 = arith.constant dense<0.000000e+00> : vector<128x32xf32>
    %18 = tpu.matmul %15, %17, %cst_18 {dimension_numbers = #tpu.dot_dimension_numbers<[1], [0], [0], [1], [0, 0, 1, 1], [], []>} : vector<128x160xbf16>, vector<160x32xbf16>, vector<128x32xf32> -> vector<128x32xf32>
    %19 = arith.addf %12, %18 : vector<128x32xf32>
    %c0_19 = arith.constant 0 : index
    %c1_20 = arith.constant 1 : index
    %c16_21 = arith.constant 16 : index
    %c0_22 = arith.constant 0 : index
    %20 = vector.load %arg1[%c0_19, %c1_20, %c16_21, %c0_22] : memref<1x2x160x160xbf16, #tpu.memory_space<vmem>>, vector<1x1x128x160xbf16>
    %21 = vector.shape_cast %20 : vector<1x1x128x160xbf16> to vector<1x128x160xbf16>
    %22 = vector.shape_cast %21 : vector<1x128x160xbf16> to vector<128x160xbf16>
    %c3 = arith.constant 3 : index
    %c0_23 = arith.constant 0 : index
    %c0_24 = arith.constant 0 : index
    %23 = vector.load %arg2[%c3, %c0_23, %c0_24] : memref<5x160x32xbf16, #tpu.memory_space<vmem>>, vector<1x160x32xbf16>
    %24 = vector.shape_cast %23 : vector<1x160x32xbf16> to vector<160x32xbf16>
    %cst_25 = arith.constant dense<0.000000e+00> : vector<128x32xf32>
    %25 = tpu.matmul %22, %24, %cst_25 {dimension_numbers = #tpu.dot_dimension_numbers<[1], [0], [0], [1], [0, 0, 1, 1], [], []>} : vector<128x160xbf16>, vector<160x32xbf16>, vector<128x32xf32> -> vector<128x32xf32>
    %26 = arith.addf %19, %25 : vector<128x32xf32>
    %c0_26 = arith.constant 0 : index
    %c0_27 = arith.constant 0 : index
    %c32 = arith.constant 32 : index
    %c0_28 = arith.constant 0 : index
    %27 = vector.load %arg1[%c0_26, %c0_27, %c32, %c0_28] : memref<1x2x160x160xbf16, #tpu.memory_space<vmem>>, vector<1x1x128x160xbf16>
    %28 = vector.shape_cast %27 : vector<1x1x128x160xbf16> to vector<1x128x160xbf16>
    %29 = vector.shape_cast %28 : vector<1x128x160xbf16> to vector<128x160xbf16>
    %c4 = arith.constant 4 : index
    %c0_29 = arith.constant 0 : index
    %c0_30 = arith.constant 0 : index
    %30 = vector.load %arg2[%c4, %c0_29, %c0_30] : memref<5x160x32xbf16, #tpu.memory_space<vmem>>, vector<1x160x32xbf16>
    %31 = vector.shape_cast %30 : vector<1x160x32xbf16> to vector<160x32xbf16>
    %cst_31 = arith.constant dense<0.000000e+00> : vector<128x32xf32>
    %32 = tpu.matmul %29, %31, %cst_31 {dimension_numbers = #tpu.dot_dimension_numbers<[1], [0], [0], [1], [0, 0, 1, 1], [], []>} : vector<128x160xbf16>, vector<160x32xbf16>, vector<128x32xf32> -> vector<128x32xf32>
    %33 = arith.addf %26, %32 : vector<128x32xf32>
    %c0_32 = arith.constant 0 : index
    %c1_33 = arith.constant 1 : index
    %c0_34 = arith.constant 0 : index
    %c0_35 = arith.constant 0 : index
    %34 = vector.load %arg1[%c0_32, %c1_33, %c0_34, %c0_35] : memref<1x2x160x160xbf16, #tpu.memory_space<vmem>>, vector<1x1x128x160xbf16>
    %35 = vector.shape_cast %34 : vector<1x1x128x160xbf16> to vector<1x128x160xbf16>
    %36 = vector.shape_cast %35 : vector<1x128x160xbf16> to vector<128x160xbf16>
    %c0_36 = arith.constant 0 : index
    %c0_37 = arith.constant 0 : index
    %c0_38 = arith.constant 0 : index
    %37 = vector.load %arg2[%c0_36, %c0_37, %c0_38] : memref<5x160x32xbf16, #tpu.memory_space<vmem>>, vector<1x160x32xbf16>
    %38 = vector.shape_cast %37 : vector<1x160x32xbf16> to vector<160x32xbf16>
    %cst_39 = arith.constant dense<0.000000e+00> : vector<128x32xf32>
    %39 = tpu.matmul %36, %38, %cst_39 {dimension_numbers = #tpu.dot_dimension_numbers<[1], [0], [0], [1], [0, 0, 1, 1], [], []>} : vector<128x160xbf16>, vector<160x32xbf16>, vector<128x32xf32> -> vector<128x32xf32>
    %c0_40 = arith.constant 0 : index
    %c0_41 = arith.constant 0 : index
    %c16_42 = arith.constant 16 : index
    %c0_43 = arith.constant 0 : index
    %40 = vector.load %arg1[%c0_40, %c0_41, %c16_42, %c0_43] : memref<1x2x160x160xbf16, #tpu.memory_space<vmem>>, vector<1x1x128x160xbf16>
    %41 = vector.shape_cast %40 : vector<1x1x128x160xbf16> to vector<1x128x160xbf16>
    %42 = vector.shape_cast %41 : vector<1x128x160xbf16> to vector<128x160xbf16>
    %c1_44 = arith.constant 1 : index
    %c0_45 = arith.constant 0 : index
    %c0_46 = arith.constant 0 : index
    %43 = vector.load %arg2[%c1_44, %c0_45, %c0_46] : memref<5x160x32xbf16, #tpu.memory_space<vmem>>, vector<1x160x32xbf16>
    %44 = vector.shape_cast %43 : vector<1x160x32xbf16> to vector<160x32xbf16>
    %cst_47 = arith.constant dense<0.000000e+00> : vector<128x32xf32>
    %45 = tpu.matmul %42, %44, %cst_47 {dimension_numbers = #tpu.dot_dimension_numbers<[1], [0], [0], [1], [0, 0, 1, 1], [], []>} : vector<128x160xbf16>, vector<160x32xbf16>, vector<128x32xf32> -> vector<128x32xf32>
    %46 = arith.addf %39, %45 : vector<128x32xf32>
    %c0_48 = arith.constant 0 : index
    %c1_49 = arith.constant 1 : index
    %c16_50 = arith.constant 16 : index
    %c0_51 = arith.constant 0 : index
    %47 = vector.load %arg1[%c0_48, %c1_49, %c16_50, %c0_51] : memref<1x2x160x160xbf16, #tpu.memory_space<vmem>>, vector<1x1x128x160xbf16>
    %48 = vector.shape_cast %47 : vector<1x1x128x160xbf16> to vector<1x128x160xbf16>
    %49 = vector.shape_cast %48 : vector<1x128x160xbf16> to vector<128x160xbf16>
    %c2_52 = arith.constant 2 : index
    %c0_53 = arith.constant 0 : index
    %c0_54 = arith.constant 0 : index
    %50 = vector.load %arg2[%c2_52, %c0_53, %c0_54] : memref<5x160x32xbf16, #tpu.memory_space<vmem>>, vector<1x160x32xbf16>
    %51 = vector.shape_cast %50 : vector<1x160x32xbf16> to vector<160x32xbf16>
    %cst_55 = arith.constant dense<0.000000e+00> : vector<128x32xf32>
    %52 = tpu.matmul %49, %51, %cst_55 {dimension_numbers = #tpu.dot_dimension_numbers<[1], [0], [0], [1], [0, 0, 1, 1], [], []>} : vector<128x160xbf16>, vector<160x32xbf16>, vector<128x32xf32> -> vector<128x32xf32>
    %53 = arith.addf %46, %52 : vector<128x32xf32>
    %c0_56 = arith.constant 0 : index
    %c0_57 = arith.constant 0 : index
    %c32_58 = arith.constant 32 : index
    %c0_59 = arith.constant 0 : index
    %54 = vector.load %arg1[%c0_56, %c0_57, %c32_58, %c0_59] : memref<1x2x160x160xbf16, #tpu.memory_space<vmem>>, vector<1x1x128x160xbf16>
    %55 = vector.shape_cast %54 : vector<1x1x128x160xbf16> to vector<1x128x160xbf16>
    %56 = vector.shape_cast %55 : vector<1x128x160xbf16> to vector<128x160xbf16>
    %c3_60 = arith.constant 3 : index
    %c0_61 = arith.constant 0 : index
    %c0_62 = arith.constant 0 : index
    %57 = vector.load %arg2[%c3_60, %c0_61, %c0_62] : memref<5x160x32xbf16, #tpu.memory_space<vmem>>, vector<1x160x32xbf16>
    %58 = vector.shape_cast %57 : vector<1x160x32xbf16> to vector<160x32xbf16>
    %cst_63 = arith.constant dense<0.000000e+00> : vector<128x32xf32>
    %59 = tpu.matmul %56, %58, %cst_63 {dimension_numbers = #tpu.dot_dimension_numbers<[1], [0], [0], [1], [0, 0, 1, 1], [], []>} : vector<128x160xbf16>, vector<160x32xbf16>, vector<128x32xf32> -> vector<128x32xf32>
    %60 = arith.addf %53, %59 : vector<128x32xf32>
    %c0_64 = arith.constant 0 : index
    %c1_65 = arith.constant 1 : index
    %c32_66 = arith.constant 32 : index
    %c0_67 = arith.constant 0 : index
    %61 = vector.load %arg1[%c0_64, %c1_65, %c32_66, %c0_67] : memref<1x2x160x160xbf16, #tpu.memory_space<vmem>>, vector<1x1x128x160xbf16>
    %62 = vector.shape_cast %61 : vector<1x1x128x160xbf16> to vector<1x128x160xbf16>
    %63 = vector.shape_cast %62 : vector<1x128x160xbf16> to vector<128x160xbf16>
    %c4_68 = arith.constant 4 : index
    %c0_69 = arith.constant 0 : index
    %c0_70 = arith.constant 0 : index
    %64 = vector.load %arg2[%c4_68, %c0_69, %c0_70] : memref<5x160x32xbf16, #tpu.memory_space<vmem>>, vector<1x160x32xbf16>
    %65 = vector.shape_cast %64 : vector<1x160x32xbf16> to vector<160x32xbf16>
    %cst_71 = arith.constant dense<0.000000e+00> : vector<128x32xf32>
    %66 = tpu.matmul %63, %65, %cst_71 {dimension_numbers = #tpu.dot_dimension_numbers<[1], [0], [0], [1], [0, 0, 1, 1], [], []>} : vector<128x160xbf16>, vector<160x32xbf16>, vector<128x32xf32> -> vector<128x32xf32>
    %67 = arith.addf %60, %66 : vector<128x32xf32>
    %68 = arith.maximumf %33, %67 : vector<128x32xf32>
    %c0_72 = arith.constant 0 : index
    %c0_73 = arith.constant 0 : index
    %69 = vector.load %arg3[%c0_72, %c0_73] : memref<1x32xf32, #tpu.memory_space<vmem>>, vector<1x32xf32>
    %70 = vector.broadcast %69 : vector<1x32xf32> to vector<128x32xf32>
    %71 = arith.addf %68, %70 : vector<128x32xf32>
    %72 = vector.shape_cast %71 : vector<128x32xf32> to vector<8x16x32xf32>
    %73 = vector.extract_strided_slice %72 {offsets = [0, 0, 0], sizes = [8, 8, 32], strides = [1, 1, 1]} : vector<8x16x32xf32> to vector<8x8x32xf32>
    %74 = vector.extract_strided_slice %72 {offsets = [0, 8, 0], sizes = [8, 8, 32], strides = [1, 1, 1]} : vector<8x16x32xf32> to vector<8x8x32xf32>
    %75 = arith.maximumf %73, %74 : vector<8x8x32xf32>
    %76 = vector.shape_cast %75 : vector<8x8x32xf32> to vector<1x8x8x32xf32>
    %77 = arith.truncf %76 : vector<1x8x8x32xf32> to vector<1x8x8x32xbf16>
    %c0_74 = arith.constant 0 : index
    %c0_75 = arith.constant 0 : index
    %c0_76 = arith.constant 0 : index
    %c0_77 = arith.constant 0 : index
    %78 = vector.load %arg4[%c0_74, %c0_75, %c0_76, %c0_77] : memref<1x8x8x32xbf16, #tpu.memory_space<vmem>>, vector<1x8x8x32xbf16>
    tpu.vector_store %arg4[%c0_74, %c0_75, %c0_76, %c0_77], %77 {strides = array<i32>} : memref<1x8x8x32xbf16, #tpu.memory_space<vmem>>, vector<1x8x8x32xbf16>,
    return
  }
  func.func @transform_0(%arg0: i32) -> (i32, i32, i32, i32) {
    %c0_i32 = arith.constant 0 : i32
    %c0_i32_0 = arith.constant 0 : i32
    %c0_i32_1 = arith.constant 0 : i32
    %c0_i32_2 = arith.constant 0 : i32
    return %arg0, %c0_i32, %c0_i32_0, %c0_i32_1 : i32, i32, i32, i32
  }
  func.func @transform_1(%arg0: i32) -> (i32, i32, i32) {
    %c0_i32 = arith.constant 0 : i32
    %c0_i32_0 = arith.constant 0 : i32
    %c0_i32_1 = arith.constant 0 : i32
    %c0_i32_2 = arith.constant 0 : i32
    return %c0_i32, %c0_i32_0, %c0_i32_1 : i32, i32, i32
  }
  func.func @transform_2(%arg0: i32) -> (i32, i32) {
    %c0_i32 = arith.constant 0 : i32
    %c0_i32_0 = arith.constant 0 : i32
    %c0_i32_1 = arith.constant 0 : i32
    return %c0_i32, %c0_i32_0 : i32, i32
  }
  func.func @transform_3(%arg0: i32) -> (i32, i32, i32, i32) {
    %c0_i32 = arith.constant 0 : i32
    %c0_i32_0 = arith.constant 0 : i32
    %c0_i32_1 = arith.constant 0 : i32
    %c0_i32_2 = arith.constant 0 : i32
    return %arg0, %c0_i32, %c0_i32_0, %c0_i32_1 : i32, i32, i32, i32
  }
}

module attributes {stable_mosaic.version = 11 : i64} {
  func.func @kernel(%arg0: i32, %arg1: memref<1x2x96x160xbf16, #tpu.memory_space<vmem>>, %arg2: memref<5x160x64xbf16, #tpu.memory_space<vmem>>, %arg3: memref<1x64xf32, #tpu.memory_space<vmem>>, %arg4: memref<1x4x4x64xbf16, #tpu.memory_space<vmem>>) attributes {dimension_semantics = [#tpu.dimension_semantics<parallel>], iteration_bounds = array<i64: 2>, scalar_prefetch = 0 : i64, scratch_operands = 0 : i64, tpu.core_type = #tpu.core_type<tc>, window_params = [{transform_indices = @transform_0, window_bounds = array<i64: 1, 2, 96, 160>}, {pipeline_mode = #tpu.pipeline_mode<synchronous>, transform_indices = @transform_1, window_bounds = array<i64: 5, 160, 64>}, {pipeline_mode = #tpu.pipeline_mode<synchronous>, transform_indices = @transform_2, window_bounds = array<i64: 1, 64>}, {transform_indices = @transform_3, window_bounds = array<i64: 1, 4, 4, 64>}]} {
    %c0 = arith.constant 0 : index
    %c0_0 = arith.constant 0 : index
    %c0_1 = arith.constant 0 : index
    %c0_2 = arith.constant 0 : index
    %0 = vector.load %arg1[%c0, %c0_0, %c0_1, %c0_2] : memref<1x2x96x160xbf16, #tpu.memory_space<vmem>>, vector<1x1x64x160xbf16>
    %1 = vector.shape_cast %0 : vector<1x1x64x160xbf16> to vector<1x64x160xbf16>
    %2 = vector.shape_cast %1 : vector<1x64x160xbf16> to vector<64x160xbf16>
    %c0_3 = arith.constant 0 : index
    %c0_4 = arith.constant 0 : index
    %c0_5 = arith.constant 0 : index
    %3 = vector.load %arg2[%c0_3, %c0_4, %c0_5] : memref<5x160x64xbf16, #tpu.memory_space<vmem>>, vector<1x160x64xbf16>
    %4 = vector.shape_cast %3 : vector<1x160x64xbf16> to vector<160x64xbf16>
    %cst = arith.constant dense<0.000000e+00> : vector<64x64xf32>
    %5 = tpu.matmul %2, %4, %cst {dimension_numbers = #tpu.dot_dimension_numbers<[1], [0], [0], [1], [0, 0, 1, 1], [], []>} : vector<64x160xbf16>, vector<160x64xbf16>, vector<64x64xf32> -> vector<64x64xf32>
    %c0_6 = arith.constant 0 : index
    %c1 = arith.constant 1 : index
    %c0_7 = arith.constant 0 : index
    %c0_8 = arith.constant 0 : index
    %6 = vector.load %arg1[%c0_6, %c1, %c0_7, %c0_8] : memref<1x2x96x160xbf16, #tpu.memory_space<vmem>>, vector<1x1x64x160xbf16>
    %7 = vector.shape_cast %6 : vector<1x1x64x160xbf16> to vector<1x64x160xbf16>
    %8 = vector.shape_cast %7 : vector<1x64x160xbf16> to vector<64x160xbf16>
    %c1_9 = arith.constant 1 : index
    %c0_10 = arith.constant 0 : index
    %c0_11 = arith.constant 0 : index
    %9 = vector.load %arg2[%c1_9, %c0_10, %c0_11] : memref<5x160x64xbf16, #tpu.memory_space<vmem>>, vector<1x160x64xbf16>
    %10 = vector.shape_cast %9 : vector<1x160x64xbf16> to vector<160x64xbf16>
    %cst_12 = arith.constant dense<0.000000e+00> : vector<64x64xf32>
    %11 = tpu.matmul %8, %10, %cst_12 {dimension_numbers = #tpu.dot_dimension_numbers<[1], [0], [0], [1], [0, 0, 1, 1], [], []>} : vector<64x160xbf16>, vector<160x64xbf16>, vector<64x64xf32> -> vector<64x64xf32>
    %12 = arith.addf %5, %11 : vector<64x64xf32>
    %c0_13 = arith.constant 0 : index
    %c0_14 = arith.constant 0 : index
    %c16 = arith.constant 16 : index
    %c0_15 = arith.constant 0 : index
    %13 = vector.load %arg1[%c0_13, %c0_14, %c16, %c0_15] : memref<1x2x96x160xbf16, #tpu.memory_space<vmem>>, vector<1x1x64x160xbf16>
    %14 = vector.shape_cast %13 : vector<1x1x64x160xbf16> to vector<1x64x160xbf16>
    %15 = vector.shape_cast %14 : vector<1x64x160xbf16> to vector<64x160xbf16>
    %c2 = arith.constant 2 : index
    %c0_16 = arith.constant 0 : index
    %c0_17 = arith.constant 0 : index
    %16 = vector.load %arg2[%c2, %c0_16, %c0_17] : memref<5x160x64xbf16, #tpu.memory_space<vmem>>, vector<1x160x64xbf16>
    %17 = vector.shape_cast %16 : vector<1x160x64xbf16> to vector<160x64xbf16>
    %cst_18 = arith.constant dense<0.000000e+00> : vector<64x64xf32>
    %18 = tpu.matmul %15, %17, %cst_18 {dimension_numbers = #tpu.dot_dimension_numbers<[1], [0], [0], [1], [0, 0, 1, 1], [], []>} : vector<64x160xbf16>, vector<160x64xbf16>, vector<64x64xf32> -> vector<64x64xf32>
    %19 = arith.addf %12, %18 : vector<64x64xf32>
    %c0_19 = arith.constant 0 : index
    %c1_20 = arith.constant 1 : index
    %c16_21 = arith.constant 16 : index
    %c0_22 = arith.constant 0 : index
    %20 = vector.load %arg1[%c0_19, %c1_20, %c16_21, %c0_22] : memref<1x2x96x160xbf16, #tpu.memory_space<vmem>>, vector<1x1x64x160xbf16>
    %21 = vector.shape_cast %20 : vector<1x1x64x160xbf16> to vector<1x64x160xbf16>
    %22 = vector.shape_cast %21 : vector<1x64x160xbf16> to vector<64x160xbf16>
    %c3 = arith.constant 3 : index
    %c0_23 = arith.constant 0 : index
    %c0_24 = arith.constant 0 : index
    %23 = vector.load %arg2[%c3, %c0_23, %c0_24] : memref<5x160x64xbf16, #tpu.memory_space<vmem>>, vector<1x160x64xbf16>
    %24 = vector.shape_cast %23 : vector<1x160x64xbf16> to vector<160x64xbf16>
    %cst_25 = arith.constant dense<0.000000e+00> : vector<64x64xf32>
    %25 = tpu.matmul %22, %24, %cst_25 {dimension_numbers = #tpu.dot_dimension_numbers<[1], [0], [0], [1], [0, 0, 1, 1], [], []>} : vector<64x160xbf16>, vector<160x64xbf16>, vector<64x64xf32> -> vector<64x64xf32>
    %26 = arith.addf %19, %25 : vector<64x64xf32>
    %c0_26 = arith.constant 0 : index
    %c0_27 = arith.constant 0 : index
    %c32 = arith.constant 32 : index
    %c0_28 = arith.constant 0 : index
    %27 = vector.load %arg1[%c0_26, %c0_27, %c32, %c0_28] : memref<1x2x96x160xbf16, #tpu.memory_space<vmem>>, vector<1x1x64x160xbf16>
    %28 = vector.shape_cast %27 : vector<1x1x64x160xbf16> to vector<1x64x160xbf16>
    %29 = vector.shape_cast %28 : vector<1x64x160xbf16> to vector<64x160xbf16>
    %c4 = arith.constant 4 : index
    %c0_29 = arith.constant 0 : index
    %c0_30 = arith.constant 0 : index
    %30 = vector.load %arg2[%c4, %c0_29, %c0_30] : memref<5x160x64xbf16, #tpu.memory_space<vmem>>, vector<1x160x64xbf16>
    %31 = vector.shape_cast %30 : vector<1x160x64xbf16> to vector<160x64xbf16>
    %cst_31 = arith.constant dense<0.000000e+00> : vector<64x64xf32>
    %32 = tpu.matmul %29, %31, %cst_31 {dimension_numbers = #tpu.dot_dimension_numbers<[1], [0], [0], [1], [0, 0, 1, 1], [], []>} : vector<64x160xbf16>, vector<160x64xbf16>, vector<64x64xf32> -> vector<64x64xf32>
    %33 = arith.addf %26, %32 : vector<64x64xf32>
    %c0_32 = arith.constant 0 : index
    %c1_33 = arith.constant 1 : index
    %c0_34 = arith.constant 0 : index
    %c0_35 = arith.constant 0 : index
    %34 = vector.load %arg1[%c0_32, %c1_33, %c0_34, %c0_35] : memref<1x2x96x160xbf16, #tpu.memory_space<vmem>>, vector<1x1x64x160xbf16>
    %35 = vector.shape_cast %34 : vector<1x1x64x160xbf16> to vector<1x64x160xbf16>
    %36 = vector.shape_cast %35 : vector<1x64x160xbf16> to vector<64x160xbf16>
    %c0_36 = arith.constant 0 : index
    %c0_37 = arith.constant 0 : index
    %c0_38 = arith.constant 0 : index
    %37 = vector.load %arg2[%c0_36, %c0_37, %c0_38] : memref<5x160x64xbf16, #tpu.memory_space<vmem>>, vector<1x160x64xbf16>
    %38 = vector.shape_cast %37 : vector<1x160x64xbf16> to vector<160x64xbf16>
    %cst_39 = arith.constant dense<0.000000e+00> : vector<64x64xf32>
    %39 = tpu.matmul %36, %38, %cst_39 {dimension_numbers = #tpu.dot_dimension_numbers<[1], [0], [0], [1], [0, 0, 1, 1], [], []>} : vector<64x160xbf16>, vector<160x64xbf16>, vector<64x64xf32> -> vector<64x64xf32>
    %c0_40 = arith.constant 0 : index
    %c0_41 = arith.constant 0 : index
    %c16_42 = arith.constant 16 : index
    %c0_43 = arith.constant 0 : index
    %40 = vector.load %arg1[%c0_40, %c0_41, %c16_42, %c0_43] : memref<1x2x96x160xbf16, #tpu.memory_space<vmem>>, vector<1x1x64x160xbf16>
    %41 = vector.shape_cast %40 : vector<1x1x64x160xbf16> to vector<1x64x160xbf16>
    %42 = vector.shape_cast %41 : vector<1x64x160xbf16> to vector<64x160xbf16>
    %c1_44 = arith.constant 1 : index
    %c0_45 = arith.constant 0 : index
    %c0_46 = arith.constant 0 : index
    %43 = vector.load %arg2[%c1_44, %c0_45, %c0_46] : memref<5x160x64xbf16, #tpu.memory_space<vmem>>, vector<1x160x64xbf16>
    %44 = vector.shape_cast %43 : vector<1x160x64xbf16> to vector<160x64xbf16>
    %cst_47 = arith.constant dense<0.000000e+00> : vector<64x64xf32>
    %45 = tpu.matmul %42, %44, %cst_47 {dimension_numbers = #tpu.dot_dimension_numbers<[1], [0], [0], [1], [0, 0, 1, 1], [], []>} : vector<64x160xbf16>, vector<160x64xbf16>, vector<64x64xf32> -> vector<64x64xf32>
    %46 = arith.addf %39, %45 : vector<64x64xf32>
    %c0_48 = arith.constant 0 : index
    %c1_49 = arith.constant 1 : index
    %c16_50 = arith.constant 16 : index
    %c0_51 = arith.constant 0 : index
    %47 = vector.load %arg1[%c0_48, %c1_49, %c16_50, %c0_51] : memref<1x2x96x160xbf16, #tpu.memory_space<vmem>>, vector<1x1x64x160xbf16>
    %48 = vector.shape_cast %47 : vector<1x1x64x160xbf16> to vector<1x64x160xbf16>
    %49 = vector.shape_cast %48 : vector<1x64x160xbf16> to vector<64x160xbf16>
    %c2_52 = arith.constant 2 : index
    %c0_53 = arith.constant 0 : index
    %c0_54 = arith.constant 0 : index
    %50 = vector.load %arg2[%c2_52, %c0_53, %c0_54] : memref<5x160x64xbf16, #tpu.memory_space<vmem>>, vector<1x160x64xbf16>
    %51 = vector.shape_cast %50 : vector<1x160x64xbf16> to vector<160x64xbf16>
    %cst_55 = arith.constant dense<0.000000e+00> : vector<64x64xf32>
    %52 = tpu.matmul %49, %51, %cst_55 {dimension_numbers = #tpu.dot_dimension_numbers<[1], [0], [0], [1], [0, 0, 1, 1], [], []>} : vector<64x160xbf16>, vector<160x64xbf16>, vector<64x64xf32> -> vector<64x64xf32>
    %53 = arith.addf %46, %52 : vector<64x64xf32>
    %c0_56 = arith.constant 0 : index
    %c0_57 = arith.constant 0 : index
    %c32_58 = arith.constant 32 : index
    %c0_59 = arith.constant 0 : index
    %54 = vector.load %arg1[%c0_56, %c0_57, %c32_58, %c0_59] : memref<1x2x96x160xbf16, #tpu.memory_space<vmem>>, vector<1x1x64x160xbf16>
    %55 = vector.shape_cast %54 : vector<1x1x64x160xbf16> to vector<1x64x160xbf16>
    %56 = vector.shape_cast %55 : vector<1x64x160xbf16> to vector<64x160xbf16>
    %c3_60 = arith.constant 3 : index
    %c0_61 = arith.constant 0 : index
    %c0_62 = arith.constant 0 : index
    %57 = vector.load %arg2[%c3_60, %c0_61, %c0_62] : memref<5x160x64xbf16, #tpu.memory_space<vmem>>, vector<1x160x64xbf16>
    %58 = vector.shape_cast %57 : vector<1x160x64xbf16> to vector<160x64xbf16>
    %cst_63 = arith.constant dense<0.000000e+00> : vector<64x64xf32>
    %59 = tpu.matmul %56, %58, %cst_63 {dimension_numbers = #tpu.dot_dimension_numbers<[1], [0], [0], [1], [0, 0, 1, 1], [], []>} : vector<64x160xbf16>, vector<160x64xbf16>, vector<64x64xf32> -> vector<64x64xf32>
    %60 = arith.addf %53, %59 : vector<64x64xf32>
    %c0_64 = arith.constant 0 : index
    %c1_65 = arith.constant 1 : index
    %c32_66 = arith.constant 32 : index
    %c0_67 = arith.constant 0 : index
    %61 = vector.load %arg1[%c0_64, %c1_65, %c32_66, %c0_67] : memref<1x2x96x160xbf16, #tpu.memory_space<vmem>>, vector<1x1x64x160xbf16>
    %62 = vector.shape_cast %61 : vector<1x1x64x160xbf16> to vector<1x64x160xbf16>
    %63 = vector.shape_cast %62 : vector<1x64x160xbf16> to vector<64x160xbf16>
    %c4_68 = arith.constant 4 : index
    %c0_69 = arith.constant 0 : index
    %c0_70 = arith.constant 0 : index
    %64 = vector.load %arg2[%c4_68, %c0_69, %c0_70] : memref<5x160x64xbf16, #tpu.memory_space<vmem>>, vector<1x160x64xbf16>
    %65 = vector.shape_cast %64 : vector<1x160x64xbf16> to vector<160x64xbf16>
    %cst_71 = arith.constant dense<0.000000e+00> : vector<64x64xf32>
    %66 = tpu.matmul %63, %65, %cst_71 {dimension_numbers = #tpu.dot_dimension_numbers<[1], [0], [0], [1], [0, 0, 1, 1], [], []>} : vector<64x160xbf16>, vector<160x64xbf16>, vector<64x64xf32> -> vector<64x64xf32>
    %67 = arith.addf %60, %66 : vector<64x64xf32>
    %68 = arith.maximumf %33, %67 : vector<64x64xf32>
    %c0_72 = arith.constant 0 : index
    %c0_73 = arith.constant 0 : index
    %69 = vector.load %arg3[%c0_72, %c0_73] : memref<1x64xf32, #tpu.memory_space<vmem>>, vector<1x64xf32>
    %70 = vector.broadcast %69 : vector<1x64xf32> to vector<64x64xf32>
    %71 = arith.addf %68, %70 : vector<64x64xf32>
    %72 = vector.shape_cast %71 : vector<64x64xf32> to vector<4x16x64xf32>
    %73 = vector.extract_strided_slice %72 {offsets = [0, 0, 0], sizes = [4, 8, 64], strides = [1, 1, 1]} : vector<4x16x64xf32> to vector<4x8x64xf32>
    %74 = vector.extract_strided_slice %72 {offsets = [0, 8, 0], sizes = [4, 8, 64], strides = [1, 1, 1]} : vector<4x16x64xf32> to vector<4x8x64xf32>
    %75 = arith.maximumf %73, %74 : vector<4x8x64xf32>
    %76 = vector.extract_strided_slice %75 {offsets = [0, 0, 0], sizes = [4, 4, 64], strides = [1, 1, 1]} : vector<4x8x64xf32> to vector<4x4x64xf32>
    %77 = vector.shape_cast %76 : vector<4x4x64xf32> to vector<1x4x4x64xf32>
    %78 = arith.truncf %77 : vector<1x4x4x64xf32> to vector<1x4x4x64xbf16>
    %c0_74 = arith.constant 0 : index
    %c0_75 = arith.constant 0 : index
    %c0_76 = arith.constant 0 : index
    %c0_77 = arith.constant 0 : index
    %79 = vector.load %arg4[%c0_74, %c0_75, %c0_76, %c0_77] : memref<1x4x4x64xbf16, #tpu.memory_space<vmem>>, vector<1x4x4x64xbf16>
    tpu.vector_store %arg4[%c0_74, %c0_75, %c0_76, %c0_77], %78 {strides = array<i32>} : memref<1x4x4x64xbf16, #tpu.memory_space<vmem>>, vector<1x4x4x64xbf16>,
    return
  }
  func.func @transform_0(%arg0: i32) -> (i32, i32, i32, i32) {
    %c0_i32 = arith.constant 0 : i32
    %c0_i32_0 = arith.constant 0 : i32
    %c0_i32_1 = arith.constant 0 : i32
    %c0_i32_2 = arith.constant 0 : i32
    return %arg0, %c0_i32, %c0_i32_0, %c0_i32_1 : i32, i32, i32, i32
  }
  func.func @transform_1(%arg0: i32) -> (i32, i32, i32) {
    %c0_i32 = arith.constant 0 : i32
    %c0_i32_0 = arith.constant 0 : i32
    %c0_i32_1 = arith.constant 0 : i32
    %c0_i32_2 = arith.constant 0 : i32
    return %c0_i32, %c0_i32_0, %c0_i32_1 : i32, i32, i32
  }
  func.func @transform_2(%arg0: i32) -> (i32, i32) {
    %c0_i32 = arith.constant 0 : i32
    %c0_i32_0 = arith.constant 0 : i32
    %c0_i32_1 = arith.constant 0 : i32
    return %c0_i32, %c0_i32_0 : i32, i32
  }
  func.func @transform_3(%arg0: i32) -> (i32, i32, i32, i32) {
    %c0_i32 = arith.constant 0 : i32
    %c0_i32_0 = arith.constant 0 : i32
    %c0_i32_1 = arith.constant 0 : i32
    %c0_i32_2 = arith.constant 0 : i32
    return %arg0, %c0_i32, %c0_i32_0, %c0_i32_1 : i32, i32, i32, i32
  }
}

module attributes {stable_mosaic.version = 11 : i64} {
  func.func @_fc_kernel(%arg0: i32, %arg1: memref<8x1024xbf16, #tpu.memory_space<vmem>>, %arg2: memref<1024x64xbf16, #tpu.memory_space<vmem>>, %arg3: memref<1x64xf32, #tpu.memory_space<vmem>>, %arg4: memref<64x10xbf16, #tpu.memory_space<vmem>>, %arg5: memref<1x10xf32, #tpu.memory_space<vmem>>, %arg6: memref<8x10xf32, #tpu.memory_space<vmem>>) attributes {dimension_semantics = [#tpu.dimension_semantics<parallel>], iteration_bounds = array<i64: 1>, scalar_prefetch = 0 : i64, scratch_operands = 0 : i64, tpu.core_type = #tpu.core_type<tc>, window_params = [{transform_indices = @transform_0, window_bounds = array<i64: 8, 1024>}, {pipeline_mode = #tpu.pipeline_mode<synchronous>, transform_indices = @transform_1, window_bounds = array<i64: 1024, 64>}, {pipeline_mode = #tpu.pipeline_mode<synchronous>, transform_indices = @transform_2, window_bounds = array<i64: 1, 64>}, {pipeline_mode = #tpu.pipeline_mode<synchronous>, transform_indices = @transform_3, window_bounds = array<i64: 64, 10>}, {pipeline_mode = #tpu.pipeline_mode<synchronous>, transform_indices = @transform_4, window_bounds = array<i64: 1, 10>}, {transform_indices = @transform_5, window_bounds = array<i64: 8, 10>}]} {
    %c0 = arith.constant 0 : index
    %c0_0 = arith.constant 0 : index
    %0 = vector.load %arg1[%c0, %c0_0] : memref<8x1024xbf16, #tpu.memory_space<vmem>>, vector<8x1024xbf16>
    %c0_1 = arith.constant 0 : index
    %c0_2 = arith.constant 0 : index
    %1 = vector.load %arg2[%c0_1, %c0_2] : memref<1024x64xbf16, #tpu.memory_space<vmem>>, vector<1024x64xbf16>
    %cst = arith.constant dense<0.000000e+00> : vector<8x64xf32>
    %2 = tpu.matmul %0, %1, %cst {dimension_numbers = #tpu.dot_dimension_numbers<[1], [0], [0], [1], [0, 0, 1, 1], [], []>} : vector<8x1024xbf16>, vector<1024x64xbf16>, vector<8x64xf32> -> vector<8x64xf32>
    %c0_3 = arith.constant 0 : index
    %c0_4 = arith.constant 0 : index
    %3 = vector.load %arg3[%c0_3, %c0_4] : memref<1x64xf32, #tpu.memory_space<vmem>>, vector<1x64xf32>
    %4 = vector.broadcast %3 : vector<1x64xf32> to vector<8x64xf32>
    %5 = arith.addf %2, %4 : vector<8x64xf32>
    %6 = arith.truncf %5 : vector<8x64xf32> to vector<8x64xbf16>
    %c0_5 = arith.constant 0 : index
    %c0_6 = arith.constant 0 : index
    %7 = vector.load %arg4[%c0_5, %c0_6] : memref<64x10xbf16, #tpu.memory_space<vmem>>, vector<64x10xbf16>
    %cst_7 = arith.constant dense<0.000000e+00> : vector<8x10xf32>
    %8 = tpu.matmul %6, %7, %cst_7 {dimension_numbers = #tpu.dot_dimension_numbers<[1], [0], [0], [1], [0, 0, 1, 1], [], []>} : vector<8x64xbf16>, vector<64x10xbf16>, vector<8x10xf32> -> vector<8x10xf32>
    %c0_8 = arith.constant 0 : index
    %c0_9 = arith.constant 0 : index
    %9 = vector.load %arg5[%c0_8, %c0_9] : memref<1x10xf32, #tpu.memory_space<vmem>>, vector<1x10xf32>
    %10 = vector.broadcast %9 : vector<1x10xf32> to vector<8x10xf32>
    %11 = arith.addf %8, %10 : vector<8x10xf32>
    %c0_10 = arith.constant 0 : index
    %c0_11 = arith.constant 0 : index
    %12 = vector.load %arg6[%c0_10, %c0_11] : memref<8x10xf32, #tpu.memory_space<vmem>>, vector<8x10xf32>
    tpu.vector_store %arg6[%c0_10, %c0_11], %11 {strides = array<i32>} : memref<8x10xf32, #tpu.memory_space<vmem>>, vector<8x10xf32>,
    return
  }
  func.func @transform_0(%arg0: i32) -> (i32, i32) {
    %c0_i32 = arith.constant 0 : i32
    %c0_i32_0 = arith.constant 0 : i32
    return %arg0, %c0_i32 : i32, i32
  }
  func.func @transform_1(%arg0: i32) -> (i32, i32) {
    %c0_i32 = arith.constant 0 : i32
    %c0_i32_0 = arith.constant 0 : i32
    %c0_i32_1 = arith.constant 0 : i32
    return %c0_i32, %c0_i32_0 : i32, i32
  }
  func.func @transform_2(%arg0: i32) -> (i32, i32) {
    %c0_i32 = arith.constant 0 : i32
    %c0_i32_0 = arith.constant 0 : i32
    %c0_i32_1 = arith.constant 0 : i32
    return %c0_i32, %c0_i32_0 : i32, i32
  }
  func.func @transform_3(%arg0: i32) -> (i32, i32) {
    %c0_i32 = arith.constant 0 : i32
    %c0_i32_0 = arith.constant 0 : i32
    %c0_i32_1 = arith.constant 0 : i32
    return %c0_i32, %c0_i32_0 : i32, i32
  }
  func.func @transform_4(%arg0: i32) -> (i32, i32) {
    %c0_i32 = arith.constant 0 : i32
    %c0_i32_0 = arith.constant 0 : i32
    %c0_i32_1 = arith.constant 0 : i32
    return %c0_i32, %c0_i32_0 : i32, i32
  }
  func.func @transform_5(%arg0: i32) -> (i32, i32) {
    %c0_i32 = arith.constant 0 : i32
    %c0_i32_0 = arith.constant 0 : i32
    return %arg0, %c0_i32 : i32, i32
  }
}

</mosaic_0001>

<bundles_post_ra>
// kernel: tiannet_forward.4
= control target key start
LH: loop header
LB: loop body
LE: loop exit
PB: predicated region body
PF: predicated region fallthrough
CT: control target
= control target key end

     0   :  { %s2523_s12 = smov 0   ;;  %s3080_s0 = inlined_call_operand.vmem [shape: bf16[2,4,256,75], index: 0, kind: input, shape index: {}]   ;;  %s3081_s1 = inlined_call_operand.vmem [shape: bf16[75,32], index: 1, kind: input, shape index: {}]   ;;  %s3082_s2 = inlined_call_operand.vmem [shape: f32[1,32], index: 2, kind: input, shape index: {}]   ;;  %s3083_s3 = inlined_call_operand.vmem [shape: bf16[2,256,32], index: 3, kind: output, shape index: {}]  }
   0x1 LB: > { %s1857_s13 = sadd.s32 4294967295, %s2500_s12   ;;  %p1861_p0 = scmp.ge.s32.totalorder %s2500_s12, 1  ;;  %s2500_s12 = sphi %s2523_s12, %s13_s12  }
   0x2   : > { %p137_p1 = scmp.lt.s32.totalorder %s2500_s12, 3 }
   0x4   : > { %p138_p2 = pnand %p1861_p0, %p137_p1 }
   0x6   : > { %141 = sbr.rel (%p138_p2) target bundleno = 378 (0x17a), region = 32 }
   0xd   : > { %v2425_v0 = vld [vmem:[%s3081_s1] sm:$0xff]   ;;  %v2426_v1 = vld [vmem:[%s3081_s1 + $0x8] sm:$0xff]   ;;  %vm372_vm0 = vcmask 1044480   ;;  %v2427_v2 = vld [vmem:[%s3081_s1 + $0x10] sm:$0xff]   ;;  %p161_p3 = scmp.lt.s32.totalorder %s1857_s13, 1  ;;  %vm373_vm1 = vcmask 1045504  }
   0xe   : > { %2248 = vmatprep.subr.bf16.mxu0 %v2425_v0  ;;  %2290 = vmatprep.subr.bf16.mxu1 %v2425_v0  ;;  %v2502_v3 = vmov 65535   ;;  %v2428_v5 = vld [vmem:[%s3081_s1 + $0x18] sm:$0xff]   ;;  %v2429_v6 = vld [vmem:[%s3081_s1 + $0x20] sm:$0x3f]   ;;  %vm323_vm2 = vcmask 613376   ;;  %vm1769_vm3 = vcmask 257024  }
   0xf   : > { %2249 = vmatpush3.bf16.msra.mxu0 %v2425_v0  ;;  %2291 = vmatpush3.bf16.msra.mxu1 %v2425_v0  ;;  %v374_v4 = vsel %vm372_vm0, 4294967295, %v2502_v3  ;;  %s3168_s13 = smov (!%p161_p3, %s1857_s13), 1 }
  0x10   : > { %2250 = vmatprep.subr.bf16.mxu0 %v2426_v1  ;;  %2292 = vmatprep.subr.bf16.mxu1 %v2426_v1  ;;  %v375_v7 = vsel %vm373_vm1, %v374_v4, 0  ;;  %s2130_s24 = sshll.u32 %s3168_s13, 9  ;;  %s2131_s30 = sshll.u32 %s3168_s13, 7 }
  0x11   : > { %s2552_s27 = scalar_lea.vmem %s3080_s0, %s2130_s24  ;;  %v377_v9 = vand.u32 %v2429_v6, %v375_v7  ;;  %s2896_s6 = scalar_lea.vmem %s3083_s3, %s2131_s30 }
  0x12   : > { %v2430_v8 = vld [vmem:[%s2552_s27] sm:$0xff]   ;;  %v2432_v11 = vld [vmem:[%s2552_s27 + $0x8] sm:$0xff]   ;;  %v2434_v13 = vld [vmem:[%s2552_s27 + $0x10] sm:$0xff]  }
  0x13   : > { %2251 = vmatpush3.bf16.msra.mxu0 %v2426_v1  ;;  %2293 = vmatpush3.bf16.msra.mxu1 %v2426_v1  ;;  %v2431_v10 = vld [vmem:[%s2552_s27 + $0x80] sm:$0xff]   ;;  %v2433_v12 = vld [vmem:[%s2552_s27 + $0x88] sm:$0xff]   ;;  %v2435_v14 = vld [vmem:[%s2552_s27 + $0x90] sm:$0xff]  }
  0x14   : > { %2252 = vmatprep.subr.bf16.mxu0 %v2427_v2  ;;  %2294 = vmatprep.subr.bf16.mxu1 %v2427_v2  ;;  %v2436_v15 = vld [vmem:[%s2552_s27 + $0x18] sm:$0xff]   ;;  %v2438_v17 = vld [vmem:[%s2552_s27 + $0x20] sm:$0xff]   ;;  %v2440_v19 = vld [vmem:[%s2552_s27 + $0x28] sm:$0xff]  }
  0x15   : > { %2258 = vmatprep.mubr.msk.bf16.mxu0 %vm323_vm2, %v2430_v8  ;;  %2300 = vmatprep.mubr.msk.bf16.mxu1 %vm323_vm2, %v2431_v10  ;;  %v2437_v16 = vld [vmem:[%s2552_s27 + $0x98] sm:$0xff]   ;;  %v2439_v18 = vld [vmem:[%s2552_s27 + $0xa0] sm:$0xff]   ;;  %v2441_v20 = vld [vmem:[%s2552_s27 + $0xa8] sm:$0xff]  }
  0x16   : > { %v2442_v21 = vld [vmem:[%s2552_s27 + $0x30] sm:$0xff]   ;;  %v2444_v23 = vld [vmem:[%s2552_s27 + $0x38] sm:$0xff]   ;;  %v2446_v25 = vld [vmem:[%s2552_s27 + $0x40] sm:$0xff]  }
  0x17   : > { %2253 = vmatpush3.bf16.msra.mxu0 %v2427_v2  ;;  %2295 = vmatpush3.bf16.msra.mxu1 %v2427_v2  ;;  %v2443_v22 = vld [vmem:[%s2552_s27 + $0xb0] sm:$0xff]   ;;  %v2445_v24 = vld [vmem:[%s2552_s27 + $0xb8] sm:$0xff]   ;;  %v2447_v26 = vld [vmem:[%s2552_s27 + $0xc0] sm:$0xff]  }
  0x18   : > { %2254 = vmatprep.subr.bf16.mxu0 %v2428_v5  ;;  %2296 = vmatprep.subr.bf16.mxu1 %v2428_v5  ;;  %v2448_v27 = vld [vmem:[%s2552_s27 + $0x48] sm:$0xff]   ;;  %v2450_v29 = vld [vmem:[%s2552_s27 + $0x50] sm:$0xff]   ;;  %v2452_v31 = vld [vmem:[%s2552_s27 + $0x58] sm:$0xff]  }
  0x19   : > { %v2449_v28 = vld [vmem:[%s2552_s27 + $0xc8] sm:$0xff]   ;;  %v2451_v30 = vld [vmem:[%s2552_s27 + $0xd0] sm:$0xff]   ;;  %v2453_v32 = vld [vmem:[%s2552_s27 + $0xd8] sm:$0xff]  }
  0x1a   : > { %v2454_v33 = vld [vmem:[%s2552_s27 + $0x60] sm:$0xff]   ;;  %v2456_v35 = vld [vmem:[%s2552_s27 + $0x68] sm:$0xff]   ;;  %v2458_v37 = vld [vmem:[%s2552_s27 + $0x70] sm:$0xff]  }
  0x1b   : > { %2255 = vmatpush3.bf16.msra.mxu0 %v2428_v5  ;;  %2297 = vmatpush3.bf16.msra.mxu1 %v2428_v5  ;;  %v2455_v34 = vld [vmem:[%s2552_s27 + $0xe0] sm:$0xff]   ;;  %v2457_v36 = vld [vmem:[%s2552_s27 + $0xe8] sm:$0xff]   ;;  %v2459_v38 = vld [vmem:[%s2552_s27 + $0xf0] sm:$0xff]  }
  0x1c   : > { %2256 = vmatprep.subr.bf16.mxu0 %v377_v9  ;;  %2298 = vmatprep.subr.bf16.mxu1 %v377_v9  ;;  %v2460_v39 = vld [vmem:[%s2552_s27 + $0x78] sm:$0xff]   ;;  %v2462_v41 = vld [vmem:[%s2552_s27 + $0x100] sm:$0xff]   ;;  %v2464_v43 = vld [vmem:[%s2552_s27 + $0x108] sm:$0xff]  }
  0x1d   : > { %v2461_v40 = vld [vmem:[%s2552_s27 + $0xf8] sm:$0xff]   ;;  %v2463_v42 = vld [vmem:[%s2552_s27 + $0x180] sm:$0xff]   ;;  %v2465_v44 = vld [vmem:[%s2552_s27 + $0x188] sm:$0xff]  }
  0x1e   : > { %v2466_v45 = vld [vmem:[%s2552_s27 + $0x110] sm:$0xff]   ;;  %v2468_v47 = vld [vmem:[%s2552_s27 + $0x118] sm:$0xff]   ;;  %v2470_v49 = vld [vmem:[%s2552_s27 + $0x120] sm:$0xff]  }
  0x1f   : > { %2257 = vmatpush3.bf16.msra.mxu0 %v377_v9  ;;  %2299 = vmatpush3.bf16.msra.mxu1 %v377_v9  ;;  %v2467_v46 = vld [vmem:[%s2552_s27 + $0x190] sm:$0xff]   ;;  %v2469_v48 = vld [vmem:[%s2552_s27 + $0x198] sm:$0xff]   ;;  %v2471_v50 = vld [vmem:[%s2552_s27 + $0x1a0] sm:$0xff]  }
  0x20   : > { %2332 = vmatprep.subr.bf16.mxu0 %v2425_v0  ;;  %2374 = vmatprep.subr.bf16.mxu1 %v2425_v0  ;;  %v2472_v51 = vld [vmem:[%s2552_s27 + $0x128] sm:$0xff]   ;;  %v2474_v53 = vld [vmem:[%s2552_s27 + $0x130] sm:$0xff]   ;;  %v2476_v55 = vld [vmem:[%s2552_s27 + $0x138] sm:$0xff]  }
  0x21   : > { %v2473_v52 = vld [vmem:[%s2552_s27 + $0x1a8] sm:$0xff]   ;;  %v2475_v54 = vld [vmem:[%s2552_s27 + $0x1b0] sm:$0xff]   ;;  %v2477_v56 = vld [vmem:[%s2552_s27 + $0x1b8] sm:$0xff]  }
  0x22   : > { %2259 = vmatmul.mubr.msk.bf16.vlgmr.msra.gmra.mrb[0].mxu0 %vm323_vm2, %v2432_v11  ;;  %2301 = vmatmul.mubr.msk.bf16.vlgmr.msra.gmra.mrb[0].mxu1 %vm323_vm2, %v2433_v12  ;;  %v2478_v57 = vld [vmem:[%s2552_s27 + $0x140] sm:$0xff]   ;;  %v2480_v59 = vld [vmem:[%s2552_s27 + $0x148] sm:$0xff]   ;;  %v2482_v61 = vld [vmem:[%s2552_s27 + $0x150] sm:$0xff]  }
  0x23   : > { %2333 = vmatpush3.bf16.msra.mxu0 %v2425_v0  ;;  %2375 = vmatpush3.bf16.msra.mxu1 %v2425_v0  ;;  %v2479_v58 = vld [vmem:[%s2552_s27 + $0x1c0] sm:$0xff]   ;;  %v2481_v60 = vld [vmem:[%s2552_s27 + $0x1c8] sm:$0xff]   ;;  %v2483_v62 = vld [vmem:[%s2552_s27 + $0x1d0] sm:$0xff]  }
  0x24   : > { %2262 = vmatprep.mubr.msk.bf16.mxu0 %vm323_vm2, %v2434_v13  ;;  %2304 = vmatprep.mubr.msk.bf16.mxu1 %vm323_vm2, %v2435_v14  ;;  %v2484_v63 = vld [vmem:[%s2552_s27 + $0x158] sm:$0xff]   ;;  %v2488_v3 = vld [vmem:[%s2552_s27 + $0x168] sm:$0xff]   ;;  %v2491_v6 = vld [vmem:[%s2552_s27 + $0x1f0] sm:$0xff]  }
  0x25   : > { %2334 = vmatprep.subr.bf16.mxu0 %v2426_v1  ;;  %2376 = vmatprep.subr.bf16.mxu1 %v2426_v1  ;;  %v2485_v0 = vld [vmem:[%s2552_s27 + $0x1d8] sm:$0xff]   ;;  %v2489_v4 = vld [vmem:[%s2552_s27 + $0x1e8] sm:$0xff]  }
  0x26   : > { %v2492_v7 = vld [vmem:[%s2552_s27 + $0x178] sm:$0xff]  }
  0x27   : > { %2335 = vmatpush3.bf16.msra.mxu0 %v2426_v1  ;;  %2377 = vmatpush3.bf16.msra.mxu1 %v2426_v1  ;;  %v2486_v1 = vld [vmem:[%s2552_s27 + $0x160] sm:$0xff]   ;;  %v2493_v8 = vld [vmem:[%s2552_s27 + $0x1f8] sm:$0xff]  }
  0x28   : > { %2336 = vmatprep.subr.bf16.mxu0 %v2427_v2  ;;  %2378 = vmatprep.subr.bf16.mxu1 %v2427_v2 }
  0x2a   : > { %2263 = vmatmul.mubr.msk.bf16.gmra.mrb[4].mxu0 %vm323_vm2, %v2436_v15  ;;  %2305 = vmatmul.mubr.msk.bf16.gmra.mrb[4].mxu1 %vm323_vm2, %v2437_v16 }
  0x2b   : > { %2266 = vmatprep.mubr.msk.bf16.mxu0 %vm323_vm2, %v2438_v17  ;;  %2308 = vmatprep.mubr.msk.bf16.mxu1 %vm323_vm2, %v2439_v18 }
  0x2c   : > { %2337 = vmatpush3.bf16.msra.mxu0 %v2427_v2  ;;  %2379 = vmatpush3.bf16.msra.mxu1 %v2427_v2  ;;  %v2487_v2 = vld [vmem:[%s2552_s27 + $0x1e0] sm:$0xff]  }
  0x2d   : > { %2338 = vmatprep.subr.bf16.mxu0 %v2428_v5  ;;  %2380 = vmatprep.subr.bf16.mxu1 %v2428_v5 }
  0x30   : > { %2339 = vmatpush3.bf16.msra.mxu0 %v2428_v5  ;;  %2381 = vmatpush3.bf16.msra.mxu1 %v2428_v5  ;;  %v2490_v5 = vld [vmem:[%s2552_s27 + $0x170] sm:$0xff]  }
  0x31   : > { %2340 = vmatprep.subr.bf16.mxu0 %v377_v9  ;;  %2382 = vmatprep.subr.bf16.mxu1 %v377_v9 }
  0x32   : > { %2267 = vmatmul.mubr.msk.bf16.gmra.mrb[8].mxu0 %vm323_vm2, %v2440_v19  ;;  %2309 = vmatmul.mubr.msk.bf16.gmra.mrb[8].mxu1 %vm323_vm2, %v2441_v20 }
  0x33   : > { %2270 = vmatprep.mubr.msk.bf16.mxu0 %vm323_vm2, %v2442_v21  ;;  %2312 = vmatprep.mubr.msk.bf16.mxu1 %vm323_vm2, %v2443_v22 }
  0x34   : > { %2341 = vmatpush3.bf16.msra.mxu0 %v377_v9  ;;  %2383 = vmatpush3.bf16.msra.mxu1 %v377_v9 }
  0x3a   : > { %2271 = vmatmul.mubr.msk.bf16.gmra.mrb[12].mxu0 %vm323_vm2, %v2444_v23  ;;  %2313 = vmatmul.mubr.msk.bf16.gmra.mrb[12].mxu1 %vm323_vm2, %v2445_v24 }
  0x3b   : > { %2274 = vmatprep.mubr.msk.bf16.mxu0 %vm323_vm2, %v2446_v25  ;;  %2316 = vmatprep.mubr.msk.bf16.mxu1 %vm323_vm2, %v2447_v26 }
  0x42   : > { %2275 = vmatmul.mubr.msk.bf16.gmra.mrb[16].mxu0 %vm323_vm2, %v2448_v27  ;;  %2317 = vmatmul.mubr.msk.bf16.gmra.mrb[16].mxu1 %vm323_vm2, %v2449_v28 }
  0x43   : > { %2278 = vmatprep.mubr.msk.bf16.mxu0 %vm323_vm2, %v2450_v29  ;;  %2320 = vmatprep.mubr.msk.bf16.mxu1 %vm323_vm2, %v2451_v30 }
  0x4a   : > { %2279 = vmatmul.mubr.msk.bf16.gmra.mrb[20].mxu0 %vm323_vm2, %v2452_v31  ;;  %2321 = vmatmul.mubr.msk.bf16.gmra.mrb[20].mxu1 %vm323_vm2, %v2453_v32 }
  0x4b   : > { %2282 = vmatprep.mubr.msk.bf16.mxu0 %vm323_vm2, %v2454_v33  ;;  %2324 = vmatprep.mubr.msk.bf16.mxu1 %vm323_vm2, %v2455_v34 }
  0x52   : > { %2283 = vmatmul.mubr.msk.bf16.gmra.mrb[24].mxu0 %vm323_vm2, %v2456_v35  ;;  %2325 = vmatmul.mubr.msk.bf16.gmra.mrb[24].mxu1 %vm323_vm2, %v2457_v36 }
  0x53   : > { %2286 = vmatprep.mubr.msk.bf16.mxu0 %vm323_vm2, %v2458_v37  ;;  %2328 = vmatprep.mubr.msk.bf16.mxu1 %vm323_vm2, %v2459_v38 }
  0x5a   : > { %2287 = vmatmul.mubr.msk.bf16.gmra.mrb[28].mxu0 %vm323_vm2, %v2460_v39  ;;  %2329 = vmatmul.mubr.msk.bf16.gmra.mrb[28].mxu1 %vm323_vm2, %v2461_v40 }
  0x5b   : > { %2342 = vmatprep.mubr.msk.bf16.mxu0 %vm323_vm2, %v2462_v41  ;;  %2384 = vmatprep.mubr.msk.bf16.mxu1 %vm323_vm2, %v2463_v42 }
  0x62   : > { %2343 = vmatmul.mubr.msk.bf16.vlgmr.msra.gmra.mrb[32].mxu0 %vm323_vm2, %v2464_v43  ;;  %2385 = vmatmul.mubr.msk.bf16.vlgmr.msra.gmra.mrb[32].mxu1 %vm323_vm2, %v2465_v44 }
  0x63   : > { %2346 = vmatprep.mubr.msk.bf16.mxu0 %vm323_vm2, %v2466_v45  ;;  %2388 = vmatprep.mubr.msk.bf16.mxu1 %vm323_vm2, %v2467_v46 }
  0x6a   : > { %2347 = vmatmul.mubr.msk.bf16.gmra.mrb[36].mxu0 %vm323_vm2, %v2468_v47  ;;  %2389 = vmatmul.mubr.msk.bf16.gmra.mrb[36].mxu1 %vm323_vm2, %v2469_v48 }
  0x6b   : > { %2350 = vmatprep.mubr.msk.bf16.mxu0 %vm323_vm2, %v2470_v49  ;;  %2392 = vmatprep.mubr.msk.bf16.mxu1 %vm323_vm2, %v2471_v50 }
  0x72   : > { %2351 = vmatmul.mubr.msk.bf16.gmra.mrb[40].mxu0 %vm323_vm2, %v2472_v51  ;;  %2393 = vmatmul.mubr.msk.bf16.gmra.mrb[40].mxu1 %vm323_vm2, %v2473_v52 }
  0x73   : > { %2354 = vmatprep.mubr.msk.bf16.mxu0 %vm323_vm2, %v2474_v53  ;;  %2396 = vmatprep.mubr.msk.bf16.mxu1 %vm323_vm2, %v2475_v54 }
  0x7a   : > { %2355 = vmatmul.mubr.msk.bf16.gmra.mrb[44].mxu0 %vm323_vm2, %v2476_v55  ;;  %2397 = vmatmul.mubr.msk.bf16.gmra.mrb[44].mxu1 %vm323_vm2, %v2477_v56 }
  0x7b   : > { %2358 = vmatprep.mubr.msk.bf16.mxu0 %vm323_vm2, %v2478_v57  ;;  %2400 = vmatprep.mubr.msk.bf16.mxu1 %vm323_vm2, %v2479_v58 }
  0x82   : > { %2359 = vmatmul.mubr.msk.bf16.gmra.mrb[48].mxu0 %vm323_vm2, %v2480_v59  ;;  %2401 = vmatmul.mubr.msk.bf16.gmra.mrb[48].mxu1 %vm323_vm2, %v2481_v60 }
  0x83   : > { %2362 = vmatprep.mubr.msk.bf16.mxu0 %vm323_vm2, %v2482_v61  ;;  %2404 = vmatprep.mubr.msk.bf16.mxu1 %vm323_vm2, %v2483_v62 }
  0x8a   : > { %2363 = vmatmul.mubr.msk.bf16.gmra.mrb[52].mxu0 %vm323_vm2, %v2484_v63  ;;  %2405 = vmatmul.mubr.msk.bf16.gmra.mrb[52].mxu1 %vm323_vm2, %v2485_v0 }
  0x8b   : > { %2366 = vmatprep.mubr.msk.bf16.mxu0 %vm323_vm2, %v2486_v1  ;;  %2408 = vmatprep.mubr.msk.bf16.mxu1 %vm323_vm2, %v2487_v2 }
  0x92   : > { %2367 = vmatmul.mubr.msk.bf16.gmra.mrb[56].mxu0 %vm323_vm2, %v2488_v3  ;;  %2409 = vmatmul.mubr.msk.bf16.gmra.mrb[56].mxu1 %vm323_vm2, %v2489_v4 }
  0x93   : > { %2370 = vmatprep.mubr.msk.bf16.mxu0 %vm323_vm2, %v2490_v5  ;;  %2412 = vmatprep.mubr.msk.bf16.mxu1 %vm323_vm2, %v2491_v6 }
  0x9a   : > { %2371 = vmatmul.mubr.msk.bf16.gmra.mrb[60].mxu0 %vm323_vm2, %v2492_v7  ;;  %2413 = vmatmul.mubr.msk.bf16.gmra.mrb[60].mxu1 %vm323_vm2, %v2493_v8 }
  0xf5   : > { %v2682_v9 = vpop.f32.mrb[0].mxu0  ;;  %v2684_v10 = vpop.f32.mrb[0].mxu1 }
  0xf6   : > { %v2688_v12 = vpop.f32.mrb[1].mxu0  ;;  %v2690_v13 = vpop.f32.mrb[1].mxu1  ;;  %v3118_v7 = vmax.f32 %v2682_v9, %v2684_v10 }
  0xf7   : > { %v2694_v15 = vpop.f32.mrb[2].mxu0  ;;  %v2696_v16 = vpop.f32.mrb[2].mxu1  ;;  %v3119_v1 = vmax.f32 %v2688_v12, %v2690_v13 }
  0xf8   : > { %v2700_v18 = vpop.f32.mrb[3].mxu0  ;;  %v2702_v19 = vpop.f32.mrb[3].mxu1 }
  0xfd   : > { %v2706_v21 = vpop.f32.mrb[4].mxu0  ;;  %v2708_v22 = vpop.f32.mrb[4].mxu1 }
  0xfe   : > { %v2712_v24 = vpop.f32.mrb[5].mxu0  ;;  %v2714_v25 = vpop.f32.mrb[5].mxu1 }
  0xff   : > { %v2718_v27 = vpop.f32.mrb[6].mxu0  ;;  %v2720_v28 = vpop.f32.mrb[6].mxu1 }
 0x100   : > { %v2724_v30 = vpop.f32.mrb[7].mxu0  ;;  %v2726_v31 = vpop.f32.mrb[7].mxu1 }
 0x105   : > { %v2730_v33 = vpop.f32.mrb[8].mxu0  ;;  %v2732_v34 = vpop.f32.mrb[8].mxu1 }
 0x106   : > { %v2736_v36 = vpop.f32.mrb[9].mxu0  ;;  %v2738_v37 = vpop.f32.mrb[9].mxu1 }
 0x107   : > { %v2742_v39 = vpop.f32.mrb[10].mxu0  ;;  %v2744_v40 = vpop.f32.mrb[10].mxu1 }
 0x108   : > { %v2748_v42 = vpop.f32.mrb[11].mxu0  ;;  %v2750_v43 = vpop.f32.mrb[11].mxu1 }
 0x10d   : > { %v2754_v45 = vpop.f32.mrb[12].mxu0  ;;  %v2756_v46 = vpop.f32.mrb[12].mxu1 }
 0x10e   : > { %v2760_v48 = vpop.f32.mrb[13].mxu0  ;;  %v2762_v49 = vpop.f32.mrb[13].mxu1 }
 0x10f   : > { %v2766_v51 = vpop.f32.mrb[14].mxu0  ;;  %v2768_v52 = vpop.f32.mrb[14].mxu1 }
 0x110   : > { %v2772_v54 = vpop.f32.mrb[15].mxu0  ;;  %v2774_v55 = vpop.f32.mrb[15].mxu1 }
 0x115   : > { %v2778_v57 = vpop.f32.mrb[16].mxu0  ;;  %v2780_v58 = vpop.f32.mrb[16].mxu1 }
 0x116   : > { %v2784_v60 = vpop.f32.mrb[17].mxu0  ;;  %v2786_v61 = vpop.f32.mrb[17].mxu1 }
 0x117   : > { %v2790_v63 = vpop.f32.mrb[18].mxu0  ;;  %v2792_v0 = vpop.f32.mrb[18].mxu1 }
 0x118   : > { %v2796_v2 = vpop.f32.mrb[19].mxu0  ;;  %v2798_v3 = vpop.f32.mrb[19].mxu1 }
 0x11d   : > { %v2802_v5 = vpop.f32.mrb[20].mxu0  ;;  %v2804_v6 = vpop.f32.mrb[20].mxu1 }
 0x11e   : > { %v2808_v8 = vpop.f32.mrb[21].mxu0  ;;  %v2810_v62 = vpop.f32.mrb[21].mxu1 }
 0x11f   : > { %v2814_v59 = vpop.f32.mrb[22].mxu0  ;;  %v2816_v56 = vpop.f32.mrb[22].mxu1 }
 0x120   : > { %v2820_v53 = vpop.f32.mrb[23].mxu0  ;;  %v2822_v50 = vpop.f32.mrb[23].mxu1 }
 0x121   : > { %3101 = vst [vmem:[#allocation2_spill] sm:$0xff] %v2822_v50 }
 0x125   : > { %v2826_v47 = vpop.f32.mrb[24].mxu0  ;;  %v2828_v44 = vpop.f32.mrb[24].mxu1 }
 0x126   : > { %3102 = vst [vmem:[#allocation3_spill] sm:$0xff] %v2826_v47  ;;  %3103 = vst [vmem:[#allocation4_spill] sm:$0xff] %v2828_v44  ;;  %v2832_v41 = vpop.f32.mrb[25].mxu0  ;;  %v2834_v38 = vpop.f32.mrb[25].mxu1 }
 0x127   : > { %3104 = vst [vmem:[#allocation5_spill] sm:$0xff] %v2832_v41  ;;  %3105 = vst [vmem:[#allocation6_spill] sm:$0xff] %v2834_v38  ;;  %v2838_v35 = vpop.f32.mrb[26].mxu0  ;;  %v2840_v32 = vpop.f32.mrb[26].mxu1  ;;  %v2880_v38 = vld [vmem:[%s3082_s2] ss:$0 sm:$0xff] }
 0x128   : > { %3106 = vst [vmem:[#allocation7_spill] sm:$0xff] %v2838_v35  ;;  %3107 = vst [vmem:[#allocation8_spill] sm:$0xff] %v2840_v32  ;;  %v2844_v29 = vpop.f32.mrb[27].mxu0  ;;  %v2846_v26 = vpop.f32.mrb[27].mxu1 }
 0x129   : > { %3108 = vst [vmem:[#allocation9_spill] sm:$0xff] %v2844_v29  ;;  %3109 = vst [vmem:[#allocation10_spill] sm:$0xff] %v2846_v26 }
 0x12d   : > { %v2850_v23 = vpop.f32.mrb[28].mxu0  ;;  %v2852_v20 = vpop.f32.mrb[28].mxu1 }
 0x12e   : > { %3110 = vst [vmem:[#allocation11_spill] sm:$0xff] %v2850_v23  ;;  %3111 = vst [vmem:[#allocation12_spill] sm:$0xff] %v2852_v20  ;;  %v2856_v17 = vpop.f32.mrb[29].mxu0  ;;  %v2858_v14 = vpop.f32.mrb[29].mxu1 }
 0x12f   : > { %3112 = vst [vmem:[#allocation13_spill] sm:$0xff] %v2856_v17  ;;  %3113 = vst [vmem:[#allocation14_spill] sm:$0xff] %v2858_v14  ;;  %v2862_v11 = vpop.f32.mrb[30].mxu0  ;;  %v2864_v32 = vpop.f32.mrb[30].mxu1 }
 0x130   : > { %3114 = vst [vmem:[#allocation15_spill] sm:$0xff] %v2862_v11  ;;  %3115 = vst [vmem:[#allocation16_spill] sm:$0xff] %v2864_v32  ;;  %v2868_v26 = vpop.f32.mrb[31].mxu0  ;;  %v2870_v29 = vpop.f32.mrb[31].mxu1 }
 0x131   : > { %3116 = vst [vmem:[#allocation17_spill] sm:$0xff] %v2868_v26  ;;  %3117 = vst [vmem:[#allocation18_spill] sm:$0xff] %v2870_v29  ;;  %v3120_v29 = vmax.f32 %v2694_v15, %v2696_v16  ;;  %v3121_v26 = vmax.f32 %v2700_v18, %v2702_v19 }
 0x135   : > { %v2344_v20 = vpop.f32.mrb[32].mxu0  ;;  %v2386_v23 = vpop.f32.mrb[32].mxu1 }
 0x136   : > { %v1218_v14 = vmax.f32 %v3118_v7, %v2344_v20  ;;  %v1089_v17 = vpop.f32.mrb[33].mxu0  ;;  %v1443_v35 = vpop.f32.mrb[33].mxu1 }
 0x137   : > { %v1216_v32 = vmax.f32 %v3119_v1, %v1089_v17  ;;  %v2345_v11 = vpop.f32.mrb[34].mxu0  ;;  %v2387_v41 = vpop.f32.mrb[34].mxu1 }
 0x138   : > { %v1572_v4 = vmax.f32 %v1218_v14, %v2386_v23  ;;  %v1219_v9 = vmax.f32 %v3120_v29, %v2345_v11  ;;  %v1092_v10 = vpop.f32.mrb[35].mxu0  ;;  %v1446_v20 = vpop.f32.mrb[35].mxu1  ;;  %v3122_v23 = vmax.f32 %v2706_v21, %v2708_v22 }
 0x139   : > { %v1570_v7 = vmax.f32 %v1216_v32, %v1443_v35  ;;  %v1217_v44 = vmax.f32 %v3121_v26, %v1092_v10 }
 0x13a   : > { %v1611_v47 = vadd.f32 %v2880_v38, %v1572_v4  ;;  %v1573_v50 = vmax.f32 %v1219_v9, %v2387_v41  ;;  %v3123_v41 = vmax.f32 %v2712_v24, %v2714_v25  ;;  %v3124_v4 = vmax.f32 %v2718_v27, %v2720_v28 }
 0x13b   : > { %v1609_v11 = vadd.f32 %v2880_v38, %v1570_v7  ;;  %v1571_v12 = vmax.f32 %v1217_v44, %v1446_v20  ;;  %v3125_v20 = vmax.f32 %v2724_v30, %v2726_v31  ;;  %v3126_v31 = vmax.f32 %v2730_v33, %v2732_v34 }
 0x13c   : > { %v2134_v13 = vpack.c.bf16 %v1611_v47, %v1611_v47  ;;  %v1612_v14 = vadd.f32 %v2880_v38, %v1573_v50 }
 0x13d   : > { %v2132_v15 = vpack.c.bf16 %v1609_v11, %v1609_v11  ;;  %v1610_v16 = vadd.f32 %v2880_v38, %v1571_v12  ;;  %v2348_v17 = vpop.f32.mrb[36].mxu0  ;;  %v2390_v18 = vpop.f32.mrb[36].mxu1 }
 0x13e   : > { %1772 = vst.msk [vmem:[%s2896_s6 + $0x8] sm:$0xf] %vm1769_vm3, %v2134_v13  ;;  %v2135_v19 = vpack.c.bf16 %v1612_v14, %v1612_v14  ;;  %v1222_v26 = vmax.f32 %v3122_v23, %v2348_v17  ;;  %v1105_v29 = vpop.f32.mrb[37].mxu0  ;;  %v1459_v32 = vpop.f32.mrb[37].mxu1 }
 0x13f   : > { %1770 = vst.msk [vmem:[%s2896_s6] sm:$0xf] %vm1769_vm3, %v2132_v15  ;;  %v2133_v35 = vpack.c.bf16 %v1610_v16, %v1610_v16  ;;  %v1220_v44 = vmax.f32 %v3123_v41, %v1105_v29  ;;  %v2349_v47 = vpop.f32.mrb[38].mxu0  ;;  %v2391_v50 = vpop.f32.mrb[38].mxu1 }
 0x140   : > { %1773 = vst.msk [vmem:[%s2896_s6 + $0xc] sm:$0xf] %vm1769_vm3, %v2135_v19  ;;  %v1576_v1 = vmax.f32 %v1222_v26, %v2390_v18  ;;  %v1223_v9 = vmax.f32 %v3124_v4, %v2349_v47  ;;  %v1108_v21 = vpop.f32.mrb[39].mxu0  ;;  %v1462_v22 = vpop.f32.mrb[39].mxu1  ;;  %v3127_v26 = vmax.f32 %v2736_v36, %v2738_v37 }
 0x141   : > { %1771 = vst.msk [vmem:[%s2896_s6 + $0x4] sm:$0xf] %vm1769_vm3, %v2133_v35  ;;  %v1574_v10 = vmax.f32 %v1220_v44, %v1459_v32  ;;  %v1221_v24 = vmax.f32 %v3125_v20, %v1108_v21  ;;  %v3128_v44 = vmax.f32 %v2742_v39, %v2744_v40 }
 0x142   : > { %v1615_v25 = vadd.f32 %v2880_v38, %v1576_v1  ;;  %v1577_v7 = vmax.f32 %v1223_v9, %v2391_v50  ;;  %v3129_v1 = vmax.f32 %v2748_v42, %v2750_v43  ;;  %v3130_v43 = vmax.f32 %v2754_v45, %v2756_v46 }
 0x143   : > { %v1613_v11 = vadd.f32 %v2880_v38, %v1574_v10  ;;  %v1575_v12 = vmax.f32 %v1221_v24, %v1462_v22 }
 0x144   : > { %v2138_v13 = vpack.c.bf16 %v1615_v25, %v1615_v25  ;;  %v1616_v27 = vadd.f32 %v2880_v38, %v1577_v7 }
 0x145   : > { %v2136_v28 = vpack.c.bf16 %v1613_v11, %v1613_v11  ;;  %v1614_v14 = vadd.f32 %v2880_v38, %v1575_v12  ;;  %v2352_v15 = vpop.f32.mrb[40].mxu0  ;;  %v2394_v16 = vpop.f32.mrb[40].mxu1 }
 0x146   : > { %1776 = vst.msk [vmem:[%s2896_s6 + $0x18] sm:$0xf] %vm1769_vm3, %v2138_v13  ;;  %v2139_v30 = vpack.c.bf16 %v1616_v27, %v1616_v27  ;;  %v1226_v17 = vmax.f32 %v3126_v31, %v2352_v15  ;;  %v1121_v18 = vpop.f32.mrb[41].mxu0  ;;  %v1475_v19 = vpop.f32.mrb[41].mxu1  ;;  %v3131_v13 = vmax.f32 %v2760_v48, %v2762_v49 }
 0x147   : > { %1774 = vst.msk [vmem:[%s2896_s6 + $0x10] sm:$0xf] %vm1769_vm3, %v2136_v28  ;;  %v2137_v23 = vpack.c.bf16 %v1614_v14, %v1614_v14  ;;  %v1224_v29 = vmax.f32 %v3127_v26, %v1121_v18  ;;  %v2353_v32 = vpop.f32.mrb[42].mxu0  ;;  %v2395_v35 = vpop.f32.mrb[42].mxu1 }
 0x148   : > { %1777 = vst.msk [vmem:[%s2896_s6 + $0x1c] sm:$0xf] %vm1769_vm3, %v2139_v30  ;;  %v1580_v41 = vmax.f32 %v1226_v17, %v2394_v16  ;;  %v1227_v47 = vmax.f32 %v3128_v44, %v2353_v32  ;;  %v1124_v33 = vpop.f32.mrb[43].mxu0  ;;  %v1478_v34 = vpop.f32.mrb[43].mxu1  ;;  %v3132_v16 = vmax.f32 %v2766_v51, %v2768_v52  ;;  %v3133_v17 = vmax.f32 %v2772_v54, %v2774_v55 }
 0x149   : > { %1775 = vst.msk [vmem:[%s2896_s6 + $0x14] sm:$0xf] %vm1769_vm3, %v2137_v23  ;;  %v1578_v50 = vmax.f32 %v1224_v29, %v1475_v19  ;;  %v1225_v36 = vmax.f32 %v3129_v1, %v1124_v33  ;;  %v3134_v55 = vmax.f32 %v2778_v57, %v2780_v58 }
 0x14a   : > { %v1619_v37 = vadd.f32 %v2880_v38, %v1580_v41  ;;  %v1581_v4 = vmax.f32 %v1227_v47, %v2395_v35 }
 0x14b   : > { %v1617_v9 = vadd.f32 %v2880_v38, %v1578_v50  ;;  %v1579_v21 = vmax.f32 %v1225_v36, %v1478_v34  ;;  %v3135_v34 = vmax.f32 %v2784_v60, %v2786_v61 }
 0x14c   : > { %v2142_v22 = vpack.c.bf16 %v1619_v37, %v1619_v37  ;;  %v1620_v39 = vadd.f32 %v2880_v38, %v1581_v4  ;;  %v3136_v4 = vmax.f32 %v2790_v63, %v2792_v0 }
 0x14d   : > { %v2140_v40 = vpack.c.bf16 %v1617_v9, %v1617_v9  ;;  %v1618_v10 = vadd.f32 %v2880_v38, %v1579_v21  ;;  %v2356_v20 = vpop.f32.mrb[44].mxu0  ;;  %v2398_v24 = vpop.f32.mrb[44].mxu1 }
 0x14e   : > { %1780 = vst.msk [vmem:[%s2896_s6 + $0x28] sm:$0xf] %vm1769_vm3, %v2142_v22  ;;  %v2143_v42 = vpack.c.bf16 %v1620_v39, %v1620_v39  ;;  %v1230_v25 = vmax.f32 %v3130_v43, %v2356_v20  ;;  %v1137_v7 = vpop.f32.mrb[45].mxu0  ;;  %v1491_v11 = vpop.f32.mrb[45].mxu1  ;;  %v3137_v22 = vmax.f32 %v2796_v2, %v2798_v3  ;;  %v3138_v3 = vmax.f32 %v2802_v5, %v2804_v6 }
 0x14f   : > { %1778 = vst.msk [vmem:[%s2896_s6 + $0x20] sm:$0xf] %vm1769_vm3, %v2140_v40  ;;  %v2141_v12 = vpack.c.bf16 %v1618_v10, %v1618_v10  ;;  %v1228_v27 = vmax.f32 %v3131_v13, %v1137_v7  ;;  %v2357_v28 = vpop.f32.mrb[46].mxu0  ;;  %v2399_v14 = vpop.f32.mrb[46].mxu1  ;;  %v3139_v13 = vmax.f32 %v2808_v8, %v2810_v62 }
 0x150   : > { %1781 = vst.msk [vmem:[%s2896_s6 + $0x2c] sm:$0xf] %vm1769_vm3, %v2143_v42  ;;  %v1584_v15 = vmax.f32 %v1230_v25, %v2398_v24  ;;  %v1231_v30 = vmax.f32 %v3132_v16, %v2357_v28  ;;  %v1140_v45 = vpop.f32.mrb[47].mxu0  ;;  %v1494_v46 = vpop.f32.mrb[47].mxu1  ;;  %v3140_v16 = vmax.f32 %v2814_v59, %v2816_v56 }
 0x151   : > { %1779 = vst.msk [vmem:[%s2896_s6 + $0x24] sm:$0xf] %vm1769_vm3, %v2141_v12  ;;  %v1582_v31 = vmax.f32 %v1228_v27, %v1491_v11  ;;  %v1229_v48 = vmax.f32 %v3133_v17, %v1140_v45 }
 0x152   : > { %v1623_v49 = vadd.f32 %v2880_v38, %v1584_v15  ;;  %v1585_v18 = vmax.f32 %v1231_v30, %v2399_v14 }
 0x153   : > { %v1621_v19 = vadd.f32 %v2880_v38, %v1582_v31  ;;  %v1583_v23 = vmax.f32 %v1229_v48, %v1494_v46  ;;  %v3141_v46 = vld [vmem:[#allocation2_spill] sm:$0xff] }
 0x154   : > { %v2146_v26 = vpack.c.bf16 %v1623_v49, %v1623_v49  ;;  %v1624_v51 = vadd.f32 %v2880_v38, %v1585_v18  ;;  %v3142_v31 = vmax.f32 %v2820_v53, %v3141_v46 }
 0x155   : > { %v2144_v52 = vpack.c.bf16 %v1621_v19, %v1621_v19  ;;  %v1622_v29 = vadd.f32 %v2880_v38, %v1583_v23  ;;  %v2360_v32 = vpop.f32.mrb[48].mxu0  ;;  %v2402_v35 = vpop.f32.mrb[48].mxu1 }
 0x156   : > { %1784 = vst.msk [vmem:[%s2896_s6 + $0x38] sm:$0xf] %vm1769_vm3, %v2146_v26  ;;  %v2147_v54 = vpack.c.bf16 %v1624_v51, %v1624_v51  ;;  %v1234_v41 = vmax.f32 %v3134_v55, %v2360_v32  ;;  %v1153_v44 = vpop.f32.mrb[49].mxu0  ;;  %v1507_v47 = vpop.f32.mrb[49].mxu1  ;;  %v3143_v51 = vld [vmem:[#allocation3_spill] sm:$0xff] }
 0x157   : > { %1782 = vst.msk [vmem:[%s2896_s6 + $0x30] sm:$0xf] %vm1769_vm3, %v2144_v52  ;;  %v2145_v33 = vpack.c.bf16 %v1622_v29, %v1622_v29  ;;  %v1232_v50 = vmax.f32 %v3135_v34, %v1153_v44  ;;  %v2361_v1 = vpop.f32.mrb[50].mxu0  ;;  %v2403_v36 = vpop.f32.mrb[50].mxu1  ;;  %v3144_v52 = vld [vmem:[#allocation4_spill] sm:$0xff]  ;;  %v3147_v44 = vld [vmem:[#allocation6_spill] sm:$0xff] }
 0x158   : > { %1785 = vst.msk [vmem:[%s2896_s6 + $0x3c] sm:$0xf] %vm1769_vm3, %v2147_v54  ;;  %v1588_v37 = vmax.f32 %v1234_v41, %v2402_v35  ;;  %v1235_v9 = vmax.f32 %v3136_v4, %v2361_v1  ;;  %v1156_v57 = vpop.f32.mrb[51].mxu0  ;;  %v1510_v58 = vpop.f32.mrb[51].mxu1  ;;  %v3145_v29 = vmax.f32 %v3143_v51, %v3144_v52  ;;  %v3146_v41 = vld [vmem:[#allocation5_spill] sm:$0xff] }
 0x159   : > { %1783 = vst.msk [vmem:[%s2896_s6 + $0x34] sm:$0xf] %vm1769_vm3, %v2145_v33  ;;  %v1586_v21 = vmax.f32 %v1232_v50, %v1507_v47  ;;  %v1233_v60 = vmax.f32 %v3137_v22, %v1156_v57  ;;  %v3148_v47 = vmax.f32 %v3146_v41, %v3147_v44  ;;  %v3152_v22 = vld [vmem:[#allocation9_spill] sm:$0xff] }
 0x15a   : > { %v1627_v61 = vadd.f32 %v2880_v38, %v1588_v37  ;;  %v1589_v39 = vmax.f32 %v1235_v9, %v2403_v36  ;;  %v3149_v36 = vld [vmem:[#allocation7_spill] sm:$0xff]  ;;  %v3150_v37 = vld [vmem:[#allocation8_spill] sm:$0xff] }
 0x15b   : > { %v1625_v40 = vadd.f32 %v2880_v38, %v1586_v21  ;;  %v1587_v10 = vmax.f32 %v1233_v60, %v1510_v58  ;;  %v3151_v4 = vmax.f32 %v3149_v36, %v3150_v37  ;;  %v3153_v60 = vld [vmem:[#allocation10_spill] sm:$0xff] }
 0x15c   : > { %v2150_v20 = vpack.c.bf16 %v1627_v61, %v1627_v61  ;;  %v1628_v63 = vadd.f32 %v2880_v38, %v1589_v39  ;;  %v3154_v61 = vmax.f32 %v3152_v22, %v3153_v60 }
 0x15d   : > { %v2148_v0 = vpack.c.bf16 %v1625_v40, %v1625_v40  ;;  %v1626_v24 = vadd.f32 %v2880_v38, %v1587_v10  ;;  %v2364_v42 = vpop.f32.mrb[52].mxu0  ;;  %v2406_v43 = vpop.f32.mrb[52].mxu1 }
 0x15e   : > { %1788 = vst.msk [vmem:[%s2896_s6 + $0x48] sm:$0xf] %vm1769_vm3, %v2150_v20  ;;  %v2151_v2 = vpack.c.bf16 %v1628_v63, %v1628_v63  ;;  %v1238_v25 = vmax.f32 %v3138_v3, %v2364_v42  ;;  %v1169_v7 = vpop.f32.mrb[53].mxu0  ;;  %v1523_v11 = vpop.f32.mrb[53].mxu1 }
 0x15f   : > { %1786 = vst.msk [vmem:[%s2896_s6 + $0x40] sm:$0xf] %vm1769_vm3, %v2148_v0  ;;  %v2149_v12 = vpack.c.bf16 %v1626_v24, %v1626_v24  ;;  %v1236_v27 = vmax.f32 %v3139_v13, %v1169_v7  ;;  %v2365_v28 = vpop.f32.mrb[54].mxu0  ;;  %v2407_v14 = vpop.f32.mrb[54].mxu1  ;;  %v3155_v7 = vld [vmem:[#allocation11_spill] sm:$0xff] }
 0x160   : > { %1789 = vst.msk [vmem:[%s2896_s6 + $0x4c] sm:$0xf] %vm1769_vm3, %v2151_v2  ;;  %v1592_v15 = vmax.f32 %v1238_v25, %v2406_v43  ;;  %v1239_v30 = vmax.f32 %v3140_v16, %v2365_v28  ;;  %v1172_v5 = vpop.f32.mrb[55].mxu0  ;;  %v1526_v6 = vpop.f32.mrb[55].mxu1  ;;  %v3159_v16 = vld [vmem:[#allocation14_spill] sm:$0xff] }
 0x161   : > { %1787 = vst.msk [vmem:[%s2896_s6 + $0x44] sm:$0xf] %vm1769_vm3, %v2149_v12  ;;  %v1590_v45 = vmax.f32 %v1236_v27, %v1523_v11  ;;  %v1237_v62 = vmax.f32 %v3142_v31, %v1172_v5  ;;  %v3156_v11 = vld [vmem:[#allocation12_spill] sm:$0xff]  ;;  %v3161_v31 = vld [vmem:[#allocation15_spill] sm:$0xff] }
 0x162   : > { %v1631_v8 = vadd.f32 %v2880_v38, %v1592_v15  ;;  %v1593_v17 = vmax.f32 %v1239_v30, %v2407_v14  ;;  %v3157_v12 = vmax.f32 %v3155_v7, %v3156_v11  ;;  %v3158_v15 = vld [vmem:[#allocation13_spill] sm:$0xff] }
 0x163   : > { %v1629_v48 = vadd.f32 %v2880_v38, %v1590_v45  ;;  %v1591_v49 = vmax.f32 %v1237_v62, %v1526_v6  ;;  %v3160_v30 = vmax.f32 %v3158_v15, %v3159_v16  ;;  %v3162_v62 = vld [vmem:[#allocation16_spill] sm:$0xff] }
 0x164   : > { %v2154_v18 = vpack.c.bf16 %v1631_v8, %v1631_v8  ;;  %v1632_v56 = vadd.f32 %v2880_v38, %v1593_v17  ;;  %v3163_v8 = vmax.f32 %v3161_v31, %v3162_v62 }
 0x165   : > { %v2152_v59 = vpack.c.bf16 %v1629_v48, %v1629_v48  ;;  %v1630_v19 = vadd.f32 %v2880_v38, %v1591_v49  ;;  %v2368_v23 = vpop.f32.mrb[56].mxu0  ;;  %v2410_v26 = vpop.f32.mrb[56].mxu1 }
 0x166   : > { %1792 = vst.msk [vmem:[%s2896_s6 + $0x58] sm:$0xf] %vm1769_vm3, %v2154_v18  ;;  %v2155_v53 = vpack.c.bf16 %v1632_v56, %v1632_v56  ;;  %v1242_v32 = vmax.f32 %v3145_v29, %v2368_v23  ;;  %v1185_v35 = vpop.f32.mrb[57].mxu0  ;;  %v1539_v54 = vpop.f32.mrb[57].mxu1  ;;  %v3164_v56 = vld [vmem:[#allocation17_spill] sm:$0xff] }
 0x167   : > { %1790 = vst.msk [vmem:[%s2896_s6 + $0x50] sm:$0xf] %vm1769_vm3, %v2152_v59  ;;  %v2153_v55 = vpack.c.bf16 %v1630_v19, %v1630_v19  ;;  %v1240_v33 = vmax.f32 %v3148_v47, %v1185_v35  ;;  %v2369_v34 = vpop.f32.mrb[58].mxu0  ;;  %v2411_v50 = vpop.f32.mrb[58].mxu1  ;;  %v3165_v59 = vld [vmem:[#allocation18_spill] sm:$0xff] }
 0x168   : > { %1793 = vst.msk [vmem:[%s2896_s6 + $0x5c] sm:$0xf] %vm1769_vm3, %v2155_v53  ;;  %v1596_v1 = vmax.f32 %v1242_v32, %v2410_v26  ;;  %v1243_v9 = vmax.f32 %v3151_v4, %v2369_v34  ;;  %v1188_v57 = vpop.f32.mrb[59].mxu0  ;;  %v1542_v58 = vpop.f32.mrb[59].mxu1  ;;  %v3166_v19 = vmax.f32 %v3164_v56, %v3165_v59 }
 0x169   : > { %1791 = vst.msk [vmem:[%s2896_s6 + $0x54] sm:$0xf] %vm1769_vm3, %v2153_v55  ;;  %v1594_v21 = vmax.f32 %v1240_v33, %v1539_v54  ;;  %v1241_v39 = vmax.f32 %v3154_v61, %v1188_v57 }
 0x16a   : > { %v1635_v40 = vadd.f32 %v2880_v38, %v1596_v1  ;;  %v1597_v10 = vmax.f32 %v1243_v9, %v2411_v50 }
 0x16b   : > { %v1633_v20 = vadd.f32 %v2880_v38, %v1594_v21  ;;  %v1595_v63 = vmax.f32 %v1241_v39, %v1542_v58 }
 0x16c   : > { %v2158_v0 = vpack.c.bf16 %v1635_v40, %v1635_v40  ;;  %v1636_v24 = vadd.f32 %v2880_v38, %v1597_v10 }
 0x16d   : > { %v2156_v42 = vpack.c.bf16 %v1633_v20, %v1633_v20  ;;  %v1634_v43 = vadd.f32 %v2880_v38, %v1595_v63  ;;  %v2372_v2 = vpop.f32.mrb[60].mxu0  ;;  %v2414_v3 = vpop.f32.mrb[60].mxu1 }
 0x16e   : > { %1796 = vst.msk [vmem:[%s2896_s6 + $0x68] sm:$0xf] %vm1769_vm3, %v2158_v0  ;;  %v2159_v25 = vpack.c.bf16 %v1636_v24, %v1636_v24  ;;  %v1246_v13 = vmax.f32 %v3157_v12, %v2372_v2  ;;  %v1201_v27 = vpop.f32.mrb[61].mxu0  ;;  %v1555_v28 = vpop.f32.mrb[61].mxu1 }
 0x16f   : > { %1794 = vst.msk [vmem:[%s2896_s6 + $0x60] sm:$0xf] %vm1769_vm3, %v2156_v42  ;;  %v2157_v14 = vpack.c.bf16 %v1634_v43, %v1634_v43  ;;  %v1244_v5 = vmax.f32 %v3160_v30, %v1201_v27  ;;  %v2373_v6 = vpop.f32.mrb[62].mxu0  ;;  %v2415_v45 = vpop.f32.mrb[62].mxu1 }
 0x170   : > { %1797 = vst.msk [vmem:[%s2896_s6 + $0x6c] sm:$0xf] %vm1769_vm3, %v2159_v25  ;;  %v1600_v46 = vmax.f32 %v1246_v13, %v2414_v3  ;;  %v1247_v17 = vmax.f32 %v3163_v8, %v2373_v6  ;;  %v1204_v48 = vpop.f32.mrb[63].mxu0  ;;  %v1558_v49 = vpop.f32.mrb[63].mxu1 }
 0x171   : > { %1795 = vst.msk [vmem:[%s2896_s6 + $0x64] sm:$0xf] %vm1769_vm3, %v2157_v14  ;;  %v1598_v18 = vmax.f32 %v1244_v5, %v1555_v28  ;;  %v1245_v23 = vmax.f32 %v3166_v19, %v1204_v48 }
 0x172   : > { %v1639_v26 = vadd.f32 %v2880_v38, %v1600_v46  ;;  %v1601_v53 = vmax.f32 %v1247_v17, %v2415_v45 }
 0x173   : > { %v1637_v51 = vadd.f32 %v2880_v38, %v1598_v18  ;;  %v1599_v52 = vmax.f32 %v1245_v23, %v1558_v49 }
 0x174   : > { %v2162_v29 = vpack.c.bf16 %v1639_v26, %v1639_v26  ;;  %v1640_v32 = vadd.f32 %v2880_v38, %v1601_v53 }
 0x175   : > { %v2160_v35 = vpack.c.bf16 %v1637_v51, %v1637_v51  ;;  %v1638_v54 = vadd.f32 %v2880_v38, %v1599_v52 }
 0x176   : > { %1800 = vst.msk [vmem:[%s2896_s6 + $0x78] sm:$0xf] %vm1769_vm3, %v2162_v29  ;;  %v2163_v55 = vpack.c.bf16 %v1640_v32, %v1640_v32 }
 0x177   : > { %1798 = vst.msk [vmem:[%s2896_s6 + $0x70] sm:$0xf] %vm1769_vm3, %v2160_v35  ;;  %v2161_v41 = vpack.c.bf16 %v1638_v54, %v1638_v54 }
 0x178   : > { %1801 = vst.msk [vmem:[%s2896_s6 + $0x7c] sm:$0xf] %vm1769_vm3, %v2163_v55 }
 0x179   : > { %1799 = vst.msk [vmem:[%s2896_s6 + $0x74] sm:$0xf] %vm1769_vm3, %v2161_v41 }
 0x17a PF: > { %s13_s12 = sadd.s32 1, %s2500_s12  }
 0x17b   : > { %p10_p4 = scmp.ge.s32.totalorder %s13_s12, 4  }
 0x17d   :  { %12 = sbr.rel (!%p10_p4) target bundleno = 1 (0x1), region = 65 }

// kernel: tiannet_forward.5
= control target key start
LH: loop header
LB: loop body
LE: loop exit
PB: predicated region body
PF: predicated region fallthrough
CT: control target
= control target key end

     0   :  { %s3212_s12 = smov 0   ;;  %s3864_s0 = inlined_call_operand.vmem [shape: bf16[2,2,160,160], index: 0, kind: input, shape index: {}]   ;;  %s3865_s1 = inlined_call_operand.vmem [shape: bf16[5,160,32], index: 1, kind: input, shape index: {}]   ;;  %s3866_s2 = inlined_call_operand.vmem [shape: f32[1,32], index: 2, kind: input, shape index: {}]   ;;  %s3867_s3 = inlined_call_operand.vmem [shape: bf16[2,8,8,32], index: 3, kind: output, shape index: {}]  }
   0x1 LB: > { %s2435_s13 = sadd.s32 4294967295, %s3189_s12   ;;  %p2439_p0 = scmp.ge.s32.totalorder %s3189_s12, 1  ;;  %s3189_s12 = sphi %s3212_s12, %s13_s12  }
   0x2   : > { %p137_p1 = scmp.lt.s32.totalorder %s3189_s12, 3 }
   0x4   : > { %p138_p2 = pnand %p2439_p0, %p137_p1 }
   0x5   : > { %v3067_v0 = vld [vmem:[%s3865_s1 + $0x50] sm:$0xff] (!%p138_p2)   ;;  %v3191_v1 = vmov (!%p138_p2), 0   ;;  %p161_p3 = scmp.lt.s32.totalorder (!%p138_p2), %s2435_s13, 1  ;;  %v3068_v2 = vld [vmem:[%s3865_s1 + $0x58] sm:$0xff] (!%p138_p2)   ;;  %v3069_v3 = vld [vmem:[%s3865_s1 + $0x60] sm:$0xff] (!%p138_p2)   ;;  %vm378_vm0 = vcmask (!%p138_p2), 261120  }
   0x6   : > { %141 = sbr.rel (%p138_p2) target bundleno = 581 (0x245), region = 32  ;;  %403 = vmatprep.subr.bf16.mxu0 (!%p138_p2), %v3191_v1  ;;  %1671 = vmatprep.subr.bf16.mxu1 (!%p138_p2), %v3191_v1  ;;  %v3070_v4 = vld [vmem:[%s3865_s1 + $0x68] sm:$0xff] (!%p138_p2)   ;;  %v3071_v7 = vld [vmem:[%s3865_s1 + $0x70] sm:$0xff] (!%p138_p2)   ;;  %v3072_v8 = vld [vmem:[%s3865_s1 + $0x78] sm:$0xff] (!%p138_p2)   ;;  %vm2371_vm1 = vcmask (!%p138_p2), 257024  }
   0x7   : > { %404 = vmatpush1.bf16.msra.mxu0 (!%p138_p2), %v3067_v0  ;;  %1672 = vmatpush1.bf16.msra.mxu1 (!%p138_p2), %v3067_v0  ;;  %v3073_v9 = vld [vmem:[%s3865_s1 + $0x80] sm:$0xff] (!%p138_p2)   ;;  %v3074_v10 = vld [vmem:[%s3865_s1 + $0x88] sm:$0xff] (!%p138_p2)   ;;  %v3075_v11 = vld [vmem:[%s3865_s1 + $0x90] sm:$0xff] (!%p138_p2)  }
   0x8   : > { %405 = vmatprep.subr.bf16.mxu0 (!%p138_p2), %v3191_v1  ;;  %1673 = vmatprep.subr.bf16.mxu1 (!%p138_p2), %v3191_v1  ;;  %v3076_v12 = vld [vmem:[%s3865_s1 + $0x98] sm:$0xff] (!%p138_p2)   ;;  %v3083_v15 = vld [vmem:[%s3865_s1] sm:$0xff] (!%p138_p2)   ;;  %v3089_v18 = vld [vmem:[%s3865_s1 + $0x8] sm:$0xff] (!%p138_p2)  }
   0x9   : > { %v3091_v21 = vld [vmem:[%s3865_s1 + $0x10] sm:$0xff] (!%p138_p2)   ;;  %v3098_v24 = vld [vmem:[%s3865_s1 + $0x18] sm:$0xff] (!%p138_p2)   ;;  %v3105_v29 = vld [vmem:[%s3865_s1 + $0x20] sm:$0xff] (!%p138_p2)  }
   0xa   : > { %v3112_v30 = vld [vmem:[%s3865_s1 + $0x28] sm:$0xff] (!%p138_p2)   ;;  %v3118_v35 = vld [vmem:[%s3865_s1 + $0x30] sm:$0xff] (!%p138_p2)   ;;  %v3120_v36 = vld [vmem:[%s3865_s1 + $0x38] sm:$0xff] (!%p138_p2)  }
   0xb   : > { %406 = vmatpush1.bf16.msra.mxu0 (!%p138_p2), %v3068_v2  ;;  %1674 = vmatpush1.bf16.msra.mxu1 (!%p138_p2), %v3068_v2  ;;  %v3127_v41 = vld [vmem:[%s3865_s1 + $0x40] sm:$0xff] (!%p138_p2)   ;;  %v3134_v42 = vld [vmem:[%s3865_s1 + $0x48] sm:$0xff] (!%p138_p2)   ;;  %v3140_v57 = vld [vmem:[%s3865_s1 + $0xb0] sm:$0xff] (!%p138_p2)  }
   0xc   : > { %407 = vmatprep.subr.bf16.mxu0 (!%p138_p2), %v3191_v1  ;;  %1675 = vmatprep.subr.bf16.mxu1 (!%p138_p2), %v3191_v1  ;;  %v3138_v55 = vld [vmem:[%s3865_s1 + $0xa0] sm:$0xff] (!%p138_p2)   ;;  %v3139_v56 = vld [vmem:[%s3865_s1 + $0xa8] sm:$0xff] (!%p138_p2)   ;;  %v3141_v58 = vld [vmem:[%s3865_s1 + $0xb8] sm:$0xff] (!%p138_p2)  }
   0xd   : > { %s3869_s13 = smov (!%p161_p3, %s2435_s13), 1  ;;  %v3142_v59 = vld [vmem:[%s3865_s1 + $0xc0] sm:$0xff]   ;;  %v3143_v60 = vld [vmem:[%s3865_s1 + $0xc8] sm:$0xff]   ;;  %v3144_v61 = vld [vmem:[%s3865_s1 + $0xd0] sm:$0xff]  }
   0xe   : > { %s3057_s18 = smul.u32 320, %s3869_s13  ;;  %v3145_v62 = vld [vmem:[%s3865_s1 + $0xd8] sm:$0xff]   ;;  %v3146_v63 = vld [vmem:[%s3865_s1 + $0xe0] sm:$0xff]   ;;  %v3147_v0 = vld [vmem:[%s3865_s1 + $0xe8] sm:$0xff]  }
   0xf   : > { %408 = vmatpush1.bf16.msra.mxu0 %v3069_v3  ;;  %1676 = vmatpush1.bf16.msra.mxu1 %v3069_v3  ;;  %v3148_v2 = vld [vmem:[%s3865_s1 + $0xf0] sm:$0xff]   ;;  %v3149_v3 = vld [vmem:[%s3865_s1 + $0xf8] sm:$0xff]  }
  0x10   : > { %s3241_s23 = scalar_lea.vmem %s3864_s0, %s3057_s18  ;;  %409 = vmatprep.subr.bf16.mxu0 %v3191_v1  ;;  %1677 = vmatprep.subr.bf16.mxu1 %v3191_v1 }
  0x11   : > { %v3249_v5 = vld [vmem:[%s3241_s23 + $0xa4] ss:$8 sps:$4 sm:$0xff]   ;;  %v3252_v6 = vld [vmem:[%s3241_s23 + $0x14] ss:$8 sps:$4 sm:$0xff]   ;;  %v3289_v13 = vld [vmem:[%s3241_s23 + $0xa0] ss:$8 sps:$4 sm:$0xff]  }
  0x12   : > { %2505 = vmatprep.mubr.msk.bf16.mxu0 %vm378_vm0, %v3249_v5  ;;  %2725 = vmatprep.mubr.msk.bf16.mxu1 %vm378_vm0, %v3252_v6  ;;  %v3292_v14 = vld [vmem:[%s3241_s23 + $0x10] ss:$8 sps:$4 sm:$0xff]   ;;  %v3300_v16 = vld [vmem:[%s3241_s23 + $0xb4] ss:$8 sps:$4 sm:$0xff]   ;;  %v3303_v17 = vld [vmem:[%s3241_s23 + $0x24] ss:$8 sps:$4 sm:$0xff]  }
  0x13   : > { %410 = vmatpush1.bf16.msra.mxu0 %v3070_v4  ;;  %1678 = vmatpush1.bf16.msra.mxu1 %v3070_v4  ;;  %v3314_v19 = vld [vmem:[%s3241_s23 + $0xb0] ss:$8 sps:$4 sm:$0xff]   ;;  %v3320_v20 = vld [vmem:[%s3241_s23 + $0x20] ss:$8 sps:$4 sm:$0xff]   ;;  %v3326_v22 = vld [vmem:[%s3241_s23 + $0xc4] ss:$8 sps:$4 sm:$0xff]  }
  0x14   : > { %411 = vmatprep.subr.bf16.mxu0 %v3191_v1  ;;  %1679 = vmatprep.subr.bf16.mxu1 %v3191_v1  ;;  %v3331_v23 = vld [vmem:[%s3241_s23 + $0x34] ss:$8 sps:$4 sm:$0xff]   ;;  %v3343_v25 = vld [vmem:[%s3241_s23 + $0xc0] ss:$8 sps:$4 sm:$0xff]   ;;  %v3346_v26 = vld [vmem:[%s3241_s23 + $0x30] ss:$8 sps:$4 sm:$0xff]  }
  0x15   : > { %v3351_v27 = vld [vmem:[%s3241_s23 + $0xd4] ss:$8 sps:$4 sm:$0xff]   ;;  %v3354_v28 = vld [vmem:[%s3241_s23 + $0x44] ss:$8 sps:$4 sm:$0xff]   ;;  %v3371_v31 = vld [vmem:[%s3241_s23 + $0xd0] ss:$8 sps:$4 sm:$0xff]  }
  0x16   : > { %v3374_v32 = vld [vmem:[%s3241_s23 + $0x40] ss:$8 sps:$4 sm:$0xff]   ;;  %v3377_v33 = vld [vmem:[%s3241_s23 + $0xe4] ss:$8 sps:$4 sm:$0xff]   ;;  %v3380_v34 = vld [vmem:[%s3241_s23 + $0x54] ss:$8 sps:$4 sm:$0xff]  }
  0x17   : > { %412 = vmatpush1.bf16.msra.mxu0 %v3071_v7  ;;  %1680 = vmatpush1.bf16.msra.mxu1 %v3071_v7  ;;  %v3399_v37 = vld [vmem:[%s3241_s23 + $0xe0] ss:$8 sps:$4 sm:$0xff]   ;;  %v3402_v38 = vld [vmem:[%s3241_s23 + $0x50] ss:$8 sps:$4 sm:$0xff]   ;;  %v3405_v39 = vld [vmem:[%s3241_s23 + $0xf4] ss:$8 sps:$4 sm:$0xff]  }
  0x18   : > { %413 = vmatprep.subr.bf16.mxu0 %v3191_v1  ;;  %1681 = vmatprep.subr.bf16.mxu1 %v3191_v1  ;;  %v3408_v40 = vld [vmem:[%s3241_s23 + $0x64] ss:$8 sps:$4 sm:$0xff]   ;;  %v3429_v43 = vld [vmem:[%s3241_s23 + $0xf0] ss:$8 sps:$4 sm:$0xff]   ;;  %v3432_v44 = vld [vmem:[%s3241_s23 + $0x60] ss:$8 sps:$4 sm:$0xff]  }
  0x19   : > { %v3435_v45 = vld [vmem:[%s3241_s23 + $0x104] ss:$8 sps:$4 sm:$0xff]   ;;  %v3438_v46 = vld [vmem:[%s3241_s23 + $0x74] ss:$8 sps:$4 sm:$0xff]   ;;  %v3449_v47 = vld [vmem:[%s3241_s23 + $0x100] ss:$8 sps:$4 sm:$0xff]  }
  0x1a   : > { %v3452_v48 = vld [vmem:[%s3241_s23 + $0x70] ss:$8 sps:$4 sm:$0xff]   ;;  %v3455_v49 = vld [vmem:[%s3241_s23 + $0x114] ss:$8 sps:$4 sm:$0xff]   ;;  %v3458_v50 = vld [vmem:[%s3241_s23 + $0x84] ss:$8 sps:$4 sm:$0xff]  }
  0x1b   : > { %414 = vmatpush1.bf16.msra.mxu0 %v3072_v8  ;;  %1682 = vmatpush1.bf16.msra.mxu1 %v3072_v8  ;;  %v3467_v51 = vld [vmem:[%s3241_s23 + $0x110] ss:$8 sps:$4 sm:$0xff]   ;;  %v3470_v52 = vld [vmem:[%s3241_s23 + $0x80] ss:$8 sps:$4 sm:$0xff]   ;;  %v3137_v53 = vld [vmem:[%s3241_s23 + $0x4] ss:$8 sps:$4 sm:$0xff]  }
  0x1c   : > { %415 = vmatprep.subr.bf16.mxu0 %v3191_v1  ;;  %1683 = vmatprep.subr.bf16.mxu1 %v3191_v1  ;;  %v3135_v54 = vld [vmem:[%s3241_s23] ss:$8 sps:$4 sm:$0xff]   ;;  %v3153_v7 = vld [vmem:[%s3865_s1 + $0x118] sm:$0xff]  }
  0x1d   : > { %v3150_v4 = vld [vmem:[%s3865_s1 + $0x100] sm:$0xff]  }
  0x1e   : > { %v3154_v8 = vld [vmem:[%s3865_s1 + $0x120] sm:$0xff]  }
  0x1f   : > { %416 = vmatpush1.bf16.msra.mxu0 %v3073_v9  ;;  %1684 = vmatpush1.bf16.msra.mxu1 %v3073_v9  ;;  %v3155_v9 = vld [vmem:[%s3865_s1 + $0x128] sm:$0xff]  }
  0x20   : > { %417 = vmatprep.subr.bf16.mxu0 %v3191_v1  ;;  %1685 = vmatprep.subr.bf16.mxu1 %v3191_v1 }
  0x23   : > { %418 = vmatpush1.bf16.msra.mxu0 %v3074_v10  ;;  %1686 = vmatpush1.bf16.msra.mxu1 %v3074_v10  ;;  %v3156_v10 = vld [vmem:[%s3865_s1 + $0x130] sm:$0xff]  }
  0x24   : > { %419 = vmatprep.subr.bf16.mxu0 %v3191_v1  ;;  %1687 = vmatprep.subr.bf16.mxu1 %v3191_v1 }
  0x27   : > { %420 = vmatpush1.bf16.msra.mxu0 %v3075_v11  ;;  %1688 = vmatpush1.bf16.msra.mxu1 %v3075_v11  ;;  %v3160_v11 = vld [vmem:[%s3865_s1 + $0x138] sm:$0xff]  }
  0x28   : > { %421 = vmatprep.subr.bf16.mxu0 %v3191_v1  ;;  %1689 = vmatprep.subr.bf16.mxu1 %v3191_v1 }
  0x2b   : > { %422 = vmatpush1.bf16.msra.mxu0 %v3076_v12  ;;  %1690 = vmatpush1.bf16.msra.mxu1 %v3076_v12  ;;  %v3663_v12 = vld [vmem:[%s3241_s23 + $0x124] ss:$8 sps:$4 sm:$0xff]  }
  0x2c   : > { %656 = vmatprep.subr.bf16.mxu0 %v3191_v1  ;;  %1768 = vmatprep.subr.bf16.mxu1 %v3191_v1 }
  0x2e   : > { %436 = vmatmul.mubr.bf16.vlgmr.msra.gmra.mrb[0].mxu0 %v3289_v13  ;;  %1704 = vmatmul.mubr.bf16.vlgmr.msra.gmra.mrb[0].mxu1 %v3292_v14 }
  0x2f   : > { %657 = vmatpush1.bf16.msra.mxu0 %v3083_v15  ;;  %1769 = vmatpush1.bf16.msra.mxu1 %v3083_v15  ;;  %v3162_v15 = vld [vmem:[%s3865_s1 + $0x148] sm:$0xff]  }
  0x30   : > { %2506 = vmatprep.mubr.msk.bf16.mxu0 %vm378_vm0, %v3300_v16  ;;  %658 = vmatprep.subr.bf16.mxu0 %v3191_v1 }
  0x31   : > { %2726 = vmatprep.mubr.msk.bf16.mxu1 %vm378_vm0, %v3303_v17  ;;  %1770 = vmatprep.subr.bf16.mxu1 %v3191_v1 }
  0x33   : > { %659 = vmatpush1.bf16.msra.mxu0 %v3089_v18  ;;  %1771 = vmatpush1.bf16.msra.mxu1 %v3089_v18  ;;  %v3164_v18 = vld [vmem:[%s3865_s1 + $0x158] sm:$0xff]  }
  0x34   : > { %660 = vmatprep.subr.bf16.mxu0 %v3191_v1  ;;  %1772 = vmatprep.subr.bf16.mxu1 %v3191_v1 }
  0x36   : > { %444 = vmatmul.mubr.bf16.gmra.mrb[4].mxu0 %v3314_v19  ;;  %1712 = vmatmul.mubr.bf16.gmra.mrb[4].mxu1 %v3320_v20 }
  0x37   : > { %661 = vmatpush1.bf16.msra.mxu0 %v3091_v21  ;;  %1773 = vmatpush1.bf16.msra.mxu1 %v3091_v21  ;;  %v3166_v21 = vld [vmem:[%s3865_s1 + $0x168] sm:$0xff]  }
  0x38   : > { %2507 = vmatprep.mubr.msk.bf16.mxu0 %vm378_vm0, %v3326_v22  ;;  %2727 = vmatprep.mubr.msk.bf16.mxu1 %vm378_vm0, %v3331_v23 }
  0x39   : > { %662 = vmatprep.subr.bf16.mxu0 %v3191_v1  ;;  %1774 = vmatprep.subr.bf16.mxu1 %v3191_v1 }
  0x3b   : > { %663 = vmatpush1.bf16.msra.mxu0 %v3098_v24  ;;  %1775 = vmatpush1.bf16.msra.mxu1 %v3098_v24  ;;  %v3168_v24 = vld [vmem:[%s3865_s1 + $0x178] sm:$0xff]  }
  0x3c   : > { %664 = vmatprep.subr.bf16.mxu0 %v3191_v1  ;;  %1776 = vmatprep.subr.bf16.mxu1 %v3191_v1 }
  0x3e   : > { %452 = vmatmul.mubr.bf16.gmra.mrb[8].mxu0 %v3343_v25  ;;  %1720 = vmatmul.mubr.bf16.gmra.mrb[8].mxu1 %v3346_v26 }
  0x3f   : > { %2508 = vmatprep.mubr.msk.bf16.mxu0 %vm378_vm0, %v3351_v27  ;;  %2728 = vmatprep.mubr.msk.bf16.mxu1 %vm378_vm0, %v3354_v28 }
  0x40   : > { %665 = vmatpush1.bf16.msra.mxu0 %v3105_v29  ;;  %1777 = vmatpush1.bf16.msra.mxu1 %v3105_v29  ;;  %v3170_v29 = vld [vmem:[%s3241_s23 + $0x94] ss:$8 sps:$4 sm:$0xff]  }
  0x41   : > { %666 = vmatprep.subr.bf16.mxu0 %v3191_v1  ;;  %1778 = vmatprep.subr.bf16.mxu1 %v3191_v1 }
  0x44   : > { %667 = vmatpush1.bf16.msra.mxu0 %v3112_v30  ;;  %1779 = vmatpush1.bf16.msra.mxu1 %v3112_v30  ;;  %v3176_v30 = vld [vmem:[%s3241_s23 + $0xc4] ss:$8 sps:$4 sm:$0xff]  }
  0x45   : > { %668 = vmatprep.subr.bf16.mxu0 %v3191_v1  ;;  %1780 = vmatprep.subr.bf16.mxu1 %v3191_v1 }
  0x46   : > { %460 = vmatmul.mubr.bf16.gmra.mrb[12].mxu0 %v3371_v31  ;;  %1728 = vmatmul.mubr.bf16.gmra.mrb[12].mxu1 %v3374_v32 }
  0x47   : > { %2509 = vmatprep.mubr.msk.bf16.mxu0 %vm378_vm0, %v3377_v33  ;;  %2729 = vmatprep.mubr.msk.bf16.mxu1 %vm378_vm0, %v3380_v34 }
  0x48   : > { %669 = vmatpush1.bf16.msra.mxu0 %v3118_v35  ;;  %1781 = vmatpush1.bf16.msra.mxu1 %v3118_v35  ;;  %v3177_v35 = vld [vmem:[%s3241_s23 + $0xd4] ss:$8 sps:$4 sm:$0xff]  }
  0x49   : > { %670 = vmatprep.subr.bf16.mxu0 %v3191_v1  ;;  %1782 = vmatprep.subr.bf16.mxu1 %v3191_v1 }
  0x4c   : > { %671 = vmatpush1.bf16.msra.mxu0 %v3120_v36  ;;  %1783 = vmatpush1.bf16.msra.mxu1 %v3120_v36  ;;  %v3179_v36 = vld [vmem:[%s3241_s23 + $0xd0] ss:$8 sps:$4 sm:$0xff]  }
  0x4d   : > { %672 = vmatprep.subr.bf16.mxu0 %v3191_v1  ;;  %1784 = vmatprep.subr.bf16.mxu1 %v3191_v1 }
  0x4e   : > { %468 = vmatmul.mubr.bf16.gmra.mrb[16].mxu0 %v3399_v37  ;;  %1736 = vmatmul.mubr.bf16.gmra.mrb[16].mxu1 %v3402_v38 }
  0x4f   : > { %2510 = vmatprep.mubr.msk.bf16.mxu0 %vm378_vm0, %v3405_v39  ;;  %2730 = vmatprep.mubr.msk.bf16.mxu1 %vm378_vm0, %v3408_v40 }
  0x50   : > { %673 = vmatpush1.bf16.msra.mxu0 %v3127_v41  ;;  %1785 = vmatpush1.bf16.msra.mxu1 %v3127_v41 }
  0x51   : > { %674 = vmatprep.subr.bf16.mxu0 %v3191_v1  ;;  %1786 = vmatprep.subr.bf16.mxu1 %v3191_v1 }
  0x54   : > { %675 = vmatpush1.bf16.msra.mxu0 %v3134_v42  ;;  %1787 = vmatpush1.bf16.msra.mxu1 %v3134_v42 }
  0x55   : > { %946 = vmatprep.subr.bf16.mxu0 %v3191_v1  ;;  %1865 = vmatprep.subr.bf16.mxu1 %v3191_v1 }
  0x56   : > { %476 = vmatmul.mubr.bf16.gmra.mrb[20].mxu0 %v3429_v43  ;;  %1744 = vmatmul.mubr.bf16.gmra.mrb[20].mxu1 %v3432_v44 }
  0x57   : > { %2511 = vmatprep.mubr.msk.bf16.mxu0 %vm378_vm0, %v3435_v45  ;;  %2731 = vmatprep.mubr.msk.bf16.mxu1 %vm378_vm0, %v3438_v46 }
  0x5e   : > { %484 = vmatmul.mubr.bf16.gmra.mrb[24].mxu0 %v3449_v47  ;;  %1752 = vmatmul.mubr.bf16.gmra.mrb[24].mxu1 %v3452_v48 }
  0x5f   : > { %2512 = vmatprep.mubr.msk.bf16.mxu0 %vm378_vm0, %v3455_v49  ;;  %2732 = vmatprep.mubr.msk.bf16.mxu1 %vm378_vm0, %v3458_v50 }
  0x66   : > { %492 = vmatmul.mubr.bf16.gmra.mrb[28].mxu0 %v3467_v51  ;;  %1760 = vmatmul.mubr.bf16.gmra.mrb[28].mxu1 %v3470_v52 }
  0x67   : > { %2539 = vmatprep.mubr.msk.bf16.mxu0 %vm378_vm0, %v3137_v53  ;;  %2733 = vmatprep.mubr.msk.bf16.mxu1 %vm378_vm0, %v3249_v5  ;;  %v3151_v5 = vld [vmem:[%s3865_s1 + $0x108] sm:$0xff]  }
  0x6e   : > { %689 = vmatmul.mubr.bf16.vlgmr.msra.gmra.mrb[0].mxu0 %v3135_v54  ;;  %1801 = vmatmul.mubr.bf16.vlgmr.msra.gmra.mrb[0].mxu1 %v3289_v13  ;;  %v3672_v13 = vld [vmem:[%s3241_s23 + $0x120] ss:$8 sps:$4 sm:$0xff]  }
  0x6f   : > { %947 = vmatpush1.bf16.msra.mxu0 %v3138_v55  ;;  %1866 = vmatpush1.bf16.msra.mxu1 %v3138_v55 }
  0x70   : > { %2540 = vmatprep.mubr.msk.bf16.mxu0 %vm378_vm0, %v3252_v6  ;;  %948 = vmatprep.subr.bf16.mxu0 %v3191_v1 }
  0x71   : > { %2734 = vmatprep.mubr.msk.bf16.mxu1 %vm378_vm0, %v3300_v16  ;;  %1867 = vmatprep.subr.bf16.mxu1 %v3191_v1 }
  0x73   : > { %949 = vmatpush1.bf16.msra.mxu0 %v3139_v56  ;;  %1868 = vmatpush1.bf16.msra.mxu1 %v3139_v56 }
  0x74   : > { %950 = vmatprep.subr.bf16.mxu0 %v3191_v1  ;;  %1869 = vmatprep.subr.bf16.mxu1 %v3191_v1 }
  0x76   : > { %697 = vmatmul.mubr.bf16.gmra.mrb[4].mxu0 %v3292_v14  ;;  %1809 = vmatmul.mubr.bf16.gmra.mrb[4].mxu1 %v3314_v19 }
  0x77   : > { %951 = vmatpush1.bf16.msra.mxu0 %v3140_v57  ;;  %1870 = vmatpush1.bf16.msra.mxu1 %v3140_v57 }
  0x78   : > { %2541 = vmatprep.mubr.msk.bf16.mxu0 %vm378_vm0, %v3303_v17  ;;  %2735 = vmatprep.mubr.msk.bf16.mxu1 %vm378_vm0, %v3326_v22 }
  0x79   : > { %952 = vmatprep.subr.bf16.mxu0 %v3191_v1  ;;  %1871 = vmatprep.subr.bf16.mxu1 %v3191_v1 }
  0x7b   : > { %953 = vmatpush1.bf16.msra.mxu0 %v3141_v58  ;;  %1872 = vmatpush1.bf16.msra.mxu1 %v3141_v58 }
  0x7c   : > { %954 = vmatprep.subr.bf16.mxu0 %v3191_v1  ;;  %1873 = vmatprep.subr.bf16.mxu1 %v3191_v1 }
  0x7e   : > { %705 = vmatmul.mubr.bf16.gmra.mrb[8].mxu0 %v3320_v20  ;;  %1817 = vmatmul.mubr.bf16.gmra.mrb[8].mxu1 %v3343_v25 }
  0x7f   : > { %2542 = vmatprep.mubr.msk.bf16.mxu0 %vm378_vm0, %v3331_v23  ;;  %2736 = vmatprep.mubr.msk.bf16.mxu1 %vm378_vm0, %v3351_v27 }
  0x80   : > { %955 = vmatpush1.bf16.msra.mxu0 %v3142_v59  ;;  %1874 = vmatpush1.bf16.msra.mxu1 %v3142_v59 }
  0x81   : > { %956 = vmatprep.subr.bf16.mxu0 %v3191_v1  ;;  %1875 = vmatprep.subr.bf16.mxu1 %v3191_v1 }
  0x84   : > { %957 = vmatpush1.bf16.msra.mxu0 %v3143_v60  ;;  %1876 = vmatpush1.bf16.msra.mxu1 %v3143_v60 }
  0x85   : > { %958 = vmatprep.subr.bf16.mxu0 %v3191_v1  ;;  %1877 = vmatprep.subr.bf16.mxu1 %v3191_v1 }
  0x86   : > { %713 = vmatmul.mubr.bf16.gmra.mrb[12].mxu0 %v3346_v26  ;;  %1825 = vmatmul.mubr.bf16.gmra.mrb[12].mxu1 %v3371_v31 }
  0x87   : > { %2543 = vmatprep.mubr.msk.bf16.mxu0 %vm378_vm0, %v3354_v28  ;;  %2737 = vmatprep.mubr.msk.bf16.mxu1 %vm378_vm0, %v3377_v33 }
  0x88   : > { %959 = vmatpush1.bf16.msra.mxu0 %v3144_v61  ;;  %1878 = vmatpush1.bf16.msra.mxu1 %v3144_v61 }
  0x89   : > { %960 = vmatprep.subr.bf16.mxu0 %v3191_v1  ;;  %1879 = vmatprep.subr.bf16.mxu1 %v3191_v1 }
  0x8c   : > { %961 = vmatpush1.bf16.msra.mxu0 %v3145_v62  ;;  %1880 = vmatpush1.bf16.msra.mxu1 %v3145_v62 }
  0x8d   : > { %962 = vmatprep.subr.bf16.mxu0 %v3191_v1  ;;  %1881 = vmatprep.subr.bf16.mxu1 %v3191_v1 }
  0x8e   : > { %721 = vmatmul.mubr.bf16.gmra.mrb[16].mxu0 %v3374_v32  ;;  %1833 = vmatmul.mubr.bf16.gmra.mrb[16].mxu1 %v3399_v37 }
  0x8f   : > { %2544 = vmatprep.mubr.msk.bf16.mxu0 %vm378_vm0, %v3380_v34  ;;  %2738 = vmatprep.mubr.msk.bf16.mxu1 %vm378_vm0, %v3405_v39 }
  0x90   : > { %963 = vmatpush1.bf16.msra.mxu0 %v3146_v63  ;;  %1882 = vmatpush1.bf16.msra.mxu1 %v3146_v63 }
  0x91   : > { %964 = vmatprep.subr.bf16.mxu0 %v3191_v1  ;;  %1883 = vmatprep.subr.bf16.mxu1 %v3191_v1 }
  0x94   : > { %965 = vmatpush1.bf16.msra.mxu0 %v3147_v0  ;;  %1884 = vmatpush1.bf16.msra.mxu1 %v3147_v0 }
  0x95   : > { %1252 = vmatprep.subr.bf16.mxu0 %v3191_v1  ;;  %1978 = vmatprep.subr.bf16.mxu1 %v3191_v1 }
  0x96   : > { %729 = vmatmul.mubr.bf16.gmra.mrb[20].mxu0 %v3402_v38  ;;  %1841 = vmatmul.mubr.bf16.gmra.mrb[20].mxu1 %v3429_v43 }
  0x97   : > { %2545 = vmatprep.mubr.msk.bf16.mxu0 %vm378_vm0, %v3408_v40  ;;  %2739 = vmatprep.mubr.msk.bf16.mxu1 %vm378_vm0, %v3435_v45 }
  0x9e   : > { %737 = vmatmul.mubr.bf16.gmra.mrb[24].mxu0 %v3432_v44  ;;  %1849 = vmatmul.mubr.bf16.gmra.mrb[24].mxu1 %v3449_v47 }
  0x9f   : > { %2546 = vmatprep.mubr.msk.bf16.mxu0 %vm378_vm0, %v3438_v46  ;;  %2740 = vmatprep.mubr.msk.bf16.mxu1 %vm378_vm0, %v3455_v49 }
  0xa6   : > { %745 = vmatmul.mubr.bf16.gmra.mrb[28].mxu0 %v3452_v48  ;;  %1857 = vmatmul.mubr.bf16.gmra.mrb[28].mxu1 %v3467_v51 }
  0xa7   : > { %2593 = vmatprep.mubr.msk.bf16.mxu0 %vm378_vm0, %v3252_v6  ;;  %2741 = vmatprep.mubr.msk.bf16.mxu1 %vm378_vm0, %v3300_v16  ;;  %v3152_v6 = vld [vmem:[%s3865_s1 + $0x110] sm:$0xff]  }
  0xae   : > { %979 = vmatmul.mubr.bf16.vlgmr.msra.gmra.mrb[0].mxu0 %v3292_v14  ;;  %1898 = vmatmul.mubr.bf16.vlgmr.msra.gmra.mrb[0].mxu1 %v3314_v19  ;;  %v3161_v14 = vld [vmem:[%s3865_s1 + $0x140] sm:$0xff]  }
  0xaf   : > { %1253 = vmatpush1.bf16.msra.mxu0 %v3148_v2  ;;  %1979 = vmatpush1.bf16.msra.mxu1 %v3148_v2 }
  0xb0   : > { %2594 = vmatprep.mubr.msk.bf16.mxu0 %vm378_vm0, %v3303_v17  ;;  %1254 = vmatprep.subr.bf16.mxu0 %v3191_v1 }
  0xb1   : > { %2742 = vmatprep.mubr.msk.bf16.mxu1 %vm378_vm0, %v3326_v22  ;;  %1980 = vmatprep.subr.bf16.mxu1 %v3191_v1 }
  0xb3   : > { %1255 = vmatpush1.bf16.msra.mxu0 %v3149_v3  ;;  %1981 = vmatpush1.bf16.msra.mxu1 %v3149_v3 }
  0xb4   : > { %1256 = vmatprep.subr.bf16.mxu0 %v3191_v1  ;;  %1982 = vmatprep.subr.bf16.mxu1 %v3191_v1 }
  0xb6   : > { %987 = vmatmul.mubr.bf16.gmra.mrb[4].mxu0 %v3320_v20  ;;  %1906 = vmatmul.mubr.bf16.gmra.mrb[4].mxu1 %v3343_v25 }
  0xb7   : > { %1257 = vmatpush1.bf16.msra.mxu0 %v3150_v4  ;;  %1983 = vmatpush1.bf16.msra.mxu1 %v3150_v4 }
  0xb8   : > { %2595 = vmatprep.mubr.msk.bf16.mxu0 %vm378_vm0, %v3331_v23  ;;  %2743 = vmatprep.mubr.msk.bf16.mxu1 %vm378_vm0, %v3351_v27 }
  0xb9   : > { %1258 = vmatprep.subr.bf16.mxu0 %v3191_v1  ;;  %1984 = vmatprep.subr.bf16.mxu1 %v3191_v1 }
  0xbb   : > { %1259 = vmatpush1.bf16.msra.mxu0 %v3151_v5  ;;  %1985 = vmatpush1.bf16.msra.mxu1 %v3151_v5 }
  0xbc   : > { %1260 = vmatprep.subr.bf16.mxu0 %v3191_v1  ;;  %1986 = vmatprep.subr.bf16.mxu1 %v3191_v1 }
  0xbe   : > { %995 = vmatmul.mubr.bf16.gmra.mrb[8].mxu0 %v3346_v26  ;;  %1914 = vmatmul.mubr.bf16.gmra.mrb[8].mxu1 %v3371_v31 }
  0xbf   : > { %2596 = vmatprep.mubr.msk.bf16.mxu0 %vm378_vm0, %v3354_v28  ;;  %2744 = vmatprep.mubr.msk.bf16.mxu1 %vm378_vm0, %v3377_v33 }
  0xc0   : > { %1261 = vmatpush1.bf16.msra.mxu0 %v3152_v6  ;;  %1987 = vmatpush1.bf16.msra.mxu1 %v3152_v6 }
  0xc1   : > { %1262 = vmatprep.subr.bf16.mxu0 %v3191_v1  ;;  %1988 = vmatprep.subr.bf16.mxu1 %v3191_v1 }
  0xc4   : > { %1263 = vmatpush1.bf16.msra.mxu0 %v3153_v7  ;;  %1989 = vmatpush1.bf16.msra.mxu1 %v3153_v7 }
  0xc5   : > { %1264 = vmatprep.subr.bf16.mxu0 %v3191_v1  ;;  %1990 = vmatprep.subr.bf16.mxu1 %v3191_v1 }
  0xc6   : > { %1003 = vmatmul.mubr.bf16.gmra.mrb[12].mxu0 %v3374_v32  ;;  %1922 = vmatmul.mubr.bf16.gmra.mrb[12].mxu1 %v3399_v37 }
  0xc7   : > { %2597 = vmatprep.mubr.msk.bf16.mxu0 %vm378_vm0, %v3380_v34  ;;  %2745 = vmatprep.mubr.msk.bf16.mxu1 %vm378_vm0, %v3405_v39 }
  0xc8   : > { %1265 = vmatpush1.bf16.msra.mxu0 %v3154_v8  ;;  %1991 = vmatpush1.bf16.msra.mxu1 %v3154_v8 }
  0xc9   : > { %1266 = vmatprep.subr.bf16.mxu0 %v3191_v1  ;;  %1992 = vmatprep.subr.bf16.mxu1 %v3191_v1 }
  0xcc   : > { %1267 = vmatpush1.bf16.msra.mxu0 %v3155_v9  ;;  %1993 = vmatpush1.bf16.msra.mxu1 %v3155_v9 }
  0xcd   : > { %1268 = vmatprep.subr.bf16.mxu0 %v3191_v1  ;;  %1994 = vmatprep.subr.bf16.mxu1 %v3191_v1 }
  0xce   : > { %1011 = vmatmul.mubr.bf16.gmra.mrb[16].mxu0 %v3402_v38  ;;  %1930 = vmatmul.mubr.bf16.gmra.mrb[16].mxu1 %v3429_v43 }
  0xcf   : > { %2598 = vmatprep.mubr.msk.bf16.mxu0 %vm378_vm0, %v3408_v40  ;;  %2746 = vmatprep.mubr.msk.bf16.mxu1 %vm378_vm0, %v3435_v45 }
  0xd0   : > { %1269 = vmatpush1.bf16.msra.mxu0 %v3156_v10  ;;  %1995 = vmatpush1.bf16.msra.mxu1 %v3156_v10 }
  0xd1   : > { %1270 = vmatprep.subr.bf16.mxu0 %v3191_v1  ;;  %1996 = vmatprep.subr.bf16.mxu1 %v3191_v1 }
  0xd4   : > { %1271 = vmatpush1.bf16.msra.mxu0 %v3160_v11  ;;  %1997 = vmatpush1.bf16.msra.mxu1 %v3160_v11 }
  0xd5   : > { %1558 = vmatprep.subr.bf16.mxu0 %v3191_v1  ;;  %2203 = vmatprep.subr.bf16.mxu1 %v3191_v1 }
  0xd6   : > { %1019 = vmatmul.mubr.bf16.gmra.mrb[20].mxu0 %v3432_v44  ;;  %1938 = vmatmul.mubr.bf16.gmra.mrb[20].mxu1 %v3449_v47 }
  0xd7   : > { %2599 = vmatprep.mubr.msk.bf16.mxu0 %vm378_vm0, %v3438_v46  ;;  %2747 = vmatprep.mubr.msk.bf16.mxu1 %vm378_vm0, %v3455_v49 }
  0xde   : > { %1027 = vmatmul.mubr.bf16.gmra.mrb[24].mxu0 %v3452_v48  ;;  %1946 = vmatmul.mubr.bf16.gmra.mrb[24].mxu1 %v3467_v51 }
  0xdf   : > { %2600 = vmatprep.mubr.msk.bf16.mxu0 %vm378_vm0, %v3458_v50  ;;  %2748 = vmatprep.mubr.msk.bf16.mxu1 %vm378_vm0, %v3663_v12 }
  0xe6   : > { %1035 = vmatmul.mubr.bf16.gmra.mrb[28].mxu0 %v3470_v52  ;;  %1954 = vmatmul.mubr.bf16.gmra.mrb[28].mxu1 %v3672_v13 }
  0xe7   : > { %2663 = vmatprep.mubr.msk.bf16.mxu0 %vm378_vm0, %v3300_v16  ;;  %2749 = vmatprep.mubr.msk.bf16.mxu1 %vm378_vm0, %v3303_v17  ;;  %v3163_v16 = vld [vmem:[%s3865_s1 + $0x150] sm:$0xff]  }
  0xee   : > { %1285 = vmatmul.mubr.bf16.vlgmr.msra.gmra.mrb[0].mxu0 %v3314_v19  ;;  %2011 = vmatmul.mubr.bf16.vlgmr.msra.gmra.mrb[0].mxu1 %v3320_v20  ;;  %v3165_v19 = vld [vmem:[%s3865_s1 + $0x160] sm:$0xff]  }
  0xef   : > { %1559 = vmatpush1.bf16.msra.mxu0 %v3161_v14  ;;  %2204 = vmatpush1.bf16.msra.mxu1 %v3161_v14 }
  0xf0   : > { %2664 = vmatprep.mubr.msk.bf16.mxu0 %vm378_vm0, %v3326_v22  ;;  %1560 = vmatprep.subr.bf16.mxu0 %v3191_v1  ;;  %v3167_v22 = vld [vmem:[%s3865_s1 + $0x170] sm:$0xff]  }
  0xf1   : > { %2750 = vmatprep.mubr.msk.bf16.mxu1 %vm378_vm0, %v3331_v23  ;;  %2205 = vmatprep.subr.bf16.mxu1 %v3191_v1 }
  0xf3   : > { %1561 = vmatpush1.bf16.msra.mxu0 %v3162_v15  ;;  %2206 = vmatpush1.bf16.msra.mxu1 %v3162_v15 }
  0xf4   : > { %1562 = vmatprep.subr.bf16.mxu0 %v3191_v1  ;;  %2207 = vmatprep.subr.bf16.mxu1 %v3191_v1 }
  0xf6   : > { %1293 = vmatmul.mubr.bf16.gmra.mrb[4].mxu0 %v3343_v25  ;;  %2019 = vmatmul.mubr.bf16.gmra.mrb[4].mxu1 %v3346_v26  ;;  %v3169_v25 = vld [vmem:[%s3865_s1 + $0x180] sm:$0xff]  }
  0xf7   : > { %1563 = vmatpush1.bf16.msra.mxu0 %v3163_v16  ;;  %2208 = vmatpush1.bf16.msra.mxu1 %v3163_v16 }
  0xf8   : > { %2665 = vmatprep.mubr.msk.bf16.mxu0 %vm378_vm0, %v3351_v27  ;;  %2751 = vmatprep.mubr.msk.bf16.mxu1 %vm378_vm0, %v3354_v28  ;;  %v3173_v27 = vld [vmem:[%s3865_s1 + $0x188] sm:$0xff]  }
  0xf9   : > { %1564 = vmatprep.subr.bf16.mxu0 %v3191_v1  ;;  %2209 = vmatprep.subr.bf16.mxu1 %v3191_v1 }
  0xfb   : > { %1565 = vmatpush1.bf16.msra.mxu0 %v3164_v18  ;;  %2210 = vmatpush1.bf16.msra.mxu1 %v3164_v18 }
  0xfc   : > { %1566 = vmatprep.subr.bf16.mxu0 %v3191_v1  ;;  %2211 = vmatprep.subr.bf16.mxu1 %v3191_v1 }
  0xfe   : > { %1301 = vmatmul.mubr.bf16.gmra.mrb[8].mxu0 %v3371_v31  ;;  %2027 = vmatmul.mubr.bf16.gmra.mrb[8].mxu1 %v3374_v32  ;;  %v3174_v31 = vld [vmem:[%s3241_s23 + $0xc0] ss:$8 sps:$4 sm:$0xff]  }
  0xff   : > { %2666 = vmatprep.mubr.msk.bf16.mxu0 %vm378_vm0, %v3377_v33  ;;  %2752 = vmatprep.mubr.msk.bf16.mxu1 %vm378_vm0, %v3380_v34 }
 0x100   : > { %1567 = vmatpush1.bf16.msra.mxu0 %v3165_v19  ;;  %2212 = vmatpush1.bf16.msra.mxu1 %v3165_v19 }
 0x101   : > { %1568 = vmatprep.subr.bf16.mxu0 %v3191_v1  ;;  %2213 = vmatprep.subr.bf16.mxu1 %v3191_v1 }
 0x104   : > { %1569 = vmatpush1.bf16.msra.mxu0 %v3166_v21  ;;  %2214 = vmatpush1.bf16.msra.mxu1 %v3166_v21 }
 0x105   : > { %1570 = vmatprep.subr.bf16.mxu0 %v3191_v1  ;;  %2215 = vmatprep.subr.bf16.mxu1 %v3191_v1 }
 0x106   : > { %1309 = vmatmul.mubr.bf16.gmra.mrb[12].mxu0 %v3399_v37  ;;  %2035 = vmatmul.mubr.bf16.gmra.mrb[12].mxu1 %v3402_v38 }
 0x107   : > { %2667 = vmatprep.mubr.msk.bf16.mxu0 %vm378_vm0, %v3405_v39  ;;  %2753 = vmatprep.mubr.msk.bf16.mxu1 %vm378_vm0, %v3408_v40 }
 0x108   : > { %1571 = vmatpush1.bf16.msra.mxu0 %v3167_v22  ;;  %2216 = vmatpush1.bf16.msra.mxu1 %v3167_v22 }
 0x109   : > { %1572 = vmatprep.subr.bf16.mxu0 %v3191_v1  ;;  %2217 = vmatprep.subr.bf16.mxu1 %v3191_v1 }
 0x10c   : > { %1573 = vmatpush1.bf16.msra.mxu0 %v3168_v24  ;;  %2218 = vmatpush1.bf16.msra.mxu1 %v3168_v24 }
 0x10d   : > { %1574 = vmatprep.subr.bf16.mxu0 %v3191_v1  ;;  %2219 = vmatprep.subr.bf16.mxu1 %v3191_v1 }
 0x10e   : > { %1317 = vmatmul.mubr.bf16.gmra.mrb[16].mxu0 %v3429_v43  ;;  %2043 = vmatmul.mubr.bf16.gmra.mrb[16].mxu1 %v3432_v44 }
 0x10f   : > { %2668 = vmatprep.mubr.msk.bf16.mxu0 %vm378_vm0, %v3435_v45  ;;  %2754 = vmatprep.mubr.msk.bf16.mxu1 %vm378_vm0, %v3438_v46 }
 0x110   : > { %1575 = vmatpush1.bf16.msra.mxu0 %v3169_v25  ;;  %2220 = vmatpush1.bf16.msra.mxu1 %v3169_v25 }
 0x111   : > { %1576 = vmatprep.subr.bf16.mxu0 %v3191_v1  ;;  %2221 = vmatprep.subr.bf16.mxu1 %v3191_v1  ;;  %v3172_v1 = vld [vmem:[%s3241_s23 + $0x90] ss:$8 sps:$4 sm:$0xff]  }
 0x114   : > { %1577 = vmatpush1.bf16.msra.mxu0 %v3173_v27  ;;  %2222 = vmatpush1.bf16.msra.mxu1 %v3173_v27 }
 0x116   : > { %1325 = vmatmul.mubr.bf16.gmra.mrb[20].mxu0 %v3449_v47  ;;  %2051 = vmatmul.mubr.bf16.gmra.mrb[20].mxu1 %v3452_v48 }
 0x117   : > { %2669 = vmatprep.mubr.msk.bf16.mxu0 %vm378_vm0, %v3455_v49  ;;  %2755 = vmatprep.mubr.msk.bf16.mxu1 %vm378_vm0, %v3458_v50 }
 0x11e   : > { %1333 = vmatmul.mubr.bf16.gmra.mrb[24].mxu0 %v3467_v51  ;;  %2059 = vmatmul.mubr.bf16.gmra.mrb[24].mxu1 %v3470_v52 }
 0x11f   : > { %2670 = vmatprep.mubr.msk.bf16.mxu0 %vm378_vm0, %v3663_v12  ;;  %2756 = vmatprep.mubr.msk.bf16.mxu1 %vm378_vm0, %v3170_v29 }
 0x126   : > { %1341 = vmatmul.mubr.bf16.gmra.mrb[28].mxu0 %v3672_v13  ;;  %2067 = vmatmul.mubr.bf16.gmra.mrb[28].mxu1 %v3172_v1 }
 0x127   : > { %2717 = vmatprep.mubr.msk.bf16.mxu0 %vm378_vm0, %v3303_v17  ;;  %2789 = vmatprep.mubr.msk.bf16.mxu1 %vm378_vm0, %v3176_v30  ;;  %v3180_v17 = vld [vmem:[%s3241_s23 + $0x134] ss:$8 sps:$4 sm:$0xff]  }
 0x12e   : > { %1591 = vmatmul.mubr.bf16.vlgmr.msra.gmra.mrb[0].mxu0 %v3320_v20  ;;  %2236 = vmatmul.mubr.bf16.vlgmr.msra.gmra.mrb[0].mxu1 %v3174_v31  ;;  %v3182_v20 = vld [vmem:[%s3241_s23 + $0x130] ss:$8 sps:$4 sm:$0xff]   ;;  %s2800_s23 = sshll.u32 %s3869_s13, 5 }
 0x12f   : > { %2718 = vmatprep.mubr.msk.bf16.mxu0 %vm378_vm0, %v3331_v23  ;;  %2790 = vmatprep.mubr.msk.bf16.mxu1 %vm378_vm0, %v3177_v35  ;;  %s3829_s26 = scalar_lea.vmem %s3867_s3, %s2800_s23 }
 0x136   : > { %1599 = vmatmul.mubr.bf16.gmra.mrb[4].mxu0 %v3346_v26  ;;  %2244 = vmatmul.mubr.bf16.gmra.mrb[4].mxu1 %v3179_v36 }
 0x137   : > { %2719 = vmatprep.mubr.msk.bf16.mxu0 %vm378_vm0, %v3354_v28  ;;  %2791 = vmatprep.mubr.msk.bf16.mxu1 %vm378_vm0, %v3377_v33 }
 0x13e   : > { %1607 = vmatmul.mubr.bf16.gmra.mrb[8].mxu0 %v3374_v32  ;;  %2252 = vmatmul.mubr.bf16.gmra.mrb[8].mxu1 %v3399_v37 }
 0x13f   : > { %2720 = vmatprep.mubr.msk.bf16.mxu0 %vm378_vm0, %v3380_v34  ;;  %2792 = vmatprep.mubr.msk.bf16.mxu1 %vm378_vm0, %v3405_v39  ;;  %v3821_v34 = vld [vmem:[%s3866_s2] ss:$0 sm:$0xff] }
 0x146   : > { %1615 = vmatmul.mubr.bf16.gmra.mrb[12].mxu0 %v3402_v38  ;;  %2260 = vmatmul.mubr.bf16.gmra.mrb[12].mxu1 %v3429_v43 }
 0x147   : > { %2721 = vmatprep.mubr.msk.bf16.mxu0 %vm378_vm0, %v3408_v40  ;;  %2793 = vmatprep.mubr.msk.bf16.mxu1 %vm378_vm0, %v3435_v45 }
 0x14e   : > { %1623 = vmatmul.mubr.bf16.gmra.mrb[16].mxu0 %v3432_v44  ;;  %2268 = vmatmul.mubr.bf16.gmra.mrb[16].mxu1 %v3449_v47 }
 0x14f   : > { %2722 = vmatprep.mubr.msk.bf16.mxu0 %vm378_vm0, %v3438_v46  ;;  %2794 = vmatprep.mubr.msk.bf16.mxu1 %vm378_vm0, %v3455_v49 }
 0x156   : > { %1631 = vmatmul.mubr.bf16.gmra.mrb[20].mxu0 %v3452_v48  ;;  %2276 = vmatmul.mubr.bf16.gmra.mrb[20].mxu1 %v3467_v51 }
 0x157   : > { %2723 = vmatprep.mubr.msk.bf16.mxu0 %vm378_vm0, %v3458_v50  ;;  %2795 = vmatprep.mubr.msk.bf16.mxu1 %vm378_vm0, %v3663_v12 }
 0x15e   : > { %1639 = vmatmul.mubr.bf16.gmra.mrb[24].mxu0 %v3470_v52  ;;  %2284 = vmatmul.mubr.bf16.gmra.mrb[24].mxu1 %v3672_v13 }
 0x15f   : > { %2724 = vmatprep.mubr.msk.bf16.mxu0 %vm378_vm0, %v3170_v29  ;;  %2796 = vmatprep.mubr.msk.bf16.mxu1 %vm378_vm0, %v3180_v17 }
 0x166   : > { %1647 = vmatmul.mubr.bf16.gmra.mrb[28].mxu0 %v3172_v1  ;;  %2292 = vmatmul.mubr.bf16.gmra.mrb[28].mxu1 %v3182_v20 }
 0x201   : > { %v1592_v23 = vpop.f32.mrb[0].mxu0  ;;  %v2237_v26 = vpop.f32.mrb[0].mxu1 }
 0x202   : > { %v2316_v28 = vmax.f32 %v1592_v23, %v2237_v26  ;;  %v1594_v32 = vpop.f32.mrb[1].mxu0  ;;  %v2239_v33 = vpop.f32.mrb[1].mxu1 }
 0x203   : > { %v1595_v37 = vpop.f32.mrb[2].mxu0  ;;  %v2240_v38 = vpop.f32.mrb[2].mxu1 }
 0x204   : > { %v2317_v39 = vmax.f32 %v1595_v37, %v2240_v38  ;;  %v1597_v40 = vpop.f32.mrb[3].mxu0  ;;  %v2242_v41 = vpop.f32.mrb[3].mxu1  ;;  %v2339_v42 = vadd.f32 %v3821_v34, %v2316_v28 }
 0x206   : > { %v2340_v43 = vadd.f32 %v3821_v34, %v2317_v39 }
 0x208   : > { %v2355_v44 = vmax.f32 %v2339_v42, %v2340_v43 }
 0x209   : > { %v1600_v45 = vpop.f32.mrb[4].mxu0  ;;  %v2245_v46 = vpop.f32.mrb[4].mxu1 }
 0x20a   : > { %v2363_v47 = vpack.c.bf16 %v2355_v44, %v2355_v44  ;;  %v2318_v48 = vmax.f32 %v1600_v45, %v2245_v46  ;;  %v1602_v49 = vpop.f32.mrb[5].mxu0  ;;  %v2247_v50 = vpop.f32.mrb[5].mxu1 }
 0x20b   : > { %v1603_v51 = vpop.f32.mrb[6].mxu0  ;;  %v2248_v52 = vpop.f32.mrb[6].mxu1 }
 0x20c   : > { %2372 = vst.msk [vmem:[%s3829_s26] sm:$0xf] %vm2371_vm1, %v2363_v47  ;;  %v2319_v53 = vmax.f32 %v1603_v51, %v2248_v52  ;;  %v1605_v54 = vpop.f32.mrb[7].mxu0  ;;  %v2250_v55 = vpop.f32.mrb[7].mxu1  ;;  %v2341_v56 = vadd.f32 %v3821_v34, %v2318_v48 }
 0x20e   : > { %v2342_v57 = vadd.f32 %v3821_v34, %v2319_v53 }
 0x210   : > { %v2356_v58 = vmax.f32 %v2341_v56, %v2342_v57 }
 0x211   : > { %v1608_v59 = vpop.f32.mrb[8].mxu0  ;;  %v2253_v60 = vpop.f32.mrb[8].mxu1 }
 0x212   : > { %v2364_v61 = vpack.c.bf16 %v2356_v58, %v2356_v58  ;;  %v2320_v62 = vmax.f32 %v1608_v59, %v2253_v60  ;;  %v1610_v63 = vpop.f32.mrb[9].mxu0  ;;  %v2255_v0 = vpop.f32.mrb[9].mxu1 }
 0x213   : > { %v1611_v2 = vpop.f32.mrb[10].mxu0  ;;  %v2256_v3 = vpop.f32.mrb[10].mxu1 }
 0x214   : > { %2373 = vst.msk [vmem:[%s3829_s26 + $0x4] sm:$0xf] %vm2371_vm1, %v2364_v61  ;;  %v2321_v4 = vmax.f32 %v1611_v2, %v2256_v3  ;;  %v1613_v5 = vpop.f32.mrb[11].mxu0  ;;  %v2258_v6 = vpop.f32.mrb[11].mxu1  ;;  %v2343_v7 = vadd.f32 %v3821_v34, %v2320_v62 }
 0x216   : > { %v2344_v8 = vadd.f32 %v3821_v34, %v2321_v4 }
 0x218   : > { %v2357_v9 = vmax.f32 %v2343_v7, %v2344_v8 }
 0x219   : > { %v1616_v10 = vpop.f32.mrb[12].mxu0  ;;  %v2261_v11 = vpop.f32.mrb[12].mxu1 }
 0x21a   : > { %v2365_v12 = vpack.c.bf16 %v2357_v9, %v2357_v9  ;;  %v2322_v13 = vmax.f32 %v1616_v10, %v2261_v11  ;;  %v1618_v14 = vpop.f32.mrb[13].mxu0  ;;  %v2263_v15 = vpop.f32.mrb[13].mxu1 }
 0x21b   : > { %v1619_v16 = vpop.f32.mrb[14].mxu0  ;;  %v2264_v18 = vpop.f32.mrb[14].mxu1 }
 0x21c   : > { %2374 = vst.msk [vmem:[%s3829_s26 + $0x8] sm:$0xf] %vm2371_vm1, %v2365_v12  ;;  %v2323_v19 = vmax.f32 %v1619_v16, %v2264_v18  ;;  %v1621_v21 = vpop.f32.mrb[15].mxu0  ;;  %v2266_v22 = vpop.f32.mrb[15].mxu1  ;;  %v2345_v24 = vadd.f32 %v3821_v34, %v2322_v13 }
 0x21e   : > { %v2346_v25 = vadd.f32 %v3821_v34, %v2323_v19 }
 0x220   : > { %v2358_v27 = vmax.f32 %v2345_v24, %v2346_v25 }
 0x221   : > { %v1624_v29 = vpop.f32.mrb[16].mxu0  ;;  %v2269_v1 = vpop.f32.mrb[16].mxu1 }
 0x222   : > { %v2366_v30 = vpack.c.bf16 %v2358_v27, %v2358_v27  ;;  %v2324_v31 = vmax.f32 %v1624_v29, %v2269_v1  ;;  %v1626_v35 = vpop.f32.mrb[17].mxu0  ;;  %v2271_v36 = vpop.f32.mrb[17].mxu1 }
 0x223   : > { %v1627_v17 = vpop.f32.mrb[18].mxu0  ;;  %v2272_v20 = vpop.f32.mrb[18].mxu1 }
 0x224   : > { %2375 = vst.msk [vmem:[%s3829_s26 + $0xc] sm:$0xf] %vm2371_vm1, %v2366_v30  ;;  %v2325_v23 = vmax.f32 %v1627_v17, %v2272_v20  ;;  %v1629_v26 = vpop.f32.mrb[19].mxu0  ;;  %v2274_v28 = vpop.f32.mrb[19].mxu1  ;;  %v2347_v32 = vadd.f32 %v3821_v34, %v2324_v31 }
 0x226   : > { %v2348_v33 = vadd.f32 %v3821_v34, %v2325_v23 }
 0x228   : > { %v2359_v37 = vmax.f32 %v2347_v32, %v2348_v33 }
 0x229   : > { %v1632_v38 = vpop.f32.mrb[20].mxu0  ;;  %v2277_v39 = vpop.f32.mrb[20].mxu1 }
 0x22a   : > { %v2367_v40 = vpack.c.bf16 %v2359_v37, %v2359_v37  ;;  %v2326_v41 = vmax.f32 %v1632_v38, %v2277_v39  ;;  %v1634_v42 = vpop.f32.mrb[21].mxu0  ;;  %v2279_v43 = vpop.f32.mrb[21].mxu1 }
 0x22b   : > { %v1635_v44 = vpop.f32.mrb[22].mxu0  ;;  %v2280_v45 = vpop.f32.mrb[22].mxu1 }
 0x22c   : > { %2376 = vst.msk [vmem:[%s3829_s26 + $0x10] sm:$0xf] %vm2371_vm1, %v2367_v40  ;;  %v2327_v46 = vmax.f32 %v1635_v44, %v2280_v45  ;;  %v1637_v47 = vpop.f32.mrb[23].mxu0  ;;  %v2282_v48 = vpop.f32.mrb[23].mxu1  ;;  %v2349_v49 = vadd.f32 %v3821_v34, %v2326_v41 }
 0x22e   : > { %v2350_v50 = vadd.f32 %v3821_v34, %v2327_v46 }
 0x230   : > { %v2360_v51 = vmax.f32 %v2349_v49, %v2350_v50 }
 0x231   : > { %v1640_v52 = vpop.f32.mrb[24].mxu0  ;;  %v2285_v53 = vpop.f32.mrb[24].mxu1 }
 0x232   : > { %v2368_v54 = vpack.c.bf16 %v2360_v51, %v2360_v51  ;;  %v2328_v55 = vmax.f32 %v1640_v52, %v2285_v53  ;;  %v1642_v56 = vpop.f32.mrb[25].mxu0  ;;  %v2287_v57 = vpop.f32.mrb[25].mxu1 }
 0x233   : > { %v1643_v58 = vpop.f32.mrb[26].mxu0  ;;  %v2288_v59 = vpop.f32.mrb[26].mxu1 }
 0x234   : > { %2377 = vst.msk [vmem:[%s3829_s26 + $0x14] sm:$0xf] %vm2371_vm1, %v2368_v54  ;;  %v2329_v60 = vmax.f32 %v1643_v58, %v2288_v59  ;;  %v1645_v61 = vpop.f32.mrb[27].mxu0  ;;  %v2290_v62 = vpop.f32.mrb[27].mxu1  ;;  %v2351_v63 = vadd.f32 %v3821_v34, %v2328_v55 }
 0x236   : > { %v2352_v0 = vadd.f32 %v3821_v34, %v2329_v60 }
 0x238   : > { %v2361_v2 = vmax.f32 %v2351_v63, %v2352_v0 }
 0x239   : > { %v1648_v3 = vpop.f32.mrb[28].mxu0  ;;  %v2293_v4 = vpop.f32.mrb[28].mxu1 }
 0x23a   : > { %v2369_v5 = vpack.c.bf16 %v2361_v2, %v2361_v2  ;;  %v2330_v6 = vmax.f32 %v1648_v3, %v2293_v4  ;;  %v1650_v7 = vpop.f32.mrb[29].mxu0  ;;  %v2295_v8 = vpop.f32.mrb[29].mxu1 }
 0x23b   : > { %v1651_v9 = vpop.f32.mrb[30].mxu0  ;;  %v2296_v10 = vpop.f32.mrb[30].mxu1 }
 0x23c   : > { %2378 = vst.msk [vmem:[%s3829_s26 + $0x18] sm:$0xf] %vm2371_vm1, %v2369_v5  ;;  %v2331_v11 = vmax.f32 %v1651_v9, %v2296_v10  ;;  %v1653_v12 = vpop.f32.mrb[31].mxu0  ;;  %v2298_v13 = vpop.f32.mrb[31].mxu1  ;;  %v2353_v14 = vadd.f32 %v3821_v34, %v2330_v6 }
 0x23e   : > { %v2354_v15 = vadd.f32 %v3821_v34, %v2331_v11 }
 0x240   : > { %v2362_v16 = vmax.f32 %v2353_v14, %v2354_v15 }
 0x242   : > { %v2370_v18 = vpack.c.bf16 %v2362_v16, %v2362_v16 }
 0x244   : > { %2379 = vst.msk [vmem:[%s3829_s26 + $0x1c] sm:$0xf] %vm2371_vm1, %v2370_v18 }
 0x245 PF: > { %s13_s12 = sadd.s32 1, %s3189_s12  }
 0x246   : > { %p10_p4 = scmp.ge.s32.totalorder %s13_s12, 4  }
 0x248   :  { %12 = sbr.rel (!%p10_p4) target bundleno = 1 (0x1), region = 67 }

// kernel: tiannet_forward.6
= control target key start
LH: loop header
LB: loop body
LE: loop exit
PB: predicated region body
PF: predicated region fallthrough
CT: control target
= control target key end

     0   :  { %s2210_s12 = smov 0   ;;  %s2668_s0 = inlined_call_operand.vmem [shape: bf16[2,2,96,160], index: 0, kind: input, shape index: {}]   ;;  %s2669_s1 = inlined_call_operand.vmem [shape: bf16[5,160,64], index: 1, kind: input, shape index: {}]   ;;  %s2670_s2 = inlined_call_operand.vmem [shape: f32[1,64], index: 2, kind: input, shape index: {}]   ;;  %s2671_s3 = inlined_call_operand.vmem [shape: bf16[2,4,4,64], index: 3, kind: output, shape index: {}]  }
   0x1 LB: > { %s1703_s13 = sadd.s32 4294967295, %s2187_s12   ;;  %p1707_p0 = scmp.ge.s32.totalorder %s2187_s12, 1  ;;  %s2187_s12 = sphi %s2210_s12, %s13_s12  }
   0x2   : > { %p137_p1 = scmp.lt.s32.totalorder %s2187_s12, 3 }
   0x4   : > { %p138_p2 = pnand %p1707_p0, %p137_p1 }
   0x5   : > { %v2095_v0 = vld [vmem:[%s2669_s1 + $0x50] sm:$0xff] (!%p138_p2)   ;;  %v2189_v1 = vmov (!%p138_p2), 0   ;;  %p161_p3 = scmp.lt.s32.totalorder (!%p138_p2), %s1703_s13, 1  ;;  %v2096_v2 = vld [vmem:[%s2669_s1 + $0x58] sm:$0xff] (!%p138_p2)   ;;  %v2097_v3 = vld [vmem:[%s2669_s1 + $0x60] sm:$0xff] (!%p138_p2)   ;;  %vm326_vm0 = vcmask (!%p138_p2), 261120  }
   0x6   : > { %141 = sbr.rel (%p138_p2) target bundleno = 453 (0x1c5), region = 32  ;;  %339 = vmatprep.subr.bf16.mxu0 (!%p138_p2), %v2189_v1  ;;  %1207 = vmatprep.subr.bf16.mxu1 (!%p138_p2), %v2189_v1  ;;  %v2098_v4 = vld [vmem:[%s2669_s1 + $0x68] sm:$0xff] (!%p138_p2)   ;;  %v2099_v7 = vld [vmem:[%s2669_s1 + $0x70] sm:$0xff] (!%p138_p2)   ;;  %v2100_v8 = vld [vmem:[%s2669_s1 + $0x78] sm:$0xff] (!%p138_p2)   ;;  %vm1643_vm1 = vcmask (!%p138_p2), 517120  }
   0x7   : > { %340 = vmatpush1.bf16.msra.mxu0 (!%p138_p2), %v2095_v0  ;;  %1208 = vmatpush1.bf16.msra.mxu1 (!%p138_p2), %v2095_v0  ;;  %v2101_v9 = vld [vmem:[%s2669_s1 + $0x80] sm:$0xff] (!%p138_p2)   ;;  %v2102_v10 = vld [vmem:[%s2669_s1 + $0x88] sm:$0xff] (!%p138_p2)   ;;  %v2103_v11 = vld [vmem:[%s2669_s1 + $0x90] sm:$0xff] (!%p138_p2)  }
   0x8   : > { %341 = vmatprep.subr.bf16.mxu0 (!%p138_p2), %v2189_v1  ;;  %1209 = vmatprep.subr.bf16.mxu1 (!%p138_p2), %v2189_v1  ;;  %v2104_v12 = vld [vmem:[%s2669_s1 + $0x98] sm:$0xff] (!%p138_p2)   ;;  %v2111_v15 = vld [vmem:[%s2669_s1] sm:$0xff] (!%p138_p2)   ;;  %v2112_v18 = vld [vmem:[%s2669_s1 + $0x8] sm:$0xff] (!%p138_p2)  }
   0x9   : > { %v2113_v21 = vld [vmem:[%s2669_s1 + $0x10] sm:$0xff] (!%p138_p2)   ;;  %v2114_v24 = vld [vmem:[%s2669_s1 + $0x18] sm:$0xff] (!%p138_p2)   ;;  %v2120_v27 = vld [vmem:[%s2669_s1 + $0x20] sm:$0xff] (!%p138_p2)  }
   0xa   : > { %v2122_v30 = vld [vmem:[%s2669_s1 + $0x28] sm:$0xff] (!%p138_p2)   ;;  %v2128_v33 = vld [vmem:[%s2669_s1 + $0x30] sm:$0xff] (!%p138_p2)   ;;  %v2130_v35 = vld [vmem:[%s2669_s1 + $0x38] sm:$0xff] (!%p138_p2)  }
   0xb   : > { %342 = vmatpush1.bf16.msra.mxu0 (!%p138_p2), %v2096_v2  ;;  %1210 = vmatpush1.bf16.msra.mxu1 (!%p138_p2), %v2096_v2  ;;  %v2136_v36 = vld [vmem:[%s2669_s1 + $0x40] sm:$0xff] (!%p138_p2)   ;;  %v2138_v37 = vld [vmem:[%s2669_s1 + $0x48] sm:$0xff] (!%p138_p2)   ;;  %v2144_v41 = vld [vmem:[%s2669_s1 + $0xb0] sm:$0xff] (!%p138_p2)  }
   0xc   : > { %343 = vmatprep.subr.bf16.mxu0 (!%p138_p2), %v2189_v1  ;;  %1211 = vmatprep.subr.bf16.mxu1 (!%p138_p2), %v2189_v1  ;;  %v2142_v39 = vld [vmem:[%s2669_s1 + $0xa0] sm:$0xff] (!%p138_p2)   ;;  %v2143_v40 = vld [vmem:[%s2669_s1 + $0xa8] sm:$0xff] (!%p138_p2)   ;;  %v2145_v42 = vld [vmem:[%s2669_s1 + $0xb8] sm:$0xff] (!%p138_p2)  }
   0xd   : > { %s2673_s13 = smov (!%p161_p3, %s1703_s13), 1  ;;  %v2146_v43 = vld [vmem:[%s2669_s1 + $0xc0] sm:$0xff]   ;;  %v2147_v44 = vld [vmem:[%s2669_s1 + $0xc8] sm:$0xff]   ;;  %v2148_v45 = vld [vmem:[%s2669_s1 + $0xd0] sm:$0xff]  }
   0xe   : > { %s2085_s18 = smul.u32 192, %s2673_s13  ;;  %v2149_v46 = vld [vmem:[%s2669_s1 + $0xd8] sm:$0xff]   ;;  %v2150_v47 = vld [vmem:[%s2669_s1 + $0xe0] sm:$0xff]   ;;  %v2151_v48 = vld [vmem:[%s2669_s1 + $0xe8] sm:$0xff]   ;;  %s1956_s24 = sshll.u32 %s2673_s13, 3 }
   0xf   : > { %344 = vmatpush1.bf16.msra.mxu0 %v2097_v3  ;;  %1212 = vmatpush1.bf16.msra.mxu1 %v2097_v3  ;;  %v2152_v49 = vld [vmem:[%s2669_s1 + $0xf0] sm:$0xff]   ;;  %v2153_v50 = vld [vmem:[%s2669_s1 + $0xf8] sm:$0xff]   ;;  %v2154_v51 = vld [vmem:[%s2669_s1 + $0x100] sm:$0xff]   ;;  %s2655_s26 = scalar_lea.vmem %s2671_s3, %s1956_s24 }
  0x10   : > { %s2239_s23 = scalar_lea.vmem %s2668_s0, %s2085_s18  ;;  %345 = vmatprep.subr.bf16.mxu0 %v2189_v1  ;;  %1213 = vmatprep.subr.bf16.mxu1 %v2189_v1  ;;  %v2155_v52 = vld [vmem:[%s2669_s1 + $0x108] sm:$0xff]   ;;  %v2156_v53 = vld [vmem:[%s2669_s1 + $0x110] sm:$0xff]   ;;  %v2157_v55 = vld [vmem:[%s2669_s1 + $0x118] sm:$0xff]  }
  0x11   : > { %v2247_v5 = vld [vmem:[%s2239_s23 + $0x64] ss:$8 sps:$4 sm:$0xff]   ;;  %v2250_v6 = vld [vmem:[%s2239_s23 + $0x14] ss:$8 sps:$4 sm:$0xff]   ;;  %v2287_v13 = vld [vmem:[%s2239_s23 + $0x60] ss:$8 sps:$4 sm:$0xff]  }
  0x12   : > { %1757 = vmatprep.mubr.msk.bf16.mxu0 %vm326_vm0, %v2247_v5  ;;  %1917 = vmatprep.mubr.msk.bf16.mxu1 %vm326_vm0, %v2250_v6  ;;  %v2290_v14 = vld [vmem:[%s2239_s23 + $0x10] ss:$8 sps:$4 sm:$0xff]   ;;  %v2298_v16 = vld [vmem:[%s2239_s23 + $0x74] ss:$8 sps:$4 sm:$0xff]   ;;  %v2301_v17 = vld [vmem:[%s2239_s23 + $0x24] ss:$8 sps:$4 sm:$0xff]  }
  0x13   : > { %346 = vmatpush1.bf16.msra.mxu0 %v2098_v4  ;;  %1214 = vmatpush1.bf16.msra.mxu1 %v2098_v4  ;;  %v2315_v19 = vld [vmem:[%s2239_s23 + $0x70] ss:$8 sps:$4 sm:$0xff]   ;;  %v2318_v20 = vld [vmem:[%s2239_s23 + $0x20] ss:$8 sps:$4 sm:$0xff]   ;;  %v2326_v22 = vld [vmem:[%s2239_s23 + $0x84] ss:$8 sps:$4 sm:$0xff]  }
  0x14   : > { %347 = vmatprep.subr.bf16.mxu0 %v2189_v1  ;;  %1215 = vmatprep.subr.bf16.mxu1 %v2189_v1  ;;  %v2329_v23 = vld [vmem:[%s2239_s23 + $0x34] ss:$8 sps:$4 sm:$0xff]   ;;  %v2343_v25 = vld [vmem:[%s2239_s23 + $0x80] ss:$8 sps:$4 sm:$0xff]   ;;  %v2346_v26 = vld [vmem:[%s2239_s23 + $0x30] ss:$8 sps:$4 sm:$0xff]  }
  0x15   : > { %v2354_v28 = vld [vmem:[%s2239_s23 + $0x94] ss:$8 sps:$4 sm:$0xff]   ;;  %v2357_v29 = vld [vmem:[%s2239_s23 + $0x44] ss:$8 sps:$4 sm:$0xff]   ;;  %v2371_v31 = vld [vmem:[%s2239_s23 + $0x90] ss:$8 sps:$4 sm:$0xff]  }
  0x16   : > { %v2374_v32 = vld [vmem:[%s2239_s23 + $0x40] ss:$8 sps:$4 sm:$0xff]   ;;  %v2141_v34 = vld [vmem:[%s2239_s23 + $0x4] ss:$8 sps:$4 sm:$0xff]   ;;  %v2162_v59 = vld [vmem:[%s2669_s1 + $0x130] sm:$0xff]  }
  0x17   : > { %348 = vmatpush1.bf16.msra.mxu0 %v2099_v7  ;;  %1216 = vmatpush1.bf16.msra.mxu1 %v2099_v7  ;;  %v2139_v38 = vld [vmem:[%s2239_s23] ss:$8 sps:$4 sm:$0xff]   ;;  %v2514_v54 = vld [vmem:[%s2239_s23 + $0xa4] ss:$8 sps:$4 sm:$0xff]   ;;  %v2164_v60 = vld [vmem:[%s2669_s1 + $0x138] sm:$0xff]  }
  0x18   : > { %349 = vmatprep.subr.bf16.mxu0 %v2189_v1  ;;  %1217 = vmatprep.subr.bf16.mxu1 %v2189_v1  ;;  %v2528_v56 = vld [vmem:[%s2239_s23 + $0xa0] ss:$8 sps:$4 sm:$0xff]   ;;  %v2167_v63 = vld [vmem:[%s2669_s1 + $0x150] sm:$0xff]   ;;  %v2168_v0 = vld [vmem:[%s2669_s1 + $0x158] sm:$0xff]  }
  0x19   : > { %v2158_v57 = vld [vmem:[%s2669_s1 + $0x120] sm:$0xff]   ;;  %v2159_v58 = vld [vmem:[%s2669_s1 + $0x128] sm:$0xff]   ;;  %v2173_v3 = vld [vmem:[%s2239_s23 + $0x54] ss:$8 sps:$4 sm:$0xff]  }
  0x1a   : > { %v2165_v61 = vld [vmem:[%s2669_s1 + $0x140] sm:$0xff]   ;;  %v2166_v62 = vld [vmem:[%s2669_s1 + $0x148] sm:$0xff]   ;;  %v2172_v7 = vld [vmem:[%s2669_s1 + $0x178] sm:$0xff]  }
  0x1b   : > { %350 = vmatpush1.bf16.msra.mxu0 %v2100_v8  ;;  %1218 = vmatpush1.bf16.msra.mxu1 %v2100_v8  ;;  %v2169_v2 = vld [vmem:[%s2669_s1 + $0x160] sm:$0xff]   ;;  %v2170_v4 = vld [vmem:[%s2669_s1 + $0x168] sm:$0xff]  }
  0x1c   : > { %351 = vmatprep.subr.bf16.mxu0 %v2189_v1  ;;  %1219 = vmatprep.subr.bf16.mxu1 %v2189_v1  ;;  %v2176_v8 = vld [vmem:[%s2669_s1 + $0x180] sm:$0xff]  }
  0x1f   : > { %352 = vmatpush1.bf16.msra.mxu0 %v2101_v9  ;;  %1220 = vmatpush1.bf16.msra.mxu1 %v2101_v9  ;;  %v2177_v9 = vld [vmem:[%s2669_s1 + $0x188] sm:$0xff]  }
  0x20   : > { %353 = vmatprep.subr.bf16.mxu0 %v2189_v1  ;;  %1221 = vmatprep.subr.bf16.mxu1 %v2189_v1 }
  0x23   : > { %354 = vmatpush1.bf16.msra.mxu0 %v2102_v10  ;;  %1222 = vmatpush1.bf16.msra.mxu1 %v2102_v10  ;;  %v2180_v10 = vld [vmem:[%s2239_s23 + $0xb0] ss:$8 sps:$4 sm:$0xff]  }
  0x24   : > { %355 = vmatprep.subr.bf16.mxu0 %v2189_v1  ;;  %1223 = vmatprep.subr.bf16.mxu1 %v2189_v1 }
  0x27   : > { %356 = vmatpush1.bf16.msra.mxu0 %v2103_v11  ;;  %1224 = vmatpush1.bf16.msra.mxu1 %v2103_v11 }
  0x28   : > { %357 = vmatprep.subr.bf16.mxu0 %v2189_v1  ;;  %1225 = vmatprep.subr.bf16.mxu1 %v2189_v1 }
  0x2b   : > { %358 = vmatpush1.bf16.msra.mxu0 %v2104_v12  ;;  %1226 = vmatpush1.bf16.msra.mxu1 %v2104_v12 }
  0x2c   : > { %512 = vmatprep.subr.bf16.mxu0 %v2189_v1  ;;  %1272 = vmatprep.subr.bf16.mxu1 %v2189_v1 }
  0x2e   : > { %372 = vmatmul.mubr.bf16.vlgmr.msra.gmra.mrb[0].mxu0 %v2287_v13  ;;  %1240 = vmatmul.mubr.bf16.vlgmr.msra.gmra.mrb[0].mxu1 %v2290_v14 }
  0x2f   : > { %513 = vmatpush1.bf16.msra.mxu0 %v2111_v15  ;;  %1273 = vmatpush1.bf16.msra.mxu1 %v2111_v15 }
  0x30   : > { %514 = vmatprep.subr.bf16.mxu0 %v2189_v1  ;;  %1274 = vmatprep.subr.bf16.mxu1 %v2189_v1 }
  0x31   : > { %1758 = vmatprep.mubr.msk.bf16.mxu0 %vm326_vm0, %v2298_v16  ;;  %1918 = vmatprep.mubr.msk.bf16.mxu1 %vm326_vm0, %v2301_v17 }
  0x33   : > { %515 = vmatpush1.bf16.msra.mxu0 %v2112_v18  ;;  %1275 = vmatpush1.bf16.msra.mxu1 %v2112_v18 }
  0x34   : > { %516 = vmatprep.subr.bf16.mxu0 %v2189_v1  ;;  %1276 = vmatprep.subr.bf16.mxu1 %v2189_v1 }
  0x36   : > { %380 = vmatmul.mubr.bf16.gmra.mrb[4].mxu0 %v2315_v19  ;;  %1248 = vmatmul.mubr.bf16.gmra.mrb[4].mxu1 %v2318_v20 }
  0x37   : > { %517 = vmatpush1.bf16.msra.mxu0 %v2113_v21  ;;  %1277 = vmatpush1.bf16.msra.mxu1 %v2113_v21 }
  0x38   : > { %518 = vmatprep.subr.bf16.mxu0 %v2189_v1  ;;  %1278 = vmatprep.subr.bf16.mxu1 %v2189_v1 }
  0x39   : > { %1759 = vmatprep.mubr.msk.bf16.mxu0 %vm326_vm0, %v2326_v22  ;;  %1919 = vmatprep.mubr.msk.bf16.mxu1 %vm326_vm0, %v2329_v23 }
  0x3b   : > { %519 = vmatpush1.bf16.msra.mxu0 %v2114_v24  ;;  %1279 = vmatpush1.bf16.msra.mxu1 %v2114_v24 }
  0x3c   : > { %520 = vmatprep.subr.bf16.mxu0 %v2189_v1  ;;  %1280 = vmatprep.subr.bf16.mxu1 %v2189_v1 }
  0x3e   : > { %388 = vmatmul.mubr.bf16.gmra.mrb[8].mxu0 %v2343_v25  ;;  %1256 = vmatmul.mubr.bf16.gmra.mrb[8].mxu1 %v2346_v26 }
  0x3f   : > { %521 = vmatpush1.bf16.msra.mxu0 %v2120_v27  ;;  %1281 = vmatpush1.bf16.msra.mxu1 %v2120_v27 }
  0x40   : > { %522 = vmatprep.subr.bf16.mxu0 %v2189_v1  ;;  %1282 = vmatprep.subr.bf16.mxu1 %v2189_v1 }
  0x41   : > { %1760 = vmatprep.mubr.msk.bf16.mxu0 %vm326_vm0, %v2354_v28  ;;  %1920 = vmatprep.mubr.msk.bf16.mxu1 %vm326_vm0, %v2357_v29 }
  0x43   : > { %523 = vmatpush1.bf16.msra.mxu0 %v2122_v30  ;;  %1283 = vmatpush1.bf16.msra.mxu1 %v2122_v30 }
  0x44   : > { %524 = vmatprep.subr.bf16.mxu0 %v2189_v1  ;;  %1284 = vmatprep.subr.bf16.mxu1 %v2189_v1 }
  0x46   : > { %396 = vmatmul.mubr.bf16.gmra.mrb[12].mxu0 %v2371_v31  ;;  %1264 = vmatmul.mubr.bf16.gmra.mrb[12].mxu1 %v2374_v32 }
  0x47   : > { %525 = vmatpush1.bf16.msra.mxu0 %v2128_v33  ;;  %1285 = vmatpush1.bf16.msra.mxu1 %v2128_v33 }
  0x48   : > { %526 = vmatprep.subr.bf16.mxu0 %v2189_v1  ;;  %1286 = vmatprep.subr.bf16.mxu1 %v2189_v1 }
  0x49   : > { %1779 = vmatprep.mubr.msk.bf16.mxu0 %vm326_vm0, %v2141_v34  ;;  %1921 = vmatprep.mubr.msk.bf16.mxu1 %vm326_vm0, %v2247_v5  ;;  %v2175_v5 = vld [vmem:[%s2239_s23 + $0x50] ss:$8 sps:$4 sm:$0xff]  }
  0x4b   : > { %527 = vmatpush1.bf16.msra.mxu0 %v2130_v35  ;;  %1287 = vmatpush1.bf16.msra.mxu1 %v2130_v35 }
  0x4c   : > { %528 = vmatprep.subr.bf16.mxu0 %v2189_v1  ;;  %1288 = vmatprep.subr.bf16.mxu1 %v2189_v1 }
  0x4f   : > { %529 = vmatpush1.bf16.msra.mxu0 %v2136_v36  ;;  %1289 = vmatpush1.bf16.msra.mxu1 %v2136_v36 }
  0x50   : > { %530 = vmatprep.subr.bf16.mxu0 %v2189_v1  ;;  %1290 = vmatprep.subr.bf16.mxu1 %v2189_v1 }
  0x53   : > { %531 = vmatpush1.bf16.msra.mxu0 %v2138_v37  ;;  %1291 = vmatpush1.bf16.msra.mxu1 %v2138_v37 }
  0x54   : > { %714 = vmatprep.subr.bf16.mxu0 %v2189_v1  ;;  %1337 = vmatprep.subr.bf16.mxu1 %v2189_v1 }
  0x56   : > { %545 = vmatmul.mubr.bf16.vlgmr.msra.gmra.mrb[0].mxu0 %v2139_v38  ;;  %1305 = vmatmul.mubr.bf16.vlgmr.msra.gmra.mrb[0].mxu1 %v2287_v13 }
  0x57   : > { %715 = vmatpush1.bf16.msra.mxu0 %v2142_v39  ;;  %1338 = vmatpush1.bf16.msra.mxu1 %v2142_v39 }
  0x58   : > { %716 = vmatprep.subr.bf16.mxu0 %v2189_v1  ;;  %1339 = vmatprep.subr.bf16.mxu1 %v2189_v1 }
  0x59   : > { %1780 = vmatprep.mubr.msk.bf16.mxu0 %vm326_vm0, %v2250_v6  ;;  %1922 = vmatprep.mubr.msk.bf16.mxu1 %vm326_vm0, %v2298_v16 }
  0x5b   : > { %717 = vmatpush1.bf16.msra.mxu0 %v2143_v40  ;;  %1340 = vmatpush1.bf16.msra.mxu1 %v2143_v40 }
  0x5c   : > { %718 = vmatprep.subr.bf16.mxu0 %v2189_v1  ;;  %1341 = vmatprep.subr.bf16.mxu1 %v2189_v1 }
  0x5e   : > { %553 = vmatmul.mubr.bf16.gmra.mrb[4].mxu0 %v2290_v14  ;;  %1313 = vmatmul.mubr.bf16.gmra.mrb[4].mxu1 %v2315_v19 }
  0x5f   : > { %719 = vmatpush1.bf16.msra.mxu0 %v2144_v41  ;;  %1342 = vmatpush1.bf16.msra.mxu1 %v2144_v41 }
  0x60   : > { %720 = vmatprep.subr.bf16.mxu0 %v2189_v1  ;;  %1343 = vmatprep.subr.bf16.mxu1 %v2189_v1 }
  0x61   : > { %1781 = vmatprep.mubr.msk.bf16.mxu0 %vm326_vm0, %v2301_v17  ;;  %1923 = vmatprep.mubr.msk.bf16.mxu1 %vm326_vm0, %v2326_v22 }
  0x63   : > { %721 = vmatpush1.bf16.msra.mxu0 %v2145_v42  ;;  %1344 = vmatpush1.bf16.msra.mxu1 %v2145_v42 }
  0x64   : > { %722 = vmatprep.subr.bf16.mxu0 %v2189_v1  ;;  %1345 = vmatprep.subr.bf16.mxu1 %v2189_v1 }
  0x66   : > { %561 = vmatmul.mubr.bf16.gmra.mrb[8].mxu0 %v2318_v20  ;;  %1321 = vmatmul.mubr.bf16.gmra.mrb[8].mxu1 %v2343_v25 }
  0x67   : > { %723 = vmatpush1.bf16.msra.mxu0 %v2146_v43  ;;  %1346 = vmatpush1.bf16.msra.mxu1 %v2146_v43 }
  0x68   : > { %724 = vmatprep.subr.bf16.mxu0 %v2189_v1  ;;  %1347 = vmatprep.subr.bf16.mxu1 %v2189_v1 }
  0x69   : > { %1782 = vmatprep.mubr.msk.bf16.mxu0 %vm326_vm0, %v2329_v23  ;;  %1924 = vmatprep.mubr.msk.bf16.mxu1 %vm326_vm0, %v2354_v28 }
  0x6b   : > { %725 = vmatpush1.bf16.msra.mxu0 %v2147_v44  ;;  %1348 = vmatpush1.bf16.msra.mxu1 %v2147_v44 }
  0x6c   : > { %726 = vmatprep.subr.bf16.mxu0 %v2189_v1  ;;  %1349 = vmatprep.subr.bf16.mxu1 %v2189_v1 }
  0x6e   : > { %569 = vmatmul.mubr.bf16.gmra.mrb[12].mxu0 %v2346_v26  ;;  %1329 = vmatmul.mubr.bf16.gmra.mrb[12].mxu1 %v2371_v31 }
  0x6f   : > { %727 = vmatpush1.bf16.msra.mxu0 %v2148_v45  ;;  %1350 = vmatpush1.bf16.msra.mxu1 %v2148_v45 }
  0x70   : > { %728 = vmatprep.subr.bf16.mxu0 %v2189_v1  ;;  %1351 = vmatprep.subr.bf16.mxu1 %v2189_v1 }
  0x71   : > { %1821 = vmatprep.mubr.msk.bf16.mxu0 %vm326_vm0, %v2250_v6  ;;  %1925 = vmatprep.mubr.msk.bf16.mxu1 %vm326_vm0, %v2298_v16  ;;  %v2171_v6 = vld [vmem:[%s2669_s1 + $0x170] sm:$0xff]  }
  0x73   : > { %729 = vmatpush1.bf16.msra.mxu0 %v2149_v46  ;;  %1352 = vmatpush1.bf16.msra.mxu1 %v2149_v46 }
  0x74   : > { %730 = vmatprep.subr.bf16.mxu0 %v2189_v1  ;;  %1353 = vmatprep.subr.bf16.mxu1 %v2189_v1 }
  0x77   : > { %731 = vmatpush1.bf16.msra.mxu0 %v2150_v47  ;;  %1354 = vmatpush1.bf16.msra.mxu1 %v2150_v47 }
  0x78   : > { %732 = vmatprep.subr.bf16.mxu0 %v2189_v1  ;;  %1355 = vmatprep.subr.bf16.mxu1 %v2189_v1 }
  0x7b   : > { %733 = vmatpush1.bf16.msra.mxu0 %v2151_v48  ;;  %1356 = vmatpush1.bf16.msra.mxu1 %v2151_v48 }
  0x7c   : > { %924 = vmatprep.subr.bf16.mxu0 %v2189_v1  ;;  %1410 = vmatprep.subr.bf16.mxu1 %v2189_v1 }
  0x7e   : > { %747 = vmatmul.mubr.bf16.vlgmr.msra.gmra.mrb[0].mxu0 %v2290_v14  ;;  %1370 = vmatmul.mubr.bf16.vlgmr.msra.gmra.mrb[0].mxu1 %v2315_v19 }
  0x7f   : > { %925 = vmatpush1.bf16.msra.mxu0 %v2152_v49  ;;  %1411 = vmatpush1.bf16.msra.mxu1 %v2152_v49 }
  0x80   : > { %926 = vmatprep.subr.bf16.mxu0 %v2189_v1  ;;  %1412 = vmatprep.subr.bf16.mxu1 %v2189_v1 }
  0x81   : > { %1822 = vmatprep.mubr.msk.bf16.mxu0 %vm326_vm0, %v2301_v17  ;;  %1926 = vmatprep.mubr.msk.bf16.mxu1 %vm326_vm0, %v2326_v22 }
  0x83   : > { %927 = vmatpush1.bf16.msra.mxu0 %v2153_v50  ;;  %1413 = vmatpush1.bf16.msra.mxu1 %v2153_v50 }
  0x84   : > { %928 = vmatprep.subr.bf16.mxu0 %v2189_v1  ;;  %1414 = vmatprep.subr.bf16.mxu1 %v2189_v1 }
  0x86   : > { %755 = vmatmul.mubr.bf16.gmra.mrb[4].mxu0 %v2318_v20  ;;  %1378 = vmatmul.mubr.bf16.gmra.mrb[4].mxu1 %v2343_v25 }
  0x87   : > { %929 = vmatpush1.bf16.msra.mxu0 %v2154_v51  ;;  %1415 = vmatpush1.bf16.msra.mxu1 %v2154_v51 }
  0x88   : > { %930 = vmatprep.subr.bf16.mxu0 %v2189_v1  ;;  %1416 = vmatprep.subr.bf16.mxu1 %v2189_v1 }
  0x89   : > { %1823 = vmatprep.mubr.msk.bf16.mxu0 %vm326_vm0, %v2329_v23  ;;  %1927 = vmatprep.mubr.msk.bf16.mxu1 %vm326_vm0, %v2354_v28 }
  0x8b   : > { %931 = vmatpush1.bf16.msra.mxu0 %v2155_v52  ;;  %1417 = vmatpush1.bf16.msra.mxu1 %v2155_v52 }
  0x8c   : > { %932 = vmatprep.subr.bf16.mxu0 %v2189_v1  ;;  %1418 = vmatprep.subr.bf16.mxu1 %v2189_v1 }
  0x8e   : > { %763 = vmatmul.mubr.bf16.gmra.mrb[8].mxu0 %v2346_v26  ;;  %1386 = vmatmul.mubr.bf16.gmra.mrb[8].mxu1 %v2371_v31 }
  0x8f   : > { %933 = vmatpush1.bf16.msra.mxu0 %v2156_v53  ;;  %1419 = vmatpush1.bf16.msra.mxu1 %v2156_v53 }
  0x90   : > { %934 = vmatprep.subr.bf16.mxu0 %v2189_v1  ;;  %1420 = vmatprep.subr.bf16.mxu1 %v2189_v1 }
  0x91   : > { %1824 = vmatprep.mubr.msk.bf16.mxu0 %vm326_vm0, %v2357_v29  ;;  %1928 = vmatprep.mubr.msk.bf16.mxu1 %vm326_vm0, %v2514_v54 }
  0x93   : > { %935 = vmatpush1.bf16.msra.mxu0 %v2157_v55  ;;  %1421 = vmatpush1.bf16.msra.mxu1 %v2157_v55 }
  0x94   : > { %936 = vmatprep.subr.bf16.mxu0 %v2189_v1  ;;  %1422 = vmatprep.subr.bf16.mxu1 %v2189_v1 }
  0x96   : > { %771 = vmatmul.mubr.bf16.gmra.mrb[12].mxu0 %v2374_v32  ;;  %1394 = vmatmul.mubr.bf16.gmra.mrb[12].mxu1 %v2528_v56 }
  0x97   : > { %937 = vmatpush1.bf16.msra.mxu0 %v2158_v57  ;;  %1423 = vmatpush1.bf16.msra.mxu1 %v2158_v57 }
  0x98   : > { %938 = vmatprep.subr.bf16.mxu0 %v2189_v1  ;;  %1424 = vmatprep.subr.bf16.mxu1 %v2189_v1 }
  0x99   : > { %1871 = vmatprep.mubr.msk.bf16.mxu0 %vm326_vm0, %v2298_v16  ;;  %1929 = vmatprep.mubr.msk.bf16.mxu1 %vm326_vm0, %v2301_v17  ;;  %v1953_v16 = vld [vmem:[%s2670_s2] ss:$0 sm:$0xff] }
  0x9b   : > { %939 = vmatpush1.bf16.msra.mxu0 %v2159_v58  ;;  %1425 = vmatpush1.bf16.msra.mxu1 %v2159_v58 }
  0x9c   : > { %940 = vmatprep.subr.bf16.mxu0 %v2189_v1  ;;  %1426 = vmatprep.subr.bf16.mxu1 %v2189_v1 }
  0x9f   : > { %941 = vmatpush1.bf16.msra.mxu0 %v2162_v59  ;;  %1427 = vmatpush1.bf16.msra.mxu1 %v2162_v59 }
  0xa0   : > { %942 = vmatprep.subr.bf16.mxu0 %v2189_v1  ;;  %1428 = vmatprep.subr.bf16.mxu1 %v2189_v1 }
  0xa3   : > { %943 = vmatpush1.bf16.msra.mxu0 %v2164_v60  ;;  %1429 = vmatpush1.bf16.msra.mxu1 %v2164_v60 }
  0xa4   : > { %1134 = vmatprep.subr.bf16.mxu0 %v2189_v1  ;;  %1539 = vmatprep.subr.bf16.mxu1 %v2189_v1 }
  0xa6   : > { %957 = vmatmul.mubr.bf16.vlgmr.msra.gmra.mrb[0].mxu0 %v2315_v19  ;;  %1443 = vmatmul.mubr.bf16.vlgmr.msra.gmra.mrb[0].mxu1 %v2318_v20 }
  0xa7   : > { %1135 = vmatpush1.bf16.msra.mxu0 %v2165_v61  ;;  %1540 = vmatpush1.bf16.msra.mxu1 %v2165_v61 }
  0xa8   : > { %1136 = vmatprep.subr.bf16.mxu0 %v2189_v1  ;;  %1541 = vmatprep.subr.bf16.mxu1 %v2189_v1 }
  0xa9   : > { %1872 = vmatprep.mubr.msk.bf16.mxu0 %vm326_vm0, %v2326_v22  ;;  %1930 = vmatprep.mubr.msk.bf16.mxu1 %vm326_vm0, %v2329_v23 }
  0xab   : > { %1137 = vmatpush1.bf16.msra.mxu0 %v2166_v62  ;;  %1542 = vmatpush1.bf16.msra.mxu1 %v2166_v62 }
  0xac   : > { %1138 = vmatprep.subr.bf16.mxu0 %v2189_v1  ;;  %1543 = vmatprep.subr.bf16.mxu1 %v2189_v1 }
  0xae   : > { %965 = vmatmul.mubr.bf16.gmra.mrb[4].mxu0 %v2343_v25  ;;  %1451 = vmatmul.mubr.bf16.gmra.mrb[4].mxu1 %v2346_v26 }
  0xaf   : > { %1139 = vmatpush1.bf16.msra.mxu0 %v2167_v63  ;;  %1544 = vmatpush1.bf16.msra.mxu1 %v2167_v63 }
  0xb0   : > { %1140 = vmatprep.subr.bf16.mxu0 %v2189_v1  ;;  %1545 = vmatprep.subr.bf16.mxu1 %v2189_v1 }
  0xb1   : > { %1873 = vmatprep.mubr.msk.bf16.mxu0 %vm326_vm0, %v2354_v28  ;;  %1931 = vmatprep.mubr.msk.bf16.mxu1 %vm326_vm0, %v2357_v29 }
  0xb3   : > { %1141 = vmatpush1.bf16.msra.mxu0 %v2168_v0  ;;  %1546 = vmatpush1.bf16.msra.mxu1 %v2168_v0 }
  0xb4   : > { %1142 = vmatprep.subr.bf16.mxu0 %v2189_v1  ;;  %1547 = vmatprep.subr.bf16.mxu1 %v2189_v1 }
  0xb6   : > { %973 = vmatmul.mubr.bf16.gmra.mrb[8].mxu0 %v2371_v31  ;;  %1459 = vmatmul.mubr.bf16.gmra.mrb[8].mxu1 %v2374_v32 }
  0xb7   : > { %1143 = vmatpush1.bf16.msra.mxu0 %v2169_v2  ;;  %1548 = vmatpush1.bf16.msra.mxu1 %v2169_v2 }
  0xb8   : > { %1144 = vmatprep.subr.bf16.mxu0 %v2189_v1  ;;  %1549 = vmatprep.subr.bf16.mxu1 %v2189_v1 }
  0xb9   : > { %1874 = vmatprep.mubr.msk.bf16.mxu0 %vm326_vm0, %v2514_v54  ;;  %1932 = vmatprep.mubr.msk.bf16.mxu1 %vm326_vm0, %v2173_v3 }
  0xbb   : > { %1145 = vmatpush1.bf16.msra.mxu0 %v2170_v4  ;;  %1550 = vmatpush1.bf16.msra.mxu1 %v2170_v4 }
  0xbc   : > { %1146 = vmatprep.subr.bf16.mxu0 %v2189_v1  ;;  %1551 = vmatprep.subr.bf16.mxu1 %v2189_v1 }
  0xbe   : > { %981 = vmatmul.mubr.bf16.gmra.mrb[12].mxu0 %v2528_v56  ;;  %1467 = vmatmul.mubr.bf16.gmra.mrb[12].mxu1 %v2175_v5 }
  0xbf   : > { %1147 = vmatpush1.bf16.msra.mxu0 %v2171_v6  ;;  %1552 = vmatpush1.bf16.msra.mxu1 %v2171_v6 }
  0xc0   : > { %1148 = vmatprep.subr.bf16.mxu0 %v2189_v1  ;;  %1553 = vmatprep.subr.bf16.mxu1 %v2189_v1 }
  0xc1   : > { %1913 = vmatprep.mubr.msk.bf16.mxu0 %vm326_vm0, %v2301_v17  ;;  %1949 = vmatprep.mubr.msk.bf16.mxu1 %vm326_vm0, %v2326_v22 }
  0xc3   : > { %1149 = vmatpush1.bf16.msra.mxu0 %v2172_v7  ;;  %1554 = vmatpush1.bf16.msra.mxu1 %v2172_v7 }
  0xc4   : > { %1150 = vmatprep.subr.bf16.mxu0 %v2189_v1  ;;  %1555 = vmatprep.subr.bf16.mxu1 %v2189_v1 }
  0xc7   : > { %1151 = vmatpush1.bf16.msra.mxu0 %v2176_v8  ;;  %1556 = vmatpush1.bf16.msra.mxu1 %v2176_v8 }
  0xc8   : > { %1152 = vmatprep.subr.bf16.mxu0 %v2189_v1  ;;  %1557 = vmatprep.subr.bf16.mxu1 %v2189_v1  ;;  %v2178_v1 = vld [vmem:[%s2239_s23 + $0xb4] ss:$8 sps:$4 sm:$0xff]  }
  0xcb   : > { %1153 = vmatpush1.bf16.msra.mxu0 %v2177_v9  ;;  %1558 = vmatpush1.bf16.msra.mxu1 %v2177_v9 }
  0xce   : > { %1167 = vmatmul.mubr.bf16.vlgmr.msra.gmra.mrb[0].mxu0 %v2318_v20  ;;  %1572 = vmatmul.mubr.bf16.vlgmr.msra.gmra.mrb[0].mxu1 %v2343_v25 }
  0xcf   : > { %1914 = vmatprep.mubr.msk.bf16.mxu0 %vm326_vm0, %v2329_v23  ;;  %1950 = vmatprep.mubr.msk.bf16.mxu1 %vm326_vm0, %v2354_v28 }
  0xd6   : > { %1175 = vmatmul.mubr.bf16.gmra.mrb[4].mxu0 %v2346_v26  ;;  %1580 = vmatmul.mubr.bf16.gmra.mrb[4].mxu1 %v2371_v31 }
  0xd7   : > { %1915 = vmatprep.mubr.msk.bf16.mxu0 %vm326_vm0, %v2357_v29  ;;  %1951 = vmatprep.mubr.msk.bf16.mxu1 %vm326_vm0, %v2514_v54 }
  0xde   : > { %1183 = vmatmul.mubr.bf16.gmra.mrb[8].mxu0 %v2374_v32  ;;  %1588 = vmatmul.mubr.bf16.gmra.mrb[8].mxu1 %v2528_v56 }
  0xdf   : > { %1916 = vmatprep.mubr.msk.bf16.mxu0 %vm326_vm0, %v2173_v3  ;;  %1952 = vmatprep.mubr.msk.bf16.mxu1 %vm326_vm0, %v2178_v1 }
  0xe6   : > { %1191 = vmatmul.mubr.bf16.gmra.mrb[12].mxu0 %v2175_v5  ;;  %1596 = vmatmul.mubr.bf16.gmra.mrb[12].mxu1 %v2180_v10 }
 0x1a1   : > { %v1168_v11 = vpop.f32.mrb[0].mxu0  ;;  %v1573_v12 = vpop.f32.mrb[0].mxu1 }
 0x1a2   : > { %v1612_v13 = vmax.f32 %v1168_v11, %v1573_v12  ;;  %v1170_v14 = vpop.f32.mrb[1].mxu0  ;;  %v1575_v15 = vpop.f32.mrb[1].mxu1 }
 0x1a3   : > { %v1171_v17 = vpop.f32.mrb[2].mxu0  ;;  %v1576_v18 = vpop.f32.mrb[2].mxu1 }
 0x1a4   : > { %v1613_v19 = vmax.f32 %v1171_v17, %v1576_v18  ;;  %v1173_v20 = vpop.f32.mrb[3].mxu0  ;;  %v1578_v21 = vpop.f32.mrb[3].mxu1  ;;  %v1627_v22 = vadd.f32 %v1953_v16, %v1612_v13 }
 0x1a6   : > { %v1628_v23 = vadd.f32 %v1953_v16, %v1613_v19 }
 0x1a8   : > { %v1635_v24 = vmax.f32 %v1627_v22, %v1628_v23 }
 0x1a9   : > { %v1176_v25 = vpop.f32.mrb[4].mxu0  ;;  %v1581_v26 = vpop.f32.mrb[4].mxu1 }
 0x1aa   : > { %v1639_v27 = vpack.c.bf16 %v1635_v24, %v1635_v24  ;;  %v1614_v28 = vmax.f32 %v1176_v25, %v1581_v26  ;;  %v1178_v29 = vpop.f32.mrb[5].mxu0  ;;  %v1583_v30 = vpop.f32.mrb[5].mxu1 }
 0x1ab   : > { %v1179_v31 = vpop.f32.mrb[6].mxu0  ;;  %v1584_v32 = vpop.f32.mrb[6].mxu1 }
 0x1ac   : > { %1644 = vst.msk [vmem:[%s2655_s26] sm:$0x3] %vm1643_vm1, %v1639_v27  ;;  %v1615_v33 = vmax.f32 %v1179_v31, %v1584_v32  ;;  %v1181_v34 = vpop.f32.mrb[7].mxu0  ;;  %v1586_v35 = vpop.f32.mrb[7].mxu1  ;;  %v1629_v36 = vadd.f32 %v1953_v16, %v1614_v28 }
 0x1ae   : > { %v1630_v37 = vadd.f32 %v1953_v16, %v1615_v33 }
 0x1b0   : > { %v1636_v38 = vmax.f32 %v1629_v36, %v1630_v37 }
 0x1b1   : > { %v1184_v39 = vpop.f32.mrb[8].mxu0  ;;  %v1589_v40 = vpop.f32.mrb[8].mxu1 }
 0x1b2   : > { %v1640_v41 = vpack.c.bf16 %v1636_v38, %v1636_v38  ;;  %v1616_v42 = vmax.f32 %v1184_v39, %v1589_v40  ;;  %v1186_v43 = vpop.f32.mrb[9].mxu0  ;;  %v1591_v44 = vpop.f32.mrb[9].mxu1 }
 0x1b3   : > { %v1187_v45 = vpop.f32.mrb[10].mxu0  ;;  %v1592_v46 = vpop.f32.mrb[10].mxu1 }
 0x1b4   : > { %1645 = vst.msk [vmem:[%s2655_s26 + $0x2] sm:$0x3] %vm1643_vm1, %v1640_v41  ;;  %v1617_v47 = vmax.f32 %v1187_v45, %v1592_v46  ;;  %v1189_v48 = vpop.f32.mrb[11].mxu0  ;;  %v1594_v49 = vpop.f32.mrb[11].mxu1  ;;  %v1631_v50 = vadd.f32 %v1953_v16, %v1616_v42 }
 0x1b6   : > { %v1632_v51 = vadd.f32 %v1953_v16, %v1617_v47 }
 0x1b8   : > { %v1637_v52 = vmax.f32 %v1631_v50, %v1632_v51 }
 0x1b9   : > { %v1192_v53 = vpop.f32.mrb[12].mxu0  ;;  %v1597_v54 = vpop.f32.mrb[12].mxu1 }
 0x1ba   : > { %v1641_v55 = vpack.c.bf16 %v1637_v52, %v1637_v52  ;;  %v1618_v56 = vmax.f32 %v1192_v53, %v1597_v54  ;;  %v1194_v57 = vpop.f32.mrb[13].mxu0  ;;  %v1599_v58 = vpop.f32.mrb[13].mxu1 }
 0x1bb   : > { %v1195_v59 = vpop.f32.mrb[14].mxu0  ;;  %v1600_v60 = vpop.f32.mrb[14].mxu1 }
 0x1bc   : > { %1646 = vst.msk [vmem:[%s2655_s26 + $0x4] sm:$0x3] %vm1643_vm1, %v1641_v55  ;;  %v1619_v61 = vmax.f32 %v1195_v59, %v1600_v60  ;;  %v1197_v62 = vpop.f32.mrb[15].mxu0  ;;  %v1602_v63 = vpop.f32.mrb[15].mxu1  ;;  %v1633_v0 = vadd.f32 %v1953_v16, %v1618_v56 }
 0x1be   : > { %v1634_v2 = vadd.f32 %v1953_v16, %v1619_v61 }
 0x1c0   : > { %v1638_v3 = vmax.f32 %v1633_v0, %v1634_v2 }
 0x1c2   : > { %v1642_v4 = vpack.c.bf16 %v1638_v3, %v1638_v3 }
 0x1c4   : > { %1647 = vst.msk [vmem:[%s2655_s26 + $0x6] sm:$0x3] %vm1643_vm1, %v1642_v4 }
 0x1c5 PF: > { %s13_s12 = sadd.s32 1, %s2187_s12  }
 0x1c6   : > { %p10_p4 = scmp.ge.s32.totalorder %s13_s12, 4  }
 0x1c8   :  { %12 = sbr.rel (!%p10_p4) target bundleno = 1 (0x1), region = 67 }

// kernel: tiannet_forward.7
= control target key start
LH: loop header
LB: loop body
LE: loop exit
PB: predicated region body
PF: predicated region fallthrough
CT: control target
= control target key end

     0   :  { %vm1085_vm0 = vmmov 0   ;;  %vm772_vm1 = vcmask 523264   ;;  %vm816_vm2 = vcmask 80896   ;;  %s1341_s1 = inlined_call_operand.vmem [shape: bf16[1024,64], index: 1, kind: input, shape index: {}]   ;;  %s1342_s0 = inlined_call_operand.vmem [shape: bf16[8,1024], index: 0, kind: input, shape index: {}]   ;;  %s1343_s3 = inlined_call_operand.vmem [shape: bf16[64,10], index: 3, kind: input, shape index: {}]   ;;  %s1344_s2 = inlined_call_operand.vmem [shape: f32[1,64], index: 2, kind: input, shape index: {}]   ;;  %s1345_s4 = inlined_call_operand.vmem [shape: f32[1,10], index: 4, kind: input, shape index: {}]   ;;  %s1346_s5 = inlined_call_operand.vmem [shape: f32[8,10], index: 5, kind: output, shape index: {}]  }
   0x1   :  { %v1008_v0 = vld [vmem:[%s1341_s1 + $0x40] sm:$0xff]   ;;  %v1012_v4 = vld [vmem:[%s1341_s1 + $0x48] sm:$0xff]   ;;  %v1016_v8 = vld [vmem:[%s1341_s1 + $0x50] sm:$0xff]  }
   0x2   :  { %v1009_v1 = vld [vmem:[%s1341_s1 + $0xc0] sm:$0xff]   ;;  %901 = vmatprep.subr.bf16.mxu0 %v1008_v0  ;;  %v1013_v5 = vld [vmem:[%s1341_s1 + $0xc8] sm:$0xff]   ;;  %v1017_v9 = vld [vmem:[%s1341_s1 + $0xd0] sm:$0xff]  }
   0x3   :  { %v1010_v2 = vld [vmem:[%s1341_s1] sm:$0xff]   ;;  %923 = vmatprep.subr.bf16.mxu1 %v1009_v1  ;;  %v1014_v6 = vld [vmem:[%s1341_s1 + $0x8] sm:$0xff]   ;;  %v1018_v10 = vld [vmem:[%s1341_s1 + $0x10] sm:$0xff]  }
   0x4   :  { %v1011_v3 = vld [vmem:[%s1341_s1 + $0x80] sm:$0xff]   ;;  %902 = vmatpush3.bf16.msra.mxu0 %v1010_v2  ;;  %v1015_v7 = vld [vmem:[%s1341_s1 + $0x88] sm:$0xff]   ;;  %v1019_v11 = vld [vmem:[%s1341_s1 + $0x90] sm:$0xff]  }
   0x5   :  { %924 = vmatpush3.bf16.msra.mxu1 %v1011_v3  ;;  %903 = vmatprep.subr.bf16.mxu0 %v1012_v4  ;;  %v1020_v12 = vld [vmem:[%s1341_s1 + $0x58] sm:$0xff]   ;;  %v1024_v16 = vld [vmem:[%s1341_s1 + $0x60] sm:$0xff]   ;;  %v1028_v20 = vld [vmem:[%s1341_s1 + $0x68] sm:$0xff]  }
   0x6   :  { %925 = vmatprep.subr.bf16.mxu1 %v1013_v5  ;;  %v1021_v13 = vld [vmem:[%s1341_s1 + $0xd8] sm:$0xff]   ;;  %v1025_v17 = vld [vmem:[%s1341_s1 + $0xe0] sm:$0xff]   ;;  %v1029_v21 = vld [vmem:[%s1341_s1 + $0xe8] sm:$0xff]  }
   0x7   :  { %v1022_v14 = vld [vmem:[%s1341_s1 + $0x18] sm:$0xff]   ;;  %v1026_v18 = vld [vmem:[%s1341_s1 + $0x20] sm:$0xff]   ;;  %v1030_v22 = vld [vmem:[%s1341_s1 + $0x28] sm:$0xff]  }
   0x8   :  { %904 = vmatpush3.bf16.msra.mxu0 %v1014_v6  ;;  %v1023_v15 = vld [vmem:[%s1341_s1 + $0x98] sm:$0xff]   ;;  %v1027_v19 = vld [vmem:[%s1341_s1 + $0xa0] sm:$0xff]   ;;  %v1031_v23 = vld [vmem:[%s1341_s1 + $0xa8] sm:$0xff]  }
   0x9   :  { %926 = vmatpush3.bf16.msra.mxu1 %v1015_v7  ;;  %905 = vmatprep.subr.bf16.mxu0 %v1016_v8  ;;  %v1032_v24 = vld [vmem:[%s1341_s1 + $0x70] sm:$0xff]   ;;  %v1036_v28 = vld [vmem:[%s1341_s1 + $0x78] sm:$0xff]   ;;  %v21_v32 = vld [vmem:[%s1342_s0] sm:$0xff] }
   0xa   :  { %927 = vmatprep.subr.bf16.mxu1 %v1017_v9  ;;  %v1033_v25 = vld [vmem:[%s1341_s1 + $0xf0] sm:$0xff]   ;;  %v1037_v29 = vld [vmem:[%s1341_s1 + $0xf8] sm:$0xff]   ;;  %v22_v33 = vld [vmem:[%s1342_s0 + $0x8] sm:$0xff]  ;;  %v823_v34 = vcombine.low %v21_v32, %v21_v32  ;;  %v824_v35 = vcombine.high %v21_v32, %v21_v32 }
   0xb   :  { %v1034_v26 = vld [vmem:[%s1341_s1 + $0x30] sm:$0xff]   ;;  %v1038_v30 = vld [vmem:[%s1341_s1 + $0x38] sm:$0xff]   ;;  %v825_v36 = vcombine.low %v22_v33, %v22_v33  ;;  %v826_v37 = vcombine.high %v22_v33, %v22_v33  ;;  %v1044_v38 = vld [vmem:[%s1341_s1 + $0x140] sm:$0xff]  }
   0xc   :  { %906 = vmatpush3.bf16.msra.mxu0 %v1018_v10  ;;  %v1035_v27 = vld [vmem:[%s1341_s1 + $0xb0] sm:$0xff]   ;;  %v1039_v31 = vld [vmem:[%s1341_s1 + $0xb8] sm:$0xff]   ;;  %v1045_v39 = vld [vmem:[%s1341_s1 + $0x1c0] sm:$0xff]   ;;  %604 = vmatprep.mubr.bf16.mxu0 %v824_v35 }
   0xd   :  { %928 = vmatpush3.bf16.msra.mxu1 %v1019_v11  ;;  %907 = vmatprep.subr.bf16.mxu0 %v1020_v12  ;;  %v1046_v40 = vld [vmem:[%s1341_s1 + $0x100] sm:$0xff]   ;;  %v1048_v42 = vld [vmem:[%s1341_s1 + $0x148] sm:$0xff]   ;;  %v1052_v46 = vld [vmem:[%s1341_s1 + $0x150] sm:$0xff]   ;;  %v1084_v12 = vmov 0.0  }
   0xe   :  { %929 = vmatprep.subr.bf16.mxu1 %v1021_v13  ;;  %644 = vmatprep.mubr.bf16.mxu1 %v826_v37  ;;  %v1047_v41 = vld [vmem:[%s1341_s1 + $0x180] sm:$0xff]   ;;  %v1049_v43 = vld [vmem:[%s1341_s1 + $0x1c8] sm:$0xff]   ;;  %v1053_v47 = vld [vmem:[%s1341_s1 + $0x1d0] sm:$0xff]  }
   0xf   :  { %v1050_v44 = vld [vmem:[%s1341_s1 + $0x108] sm:$0xff]   ;;  %v1054_v48 = vld [vmem:[%s1341_s1 + $0x110] sm:$0xff]   ;;  %v1056_v50 = vld [vmem:[%s1341_s1 + $0x158] sm:$0xff]  }
  0x10   :  { %908 = vmatpush3.bf16.msra.mxu0 %v1022_v14  ;;  %v1051_v45 = vld [vmem:[%s1341_s1 + $0x188] sm:$0xff]   ;;  %v1055_v49 = vld [vmem:[%s1341_s1 + $0x190] sm:$0xff]   ;;  %v1057_v51 = vld [vmem:[%s1341_s1 + $0x1d8] sm:$0xff]  }
  0x11   :  { %930 = vmatpush3.bf16.msra.mxu1 %v1023_v15  ;;  %909 = vmatprep.subr.bf16.mxu0 %v1024_v16  ;;  %v1058_v52 = vld [vmem:[%s1341_s1 + $0x118] sm:$0xff]   ;;  %v1060_v54 = vld [vmem:[%s1341_s1 + $0x160] sm:$0xff]   ;;  %v1064_v58 = vld [vmem:[%s1341_s1 + $0x168] sm:$0xff]  }
  0x12   :  { %931 = vmatprep.subr.bf16.mxu1 %v1025_v17  ;;  %v1059_v53 = vld [vmem:[%s1341_s1 + $0x198] sm:$0xff]   ;;  %v1061_v55 = vld [vmem:[%s1341_s1 + $0x1e0] sm:$0xff]   ;;  %v1065_v59 = vld [vmem:[%s1341_s1 + $0x1e8] sm:$0xff]  }
  0x13   :  { %v1062_v56 = vld [vmem:[%s1341_s1 + $0x120] sm:$0xff]   ;;  %v1066_v60 = vld [vmem:[%s1341_s1 + $0x128] sm:$0xff]   ;;  %v1068_v62 = vld [vmem:[%s1341_s1 + $0x170] sm:$0xff]  }
  0x14   :  { %910 = vmatpush3.bf16.msra.mxu0 %v1026_v18  ;;  %v1063_v57 = vld [vmem:[%s1341_s1 + $0x1a0] sm:$0xff]   ;;  %v1067_v61 = vld [vmem:[%s1341_s1 + $0x1a8] sm:$0xff]   ;;  %v1069_v63 = vld [vmem:[%s1341_s1 + $0x1f0] sm:$0xff]  }
  0x15   :  { %932 = vmatpush3.bf16.msra.mxu1 %v1027_v19  ;;  %911 = vmatprep.subr.bf16.mxu0 %v1028_v20  ;;  %v1070_v0 = vld [vmem:[%s1341_s1 + $0x130] sm:$0xff]   ;;  %v1072_v2 = vld [vmem:[%s1341_s1 + $0x178] sm:$0xff]   ;;  %v1080_v13 = vld [vmem:[%s1343_s3] sm:$0xff]  }
  0x16   :  { %933 = vmatprep.subr.bf16.mxu1 %v1029_v21  ;;  %v1071_v1 = vld [vmem:[%s1341_s1 + $0x1b0] sm:$0xff]   ;;  %v1073_v3 = vld [vmem:[%s1341_s1 + $0x1f8] sm:$0xff]   ;;  %v1081_v14 = vld [vmem:[%s1343_s3 + $0x8] sm:$0xff]  }
  0x17   :  { %v1074_v4 = vld [vmem:[%s1341_s1 + $0x138] sm:$0xff]   ;;  %v23_v6 = vld [vmem:[%s1342_s0 + $0x10] sm:$0xff]  ;;  %v822_v19 = vld [vmem:[%s1344_s2] ss:$0 sm:$0xff] }
  0x18   :  { %912 = vmatpush3.bf16.msra.mxu0 %v1030_v22  ;;  %v1075_v5 = vld [vmem:[%s1341_s1 + $0x1b8] sm:$0xff]   ;;  %v827_v7 = vcombine.low %v23_v6, %v23_v6  ;;  %v828_v8 = vcombine.high %v23_v6, %v23_v6  ;;  %v1082_v15 = vld [vmem:[%s1343_s3 + $0x10] sm:$0xff]  }
  0x19   :  { %934 = vmatpush3.bf16.msra.mxu1 %v1031_v23  ;;  %913 = vmatprep.subr.bf16.mxu0 %v1032_v24  ;;  %v24_v9 = vld [vmem:[%s1342_s0 + $0x18] sm:$0xff] }
  0x1a   :  { %935 = vmatprep.subr.bf16.mxu1 %v1033_v25  ;;  %v829_v10 = vcombine.low %v24_v9, %v24_v9  ;;  %v830_v11 = vcombine.high %v24_v9, %v24_v9  ;;  %v1083_v16 = vld [vmem:[%s1343_s3 + $0x18] sm:$0xff]  }
  0x1c   :  { %914 = vmatpush3.bf16.msra.mxu0 %v1034_v26 }
  0x1d   :  { %936 = vmatpush3.bf16.msra.mxu1 %v1035_v27  ;;  %915 = vmatprep.subr.bf16.mxu0 %v1036_v28 }
  0x1e   :  { %937 = vmatprep.subr.bf16.mxu1 %v1037_v29 }
  0x20   :  { %916 = vmatpush3.bf16.msra.mxu0 %v1038_v30 }
  0x21   :  { %938 = vmatpush3.bf16.msra.mxu1 %v1039_v31  ;;  %945 = vmatprep.subr.bf16.mxu0 %v1044_v38 }
  0x22   :  { %967 = vmatprep.subr.bf16.mxu1 %v1045_v39 }
  0x23   :  { %605 = vmatmul.mubr.bf16.vlgmr.msra.gmra.mrb[0].mxu0 %v823_v34 }
  0x24   :  { %645 = vmatmul.mubr.bf16.vlgmr.msra.gmra.mrb[0].mxu1 %v825_v36  ;;  %946 = vmatpush3.bf16.msra.mxu0 %v1046_v40 }
  0x25   :  { %968 = vmatpush3.bf16.msra.mxu1 %v1047_v41  ;;  %947 = vmatprep.subr.bf16.mxu0 %v1048_v42 }
  0x26   :  { %969 = vmatprep.subr.bf16.mxu1 %v1049_v43  ;;  %684 = vmatprep.mubr.bf16.mxu0 %v828_v8  ;;  %v895_v43 = vld [vmem:[%s1345_s4] ss:$0 sm:$0xff] }
  0x27   :  { %724 = vmatprep.mubr.bf16.mxu1 %v830_v11 }
  0x28   :  { %948 = vmatpush3.bf16.msra.mxu0 %v1050_v44 }
  0x29   :  { %970 = vmatpush3.bf16.msra.mxu1 %v1051_v45  ;;  %949 = vmatprep.subr.bf16.mxu0 %v1052_v46 }
  0x2a   :  { %971 = vmatprep.subr.bf16.mxu1 %v1053_v47 }
  0x2c   :  { %950 = vmatpush3.bf16.msra.mxu0 %v1054_v48 }
  0x2d   :  { %972 = vmatpush3.bf16.msra.mxu1 %v1055_v49  ;;  %951 = vmatprep.subr.bf16.mxu0 %v1056_v50 }
  0x2e   :  { %973 = vmatprep.subr.bf16.mxu1 %v1057_v51 }
  0x30   :  { %952 = vmatpush3.bf16.msra.mxu0 %v1058_v52 }
  0x31   :  { %974 = vmatpush3.bf16.msra.mxu1 %v1059_v53  ;;  %953 = vmatprep.subr.bf16.mxu0 %v1060_v54 }
  0x32   :  { %975 = vmatprep.subr.bf16.mxu1 %v1061_v55 }
  0x34   :  { %954 = vmatpush3.bf16.msra.mxu0 %v1062_v56 }
  0x35   :  { %976 = vmatpush3.bf16.msra.mxu1 %v1063_v57  ;;  %955 = vmatprep.subr.bf16.mxu0 %v1064_v58 }
  0x36   :  { %977 = vmatprep.subr.bf16.mxu1 %v1065_v59 }
  0x38   :  { %956 = vmatpush3.bf16.msra.mxu0 %v1066_v60 }
  0x39   :  { %978 = vmatpush3.bf16.msra.mxu1 %v1067_v61  ;;  %957 = vmatprep.subr.bf16.mxu0 %v1068_v62 }
  0x3a   :  { %979 = vmatprep.subr.bf16.mxu1 %v1069_v63 }
  0x3c   :  { %958 = vmatpush3.bf16.msra.mxu0 %v1070_v0 }
  0x3d   :  { %980 = vmatpush3.bf16.msra.mxu1 %v1071_v1  ;;  %959 = vmatprep.subr.bf16.mxu0 %v1072_v2 }
  0x3e   :  { %981 = vmatprep.subr.bf16.mxu1 %v1073_v3 }
  0x40   :  { %960 = vmatpush3.bf16.msra.mxu0 %v1074_v4 }
  0x41   :  { %982 = vmatpush3.bf16.msra.mxu1 %v1075_v5  ;;  %994 = vmatprep.subr.bf16.mxu0 %v1084_v12 }
  0x43   :  { %685 = vmatmul.mubr.bf16.vlgmr.msra.gmra.mrb[4].mxu0 %v827_v7 }
  0x44   :  { %725 = vmatmul.mubr.bf16.vlgmr.msra.gmra.mrb[4].mxu1 %v829_v10  ;;  %995 = vmatpush3.bf16.msra.mxu0 %v1080_v13 }
  0x45   :  { %996 = vmatprep.subr.bf16.mxu0 %v1084_v12  ;;  %1002 = vmatprep.mubr.msk.bf16.mxu0 %vm1085_vm0, %v1084_v12 }
  0x48   :  { %997 = vmatpush3.bf16.msra.mxu0 %v1081_v14 }
  0x49   :  { %998 = vmatprep.subr.bf16.mxu0 %v1084_v12 }
  0x4c   :  { %999 = vmatpush3.bf16.msra.mxu0 %v1082_v15 }
  0x4d   :  { %1000 = vmatprep.subr.bf16.mxu0 %v1084_v12 }
  0x50   :  { %1001 = vmatpush3.bf16.msra.mxu0 %v1083_v16 }
  0xf6   :  { %v917_v17 = vpop.f32.mrb[0].mxu0 }
  0xf7   :  { %v939_v18 = vpop.f32.mrb[0].mxu1  ;;  %v918_v20 = vpop.f32.mrb[1].mxu0 }
  0xf8   :  { %v940_v21 = vpop.f32.mrb[1].mxu1  ;;  %v919_v22 = vadd.f32 %v918_v20, %v917_v17  ;;  %v920_v24 = vpop.f32.mrb[2].mxu0 }
  0xf9   :  { %v941_v23 = vadd.f32 %v940_v21, %v939_v18  ;;  %v942_v25 = vpop.f32.mrb[2].mxu1  ;;  %v921_v26 = vpop.f32.mrb[3].mxu0 }
  0xfa   :  { %v943_v27 = vpop.f32.mrb[3].mxu1  ;;  %v607_v28 = vadd.f32 %v919_v22, %v822_v19 }
  0xfc   :  { %v647_v29 = vadd.f32 %v941_v23, %v607_v28 }
 0x116   :  { %v961_v30 = vpop.f32.mrb[4].mxu0 }
 0x117   :  { %v983_v31 = vpop.f32.mrb[4].mxu1  ;;  %v962_v32 = vpop.f32.mrb[5].mxu0 }
 0x118   :  { %v984_v33 = vpop.f32.mrb[5].mxu1  ;;  %v963_v34 = vadd.f32 %v962_v32, %v961_v30  ;;  %v964_v36 = vpop.f32.mrb[6].mxu0 }
 0x119   :  { %v985_v35 = vadd.f32 %v984_v33, %v983_v31  ;;  %v986_v37 = vpop.f32.mrb[6].mxu1  ;;  %v965_v38 = vpop.f32.mrb[7].mxu0 }
 0x11a   :  { %v987_v39 = vpop.f32.mrb[7].mxu1  ;;  %v687_v40 = vadd.f32 %v963_v34, %v647_v29 }
 0x11c   :  { %v727_v41 = vadd.f32 %v985_v35, %v687_v40 }
 0x11e   :  { %v732_v42 = vpack.c.bf16 %v727_v41, %v727_v41 }
 0x120   :  { %1003 = vmatmul.mubr.msk.bf16.vlgmr.msra.gmra.mrb[8].mxu0 %vm772_vm1, %v732_v42 }
 0x1f3   :  { %v810_v44 = vpop.f32.mrb[8].mxu0 }
 0x1f4   :  { %v811_v45 = vadd.f32 %v895_v43, %v810_v44  ;;  %v1004_v46 = vpop.f32.mrb[9].mxu0 }
 0x1f5   :  { %v813_v47 = vpop.f32.mrb[10].mxu0 }
 0x1f6   :  { %817 = vst.msk [vmem:[%s1346_s5] sm:$0xff] %vm816_vm2, %v811_v45  ;;  %v1005_v48 = vpop.f32.mrb[11].mxu0 }

</bundles_post_ra>
